<compile_context>
chip_gen: v6e
topology: v6e:2x2x1
jax: 0.10.0
libtpu: 0.0.40
codegen_flags: <defaults>
</compile_context>

<pallas_src>
import jax
import jax.numpy as jnp
from jax import lax
from jax.experimental import pallas as pl
from jax.experimental.pallas import tpu as pltpu

EPS = 1e-5  # nn.BatchNorm default


def _bn_train(x, gamma, beta):
    """Training-mode BatchNorm1d on [N, C]: one-pass batch stats (biased variance)."""
    inv_n = 1.0 / x.shape[0]
    s = jnp.sum(x, axis=0, keepdims=True)
    ss = jnp.sum(x * x, axis=0, keepdims=True)
    mean = s * inv_n
    var = ss * inv_n - mean * mean
    inv = lax.rsqrt(var + EPS)
    return (x - mean) * (inv * gamma) + beta


def bottleneck_kernel(x_ref, nbr_ref,
                      w1_ref, g1_ref, b1_ref,
                      w2_ref, g2_ref, b2_ref,
                      w3_ref, g3_ref, b3_ref,
                      o_ref):
    N = x_ref.shape[0]
    P = w1_ref.shape[1]        # planes
    K = nbr_ref.shape[1]       # 3**dimension kernel offsets

    x = x_ref[...]             # [N, Cin] f32 (kept in f32 for the residual add)

    # ---- conv1 (kernel_size=1): per-point matmul, bf16 operands, f32 accumulation ----
    out = jnp.dot(x.astype(jnp.bfloat16), w1_ref[...],
                  preferred_element_type=jnp.float32)                      # [N, P]
    out = jnp.maximum(_bn_train(out, g1_ref[...], b1_ref[...]), 0.0)

    # ---- conv2 (kernel_size=3): sparse conv with W2 folded BEFORE the gather ----
    # y[:, k*P:(k+1)*P] = out @ W2_k for every kernel offset k, computed as ONE MXU matmul.
    # Then each offset's gather (one-hot built on-chip from the [N, K] neighbor-index list,
    # -1 = neighbor absent -> all-zero row) selects rows of the corresponding y-block and
    # accumulates in f32.  No VMEM gather slab, no readback, no trailing contraction.
    y = jnp.dot(out.astype(jnp.bfloat16), w2_ref[...],
                preferred_element_type=jnp.float32)                        # [N, K*P]
    y_bf = y.astype(jnp.bfloat16)
    nbr = nbr_ref[...]                                                     # [N, K] int32
    col_ids = lax.broadcasted_iota(jnp.int32, (N, N), 1)                   # hoisted out of loop
    acc = jnp.zeros((N, P), jnp.float32)
    for k in range(K):  # static slices only (k*P is compile-time); live set per iter is tiny
        onehot = (nbr[:, k:k + 1] == col_ids).astype(jnp.bfloat16)         # [N, N] bf16 one-hot
        acc = acc + jnp.dot(onehot, y_bf[:, k * P:(k + 1) * P],
                            preferred_element_type=jnp.float32)            # [N, P]
    out = jnp.maximum(_bn_train(acc, g2_ref[...], b2_ref[...]), 0.0)

    # ---- conv3 (kernel_size=1) ----
    out = jnp.dot(out.astype(jnp.bfloat16), w3_ref[...],
                  preferred_element_type=jnp.float32)                      # [N, 4*P]
    out = _bn_train(out, g3_ref[...], b3_ref[...])

    # downsample is None -> residual = x; out += residual; relu
    o_ref[...] = jnp.maximum(out + x, 0.0).astype(o_ref.dtype)


def build_neighbor_indices(coords, dimension, dilation=1):
    """[N, K] neighbor-row indices for a kernel_size=3 Minkowski conv; -1 = absent.

    Analogue of MinkowskiEngine's kernel-map construction (coordinate manager), done once
    as preprocessing outside the compute kernel.  Assumes unique coordinates.
    """
    r = jnp.array([-1, 0, 1], jnp.int32)
    grids = jnp.meshgrid(*([r] * dimension), indexing="ij")
    spatial = jnp.stack([g.reshape(-1) for g in grids], axis=-1) * dilation      # [K, D]
    K = spatial.shape[0]
    offs = jnp.concatenate([jnp.zeros((K, 1), jnp.int32), spatial], axis=-1)     # [K, 1+D]
    tgt = coords[None, :, None, :] + offs[:, None, None, :]                      # [K, N, 1, 1+D]
    eq = jnp.all(tgt == coords[None, None, :, :], axis=-1)                       # [K, N, N]
    has = jnp.any(eq, axis=-1)                                                   # [K, N]
    idx = jnp.argmax(eq, axis=-1).astype(jnp.int32)                              # [K, N]
    nbr = jnp.where(has, idx, jnp.int32(-1))
    return nbr.T.astype(jnp.int32)                                               # [N, K]


def _prep_params(params):
    """Stack conv2 weights to [P, K*P] (W2 folded before the gather); matmul weights -> bf16."""
    K, P, _ = params["w2"].shape
    w2_full = jnp.transpose(params["w2"], (1, 0, 2)).reshape(P, K * P)  # col-block k = W2_k
    return dict(
        w1=params["w1"].astype(jnp.bfloat16),
        w2=w2_full.astype(jnp.bfloat16),
        w3=params["w3"].astype(jnp.bfloat16),
        g1=params["g1"].astype(jnp.float32), b1=params["b1"].astype(jnp.float32),
        g2=params["g2"].astype(jnp.float32), b2=params["b2"].astype(jnp.float32),
        g3=params["g3"].astype(jnp.float32), b3=params["b3"].astype(jnp.float32),
    )


def bottleneck_forward(feats, coords, params, dimension, dilation=1):
    N, _ = feats.shape
    nbr = build_neighbor_indices(coords, dimension, dilation)      # [N, K] int32
    p = _prep_params(params)
    cout = p["w3"].shape[-1]

    args = (feats, nbr,
            p["w1"], p["g1"], p["b1"],
            p["w2"], p["g2"], p["b2"],
            p["w3"], p["g3"], p["b3"])

    def full_spec(a):
        zeros = (0,) * a.ndim
        return pl.BlockSpec(a.shape, lambda i, _z=zeros: _z)

    return pl.pallas_call(
        bottleneck_kernel,
        out_shape=jax.ShapeDtypeStruct((N, cout), feats.dtype),
        grid=(1,),
        in_specs=[full_spec(a) for a in args],
        out_specs=pl.BlockSpec((N, cout), lambda i: (0, 0)),
        compiler_params=pltpu.CompilerParams(
            dimension_semantics=("arbitrary",),
            vmem_limit_bytes=32 * 1024 * 1024),
    )(*args)


def reference_forward(feats, coords, params, dimension, dilation=1):
    """Pure-JAX reference with identical math (same bf16 cast points, W2 folded before gather)."""
    nbr = build_neighbor_indices(coords, dimension, dilation)      # [N, K]
    p = _prep_params(params)
    N, K = nbr.shape
    P = p["w1"].shape[1]

    x = feats.astype(jnp.float32)
    out = jnp.dot(x.astype(jnp.bfloat16), p["w1"], preferred_element_type=jnp.float32)
    out = jnp.maximum(_bn_train(out, p["g1"], p["b1"]), 0.0)

    y = jnp.dot(out.astype(jnp.bfloat16), p["w2"], preferred_element_type=jnp.float32)  # [N, K*P]
    y_bf = y.astype(jnp.bfloat16).reshape(N, K, P)
    y_pad = jnp.concatenate([y_bf, jnp.zeros((1, K, P), jnp.bfloat16)], axis=0)  # row N = zeros
    idx = jnp.where(nbr < 0, N, nbr)                                             # [N, K]
    gathered = y_pad[idx, jnp.arange(K)[None, :], :]                             # [N, K, P]
    acc = jnp.sum(gathered.astype(jnp.float32), axis=1)                          # [N, P]
    out = jnp.maximum(_bn_train(acc, p["g2"], p["b2"]), 0.0)

    out = jnp.dot(out.astype(jnp.bfloat16), p["w3"], preferred_element_type=jnp.float32)
    out = _bn_train(out, p["g3"], p["b3"])
    return jnp.maximum(out + x, 0.0)


if __name__ == "__main__":
    # Bottleneck(inplanes, planes, dimension=3): planes=4, expansion=4 -> inplanes=16 so the
    # (downsample=None) residual add is valid.
    inplanes, planes, dimension = 16, 4, 3
    expansion = 4
    K = 3 ** dimension  # 27 kernel offsets

    key = jax.random.PRNGKey(0)
    kf, kc, k1, k2, k3 = jax.random.split(key, 5)

    # Sparse coordinates: 2 batches x 32 unique points in a 6^3 grid -> N = 64 points.
    pts_per_batch, grid_sz = 32, 6
    coord_chunks = []
    for b, kk in enumerate(jax.random.split(kc, 2)):
        lin = jax.random.permutation(kk, grid_sz ** dimension)[:pts_per_batch]
        xyz = jnp.stack(jnp.unravel_index(lin, (grid_sz,) * dimension), axis=-1).astype(jnp.int32)
        bcol = jnp.full((pts_per_batch, 1), b, jnp.int32)
        coord_chunks.append(jnp.concatenate([bcol, xyz], axis=-1))
    coords = jnp.concatenate(coord_chunks, axis=0)            # [64, 4]
    N = coords.shape[0]

    feats = jax.random.normal(kf, (N, inplanes), jnp.float32)  # [64, 16]

    # Deterministic parameters (shapes from __init__; BN weight=1, bias=0 as in PyTorch init).
    params = {
        "w1": jax.random.normal(k1, (inplanes, planes), jnp.float32) * 0.2,
        "g1": jnp.ones((1, planes), jnp.float32),
        "b1": jnp.zeros((1, planes), jnp.float32),
        "w2": jax.random.normal(k2, (K, planes, planes), jnp.float32) * 0.2,
        "g2": jnp.ones((1, planes), jnp.float32),
        "b2": jnp.zeros((1, planes), jnp.float32),
        "w3": jax.random.normal(k3, (planes, planes * expansion), jnp.float32) * 0.2,
        "g3": jnp.ones((1, planes * expansion), jnp.float32),
        "b3": jnp.zeros((1, planes * expansion), jnp.float32),
    }

    out = bottleneck_forward(feats, coords, params, dimension)
    out = jax.block_until_ready(out)

    ref = reference_forward(feats, coords, params, dimension)
    assert out.shape == (N, planes * expansion)
    assert jnp.allclose(out, ref, atol=5e-3, rtol=5e-3), "mismatch vs pure-JAX reference"

    print("KERNEL_OK")
</pallas_src>

<mosaic_0001>
module attributes {stable_mosaic.version = 11 : i64} {
  func.func @bottleneck_kernel(%arg0: i32, %arg1: memref<64x16xf32, #tpu.memory_space<vmem>>, %arg2: memref<64x27xi32, #tpu.memory_space<vmem>>, %arg3: memref<16x4xbf16, #tpu.memory_space<vmem>>, %arg4: memref<1x4xf32, #tpu.memory_space<vmem>>, %arg5: memref<1x4xf32, #tpu.memory_space<vmem>>, %arg6: memref<4x108xbf16, #tpu.memory_space<vmem>>, %arg7: memref<1x4xf32, #tpu.memory_space<vmem>>, %arg8: memref<1x4xf32, #tpu.memory_space<vmem>>, %arg9: memref<4x16xbf16, #tpu.memory_space<vmem>>, %arg10: memref<1x16xf32, #tpu.memory_space<vmem>>, %arg11: memref<1x16xf32, #tpu.memory_space<vmem>>, %arg12: memref<64x16xf32, #tpu.memory_space<vmem>>) attributes {dimension_semantics = [#tpu.dimension_semantics<arbitrary>], iteration_bounds = array<i64: 1>, scalar_prefetch = 0 : i64, scratch_operands = 0 : i64, tpu.core_type = #tpu.core_type<tc>, window_params = [{pipeline_mode = #tpu.pipeline_mode<synchronous>, transform_indices = @transform_0, window_bounds = array<i64: 64, 16>}, {pipeline_mode = #tpu.pipeline_mode<synchronous>, transform_indices = @transform_1, window_bounds = array<i64: 64, 27>}, {pipeline_mode = #tpu.pipeline_mode<synchronous>, transform_indices = @transform_2, window_bounds = array<i64: 16, 4>}, {pipeline_mode = #tpu.pipeline_mode<synchronous>, transform_indices = @transform_3, window_bounds = array<i64: 1, 4>}, {pipeline_mode = #tpu.pipeline_mode<synchronous>, transform_indices = @transform_4, window_bounds = array<i64: 1, 4>}, {pipeline_mode = #tpu.pipeline_mode<synchronous>, transform_indices = @transform_5, window_bounds = array<i64: 4, 108>}, {pipeline_mode = #tpu.pipeline_mode<synchronous>, transform_indices = @transform_6, window_bounds = array<i64: 1, 4>}, {pipeline_mode = #tpu.pipeline_mode<synchronous>, transform_indices = @transform_7, window_bounds = array<i64: 1, 4>}, {pipeline_mode = #tpu.pipeline_mode<synchronous>, transform_indices = @transform_8, window_bounds = array<i64: 4, 16>}, {pipeline_mode = #tpu.pipeline_mode<synchronous>, transform_indices = @transform_9, window_bounds = array<i64: 1, 16>}, {pipeline_mode = #tpu.pipeline_mode<synchronous>, transform_indices = @transform_10, window_bounds = array<i64: 1, 16>}, {pipeline_mode = #tpu.pipeline_mode<synchronous>, transform_indices = @transform_11, window_bounds = array<i64: 64, 16>}]} {
    %c0 = arith.constant 0 : index
    %c0_0 = arith.constant 0 : index
    %0 = vector.load %arg1[%c0, %c0_0] : memref<64x16xf32, #tpu.memory_space<vmem>>, vector<64x16xf32>
    %1 = arith.truncf %0 : vector<64x16xf32> to vector<64x16xbf16>
    %c0_1 = arith.constant 0 : index
    %c0_2 = arith.constant 0 : index
    %2 = vector.load %arg3[%c0_1, %c0_2] : memref<16x4xbf16, #tpu.memory_space<vmem>>, vector<16x4xbf16>
    %cst = arith.constant dense<0.000000e+00> : vector<64x4xf32>
    %3 = tpu.matmul %1, %2, %cst {dimension_numbers = #tpu.dot_dimension_numbers<[1], [0], [0], [1], [0, 0, 1, 1], [], []>} : vector<64x16xbf16>, vector<16x4xbf16>, vector<64x4xf32> -> vector<64x4xf32>
    %c0_3 = arith.constant 0 : index
    %c0_4 = arith.constant 0 : index
    %4 = vector.load %arg4[%c0_3, %c0_4] : memref<1x4xf32, #tpu.memory_space<vmem>>, vector<1x4xf32>
    %c0_5 = arith.constant 0 : index
    %c0_6 = arith.constant 0 : index
    %5 = vector.load %arg5[%c0_5, %c0_6] : memref<1x4xf32, #tpu.memory_space<vmem>>, vector<1x4xf32>
    %cst_7 = arith.constant dense<0.000000e+00> : vector<4xf32>
    %6 = vector.multi_reduction <add>, %3, %cst_7 [0] : vector<64x4xf32> to vector<4xf32>
    %7 = vector.shape_cast %6 : vector<4xf32> to vector<1x4xf32>
    %8 = arith.mulf %3, %3 : vector<64x4xf32>
    %cst_8 = arith.constant dense<0.000000e+00> : vector<4xf32>
    %9 = vector.multi_reduction <add>, %8, %cst_8 [0] : vector<64x4xf32> to vector<4xf32>
    %10 = vector.shape_cast %9 : vector<4xf32> to vector<1x4xf32>
    %cst_9 = arith.constant 1.562500e-02 : f32
    %11 = vector.broadcast %cst_9 : f32 to vector<1x4xf32>
    %12 = arith.mulf %7, %11 : vector<1x4xf32>
    %cst_10 = arith.constant 1.562500e-02 : f32
    %13 = vector.broadcast %cst_10 : f32 to vector<1x4xf32>
    %14 = arith.mulf %10, %13 : vector<1x4xf32>
    %15 = arith.mulf %12, %12 : vector<1x4xf32>
    %16 = arith.subf %14, %15 : vector<1x4xf32>
    %cst_11 = arith.constant 9.99999974E-6 : f32
    %17 = vector.broadcast %cst_11 : f32 to vector<1x4xf32>
    %18 = arith.addf %16, %17 : vector<1x4xf32>
    %19 = math.rsqrt %18 : vector<1x4xf32>
    %20 = vector.broadcast %12 : vector<1x4xf32> to vector<64x4xf32>
    %21 = arith.subf %3, %20 : vector<64x4xf32>
    %22 = arith.mulf %19, %4 : vector<1x4xf32>
    %23 = vector.broadcast %22 : vector<1x4xf32> to vector<64x4xf32>
    %24 = arith.mulf %21, %23 : vector<64x4xf32>
    %25 = vector.broadcast %5 : vector<1x4xf32> to vector<64x4xf32>
    %26 = arith.addf %24, %25 : vector<64x4xf32>
    %cst_12 = arith.constant 0.000000e+00 : f32
    %27 = vector.broadcast %cst_12 : f32 to vector<64x4xf32>
    %28 = arith.maximumf %26, %27 : vector<64x4xf32>
    %29 = arith.truncf %28 : vector<64x4xf32> to vector<64x4xbf16>
    %c0_13 = arith.constant 0 : index
    %c0_14 = arith.constant 0 : index
    %30 = vector.load %arg6[%c0_13, %c0_14] : memref<4x108xbf16, #tpu.memory_space<vmem>>, vector<4x108xbf16>
    %cst_15 = arith.constant dense<0.000000e+00> : vector<64x108xf32>
    %31 = tpu.matmul %29, %30, %cst_15 {dimension_numbers = #tpu.dot_dimension_numbers<[1], [0], [0], [1], [0, 0, 1, 1], [], []>} : vector<64x4xbf16>, vector<4x108xbf16>, vector<64x108xf32> -> vector<64x108xf32>
    %32 = arith.truncf %31 : vector<64x108xf32> to vector<64x108xbf16>
    %c0_16 = arith.constant 0 : index
    %c0_17 = arith.constant 0 : index
    %33 = vector.load %arg2[%c0_16, %c0_17] : memref<64x27xi32, #tpu.memory_space<vmem>>, vector<64x27xi32>
    %34 = tpu.iota {dimensions = array<i32: 1>} : vector<64x64xi32>
    %cst_18 = arith.constant 0.000000e+00 : f32
    %35 = vector.broadcast %cst_18 : f32 to vector<64x4xf32>
    %36 = vector.extract_strided_slice %33 {offsets = [0, 0], sizes = [64, 1], strides = [1, 1]} : vector<64x27xi32> to vector<64x1xi32>
    %37 = vector.broadcast %36 : vector<64x1xi32> to vector<64x64xi32>
    %38 = arith.cmpi eq, %37, %34 : vector<64x64xi32>
    %39 = arith.extui %38 : vector<64x64xi1> to vector<64x64xi32>
    %40 = arith.sitofp %39 : vector<64x64xi32> to vector<64x64xf32>
    %41 = arith.truncf %40 : vector<64x64xf32> to vector<64x64xbf16>
    %42 = vector.extract_strided_slice %32 {offsets = [0, 0], sizes = [64, 4], strides = [1, 1]} : vector<64x108xbf16> to vector<64x4xbf16>
    %cst_19 = arith.constant dense<0.000000e+00> : vector<64x4xf32>
    %43 = tpu.matmul %41, %42, %cst_19 {dimension_numbers = #tpu.dot_dimension_numbers<[1], [0], [0], [1], [0, 0, 1, 1], [], []>} : vector<64x64xbf16>, vector<64x4xbf16>, vector<64x4xf32> -> vector<64x4xf32>
    %44 = arith.addf %35, %43 : vector<64x4xf32>
    %45 = vector.extract_strided_slice %33 {offsets = [0, 1], sizes = [64, 1], strides = [1, 1]} : vector<64x27xi32> to vector<64x1xi32>
    %46 = vector.broadcast %45 : vector<64x1xi32> to vector<64x64xi32>
    %47 = arith.cmpi eq, %46, %34 : vector<64x64xi32>
    %48 = arith.extui %47 : vector<64x64xi1> to vector<64x64xi32>
    %49 = arith.sitofp %48 : vector<64x64xi32> to vector<64x64xf32>
    %50 = arith.truncf %49 : vector<64x64xf32> to vector<64x64xbf16>
    %51 = vector.extract_strided_slice %32 {offsets = [0, 4], sizes = [64, 4], strides = [1, 1]} : vector<64x108xbf16> to vector<64x4xbf16>
    %cst_20 = arith.constant dense<0.000000e+00> : vector<64x4xf32>
    %52 = tpu.matmul %50, %51, %cst_20 {dimension_numbers = #tpu.dot_dimension_numbers<[1], [0], [0], [1], [0, 0, 1, 1], [], []>} : vector<64x64xbf16>, vector<64x4xbf16>, vector<64x4xf32> -> vector<64x4xf32>
    %53 = arith.addf %44, %52 : vector<64x4xf32>
    %54 = vector.extract_strided_slice %33 {offsets = [0, 2], sizes = [64, 1], strides = [1, 1]} : vector<64x27xi32> to vector<64x1xi32>
    %55 = vector.broadcast %54 : vector<64x1xi32> to vector<64x64xi32>
    %56 = arith.cmpi eq, %55, %34 : vector<64x64xi32>
    %57 = arith.extui %56 : vector<64x64xi1> to vector<64x64xi32>
    %58 = arith.sitofp %57 : vector<64x64xi32> to vector<64x64xf32>
    %59 = arith.truncf %58 : vector<64x64xf32> to vector<64x64xbf16>
    %60 = vector.extract_strided_slice %32 {offsets = [0, 8], sizes = [64, 4], strides = [1, 1]} : vector<64x108xbf16> to vector<64x4xbf16>
    %cst_21 = arith.constant dense<0.000000e+00> : vector<64x4xf32>
    %61 = tpu.matmul %59, %60, %cst_21 {dimension_numbers = #tpu.dot_dimension_numbers<[1], [0], [0], [1], [0, 0, 1, 1], [], []>} : vector<64x64xbf16>, vector<64x4xbf16>, vector<64x4xf32> -> vector<64x4xf32>
    %62 = arith.addf %53, %61 : vector<64x4xf32>
    %63 = vector.extract_strided_slice %33 {offsets = [0, 3], sizes = [64, 1], strides = [1, 1]} : vector<64x27xi32> to vector<64x1xi32>
    %64 = vector.broadcast %63 : vector<64x1xi32> to vector<64x64xi32>
    %65 = arith.cmpi eq, %64, %34 : vector<64x64xi32>
    %66 = arith.extui %65 : vector<64x64xi1> to vector<64x64xi32>
    %67 = arith.sitofp %66 : vector<64x64xi32> to vector<64x64xf32>
    %68 = arith.truncf %67 : vector<64x64xf32> to vector<64x64xbf16>
    %69 = vector.extract_strided_slice %32 {offsets = [0, 12], sizes = [64, 4], strides = [1, 1]} : vector<64x108xbf16> to vector<64x4xbf16>
    %cst_22 = arith.constant dense<0.000000e+00> : vector<64x4xf32>
    %70 = tpu.matmul %68, %69, %cst_22 {dimension_numbers = #tpu.dot_dimension_numbers<[1], [0], [0], [1], [0, 0, 1, 1], [], []>} : vector<64x64xbf16>, vector<64x4xbf16>, vector<64x4xf32> -> vector<64x4xf32>
    %71 = arith.addf %62, %70 : vector<64x4xf32>
    %72 = vector.extract_strided_slice %33 {offsets = [0, 4], sizes = [64, 1], strides = [1, 1]} : vector<64x27xi32> to vector<64x1xi32>
    %73 = vector.broadcast %72 : vector<64x1xi32> to vector<64x64xi32>
    %74 = arith.cmpi eq, %73, %34 : vector<64x64xi32>
    %75 = arith.extui %74 : vector<64x64xi1> to vector<64x64xi32>
    %76 = arith.sitofp %75 : vector<64x64xi32> to vector<64x64xf32>
    %77 = arith.truncf %76 : vector<64x64xf32> to vector<64x64xbf16>
    %78 = vector.extract_strided_slice %32 {offsets = [0, 16], sizes = [64, 4], strides = [1, 1]} : vector<64x108xbf16> to vector<64x4xbf16>
    %cst_23 = arith.constant dense<0.000000e+00> : vector<64x4xf32>
    %79 = tpu.matmul %77, %78, %cst_23 {dimension_numbers = #tpu.dot_dimension_numbers<[1], [0], [0], [1], [0, 0, 1, 1], [], []>} : vector<64x64xbf16>, vector<64x4xbf16>, vector<64x4xf32> -> vector<64x4xf32>
    %80 = arith.addf %71, %79 : vector<64x4xf32>
    %81 = vector.extract_strided_slice %33 {offsets = [0, 5], sizes = [64, 1], strides = [1, 1]} : vector<64x27xi32> to vector<64x1xi32>
    %82 = vector.broadcast %81 : vector<64x1xi32> to vector<64x64xi32>
    %83 = arith.cmpi eq, %82, %34 : vector<64x64xi32>
    %84 = arith.extui %83 : vector<64x64xi1> to vector<64x64xi32>
    %85 = arith.sitofp %84 : vector<64x64xi32> to vector<64x64xf32>
    %86 = arith.truncf %85 : vector<64x64xf32> to vector<64x64xbf16>
    %87 = vector.extract_strided_slice %32 {offsets = [0, 20], sizes = [64, 4], strides = [1, 1]} : vector<64x108xbf16> to vector<64x4xbf16>
    %cst_24 = arith.constant dense<0.000000e+00> : vector<64x4xf32>
    %88 = tpu.matmul %86, %87, %cst_24 {dimension_numbers = #tpu.dot_dimension_numbers<[1], [0], [0], [1], [0, 0, 1, 1], [], []>} : vector<64x64xbf16>, vector<64x4xbf16>, vector<64x4xf32> -> vector<64x4xf32>
    %89 = arith.addf %80, %88 : vector<64x4xf32>
    %90 = vector.extract_strided_slice %33 {offsets = [0, 6], sizes = [64, 1], strides = [1, 1]} : vector<64x27xi32> to vector<64x1xi32>
    %91 = vector.broadcast %90 : vector<64x1xi32> to vector<64x64xi32>
    %92 = arith.cmpi eq, %91, %34 : vector<64x64xi32>
    %93 = arith.extui %92 : vector<64x64xi1> to vector<64x64xi32>
    %94 = arith.sitofp %93 : vector<64x64xi32> to vector<64x64xf32>
    %95 = arith.truncf %94 : vector<64x64xf32> to vector<64x64xbf16>
    %96 = vector.extract_strided_slice %32 {offsets = [0, 24], sizes = [64, 4], strides = [1, 1]} : vector<64x108xbf16> to vector<64x4xbf16>
    %cst_25 = arith.constant dense<0.000000e+00> : vector<64x4xf32>
    %97 = tpu.matmul %95, %96, %cst_25 {dimension_numbers = #tpu.dot_dimension_numbers<[1], [0], [0], [1], [0, 0, 1, 1], [], []>} : vector<64x64xbf16>, vector<64x4xbf16>, vector<64x4xf32> -> vector<64x4xf32>
    %98 = arith.addf %89, %97 : vector<64x4xf32>
    %99 = vector.extract_strided_slice %33 {offsets = [0, 7], sizes = [64, 1], strides = [1, 1]} : vector<64x27xi32> to vector<64x1xi32>
    %100 = vector.broadcast %99 : vector<64x1xi32> to vector<64x64xi32>
    %101 = arith.cmpi eq, %100, %34 : vector<64x64xi32>
    %102 = arith.extui %101 : vector<64x64xi1> to vector<64x64xi32>
    %103 = arith.sitofp %102 : vector<64x64xi32> to vector<64x64xf32>
    %104 = arith.truncf %103 : vector<64x64xf32> to vector<64x64xbf16>
    %105 = vector.extract_strided_slice %32 {offsets = [0, 28], sizes = [64, 4], strides = [1, 1]} : vector<64x108xbf16> to vector<64x4xbf16>
    %cst_26 = arith.constant dense<0.000000e+00> : vector<64x4xf32>
    %106 = tpu.matmul %104, %105, %cst_26 {dimension_numbers = #tpu.dot_dimension_numbers<[1], [0], [0], [1], [0, 0, 1, 1], [], []>} : vector<64x64xbf16>, vector<64x4xbf16>, vector<64x4xf32> -> vector<64x4xf32>
    %107 = arith.addf %98, %106 : vector<64x4xf32>
    %108 = vector.extract_strided_slice %33 {offsets = [0, 8], sizes = [64, 1], strides = [1, 1]} : vector<64x27xi32> to vector<64x1xi32>
    %109 = vector.broadcast %108 : vector<64x1xi32> to vector<64x64xi32>
    %110 = arith.cmpi eq, %109, %34 : vector<64x64xi32>
    %111 = arith.extui %110 : vector<64x64xi1> to vector<64x64xi32>
    %112 = arith.sitofp %111 : vector<64x64xi32> to vector<64x64xf32>
    %113 = arith.truncf %112 : vector<64x64xf32> to vector<64x64xbf16>
    %114 = vector.extract_strided_slice %32 {offsets = [0, 32], sizes = [64, 4], strides = [1, 1]} : vector<64x108xbf16> to vector<64x4xbf16>
    %cst_27 = arith.constant dense<0.000000e+00> : vector<64x4xf32>
    %115 = tpu.matmul %113, %114, %cst_27 {dimension_numbers = #tpu.dot_dimension_numbers<[1], [0], [0], [1], [0, 0, 1, 1], [], []>} : vector<64x64xbf16>, vector<64x4xbf16>, vector<64x4xf32> -> vector<64x4xf32>
    %116 = arith.addf %107, %115 : vector<64x4xf32>
    %117 = vector.extract_strided_slice %33 {offsets = [0, 9], sizes = [64, 1], strides = [1, 1]} : vector<64x27xi32> to vector<64x1xi32>
    %118 = vector.broadcast %117 : vector<64x1xi32> to vector<64x64xi32>
    %119 = arith.cmpi eq, %118, %34 : vector<64x64xi32>
    %120 = arith.extui %119 : vector<64x64xi1> to vector<64x64xi32>
    %121 = arith.sitofp %120 : vector<64x64xi32> to vector<64x64xf32>
    %122 = arith.truncf %121 : vector<64x64xf32> to vector<64x64xbf16>
    %123 = vector.extract_strided_slice %32 {offsets = [0, 36], sizes = [64, 4], strides = [1, 1]} : vector<64x108xbf16> to vector<64x4xbf16>
    %cst_28 = arith.constant dense<0.000000e+00> : vector<64x4xf32>
    %124 = tpu.matmul %122, %123, %cst_28 {dimension_numbers = #tpu.dot_dimension_numbers<[1], [0], [0], [1], [0, 0, 1, 1], [], []>} : vector<64x64xbf16>, vector<64x4xbf16>, vector<64x4xf32> -> vector<64x4xf32>
    %125 = arith.addf %116, %124 : vector<64x4xf32>
    %126 = vector.extract_strided_slice %33 {offsets = [0, 10], sizes = [64, 1], strides = [1, 1]} : vector<64x27xi32> to vector<64x1xi32>
    %127 = vector.broadcast %126 : vector<64x1xi32> to vector<64x64xi32>
    %128 = arith.cmpi eq, %127, %34 : vector<64x64xi32>
    %129 = arith.extui %128 : vector<64x64xi1> to vector<64x64xi32>
    %130 = arith.sitofp %129 : vector<64x64xi32> to vector<64x64xf32>
    %131 = arith.truncf %130 : vector<64x64xf32> to vector<64x64xbf16>
    %132 = vector.extract_strided_slice %32 {offsets = [0, 40], sizes = [64, 4], strides = [1, 1]} : vector<64x108xbf16> to vector<64x4xbf16>
    %cst_29 = arith.constant dense<0.000000e+00> : vector<64x4xf32>
    %133 = tpu.matmul %131, %132, %cst_29 {dimension_numbers = #tpu.dot_dimension_numbers<[1], [0], [0], [1], [0, 0, 1, 1], [], []>} : vector<64x64xbf16>, vector<64x4xbf16>, vector<64x4xf32> -> vector<64x4xf32>
    %134 = arith.addf %125, %133 : vector<64x4xf32>
    %135 = vector.extract_strided_slice %33 {offsets = [0, 11], sizes = [64, 1], strides = [1, 1]} : vector<64x27xi32> to vector<64x1xi32>
    %136 = vector.broadcast %135 : vector<64x1xi32> to vector<64x64xi32>
    %137 = arith.cmpi eq, %136, %34 : vector<64x64xi32>
    %138 = arith.extui %137 : vector<64x64xi1> to vector<64x64xi32>
    %139 = arith.sitofp %138 : vector<64x64xi32> to vector<64x64xf32>
    %140 = arith.truncf %139 : vector<64x64xf32> to vector<64x64xbf16>
    %141 = vector.extract_strided_slice %32 {offsets = [0, 44], sizes = [64, 4], strides = [1, 1]} : vector<64x108xbf16> to vector<64x4xbf16>
    %cst_30 = arith.constant dense<0.000000e+00> : vector<64x4xf32>
    %142 = tpu.matmul %140, %141, %cst_30 {dimension_numbers = #tpu.dot_dimension_numbers<[1], [0], [0], [1], [0, 0, 1, 1], [], []>} : vector<64x64xbf16>, vector<64x4xbf16>, vector<64x4xf32> -> vector<64x4xf32>
    %143 = arith.addf %134, %142 : vector<64x4xf32>
    %144 = vector.extract_strided_slice %33 {offsets = [0, 12], sizes = [64, 1], strides = [1, 1]} : vector<64x27xi32> to vector<64x1xi32>
    %145 = vector.broadcast %144 : vector<64x1xi32> to vector<64x64xi32>
    %146 = arith.cmpi eq, %145, %34 : vector<64x64xi32>
    %147 = arith.extui %146 : vector<64x64xi1> to vector<64x64xi32>
    %148 = arith.sitofp %147 : vector<64x64xi32> to vector<64x64xf32>
    %149 = arith.truncf %148 : vector<64x64xf32> to vector<64x64xbf16>
    %150 = vector.extract_strided_slice %32 {offsets = [0, 48], sizes = [64, 4], strides = [1, 1]} : vector<64x108xbf16> to vector<64x4xbf16>
    %cst_31 = arith.constant dense<0.000000e+00> : vector<64x4xf32>
    %151 = tpu.matmul %149, %150, %cst_31 {dimension_numbers = #tpu.dot_dimension_numbers<[1], [0], [0], [1], [0, 0, 1, 1], [], []>} : vector<64x64xbf16>, vector<64x4xbf16>, vector<64x4xf32> -> vector<64x4xf32>
    %152 = arith.addf %143, %151 : vector<64x4xf32>
    %153 = vector.extract_strided_slice %33 {offsets = [0, 13], sizes = [64, 1], strides = [1, 1]} : vector<64x27xi32> to vector<64x1xi32>
    %154 = vector.broadcast %153 : vector<64x1xi32> to vector<64x64xi32>
    %155 = arith.cmpi eq, %154, %34 : vector<64x64xi32>
    %156 = arith.extui %155 : vector<64x64xi1> to vector<64x64xi32>
    %157 = arith.sitofp %156 : vector<64x64xi32> to vector<64x64xf32>
    %158 = arith.truncf %157 : vector<64x64xf32> to vector<64x64xbf16>
    %159 = vector.extract_strided_slice %32 {offsets = [0, 52], sizes = [64, 4], strides = [1, 1]} : vector<64x108xbf16> to vector<64x4xbf16>
    %cst_32 = arith.constant dense<0.000000e+00> : vector<64x4xf32>
    %160 = tpu.matmul %158, %159, %cst_32 {dimension_numbers = #tpu.dot_dimension_numbers<[1], [0], [0], [1], [0, 0, 1, 1], [], []>} : vector<64x64xbf16>, vector<64x4xbf16>, vector<64x4xf32> -> vector<64x4xf32>
    %161 = arith.addf %152, %160 : vector<64x4xf32>
    %162 = vector.extract_strided_slice %33 {offsets = [0, 14], sizes = [64, 1], strides = [1, 1]} : vector<64x27xi32> to vector<64x1xi32>
    %163 = vector.broadcast %162 : vector<64x1xi32> to vector<64x64xi32>
    %164 = arith.cmpi eq, %163, %34 : vector<64x64xi32>
    %165 = arith.extui %164 : vector<64x64xi1> to vector<64x64xi32>
    %166 = arith.sitofp %165 : vector<64x64xi32> to vector<64x64xf32>
    %167 = arith.truncf %166 : vector<64x64xf32> to vector<64x64xbf16>
    %168 = vector.extract_strided_slice %32 {offsets = [0, 56], sizes = [64, 4], strides = [1, 1]} : vector<64x108xbf16> to vector<64x4xbf16>
    %cst_33 = arith.constant dense<0.000000e+00> : vector<64x4xf32>
    %169 = tpu.matmul %167, %168, %cst_33 {dimension_numbers = #tpu.dot_dimension_numbers<[1], [0], [0], [1], [0, 0, 1, 1], [], []>} : vector<64x64xbf16>, vector<64x4xbf16>, vector<64x4xf32> -> vector<64x4xf32>
    %170 = arith.addf %161, %169 : vector<64x4xf32>
    %171 = vector.extract_strided_slice %33 {offsets = [0, 15], sizes = [64, 1], strides = [1, 1]} : vector<64x27xi32> to vector<64x1xi32>
    %172 = vector.broadcast %171 : vector<64x1xi32> to vector<64x64xi32>
    %173 = arith.cmpi eq, %172, %34 : vector<64x64xi32>
    %174 = arith.extui %173 : vector<64x64xi1> to vector<64x64xi32>
    %175 = arith.sitofp %174 : vector<64x64xi32> to vector<64x64xf32>
    %176 = arith.truncf %175 : vector<64x64xf32> to vector<64x64xbf16>
    %177 = vector.extract_strided_slice %32 {offsets = [0, 60], sizes = [64, 4], strides = [1, 1]} : vector<64x108xbf16> to vector<64x4xbf16>
    %cst_34 = arith.constant dense<0.000000e+00> : vector<64x4xf32>
    %178 = tpu.matmul %176, %177, %cst_34 {dimension_numbers = #tpu.dot_dimension_numbers<[1], [0], [0], [1], [0, 0, 1, 1], [], []>} : vector<64x64xbf16>, vector<64x4xbf16>, vector<64x4xf32> -> vector<64x4xf32>
    %179 = arith.addf %170, %178 : vector<64x4xf32>
    %180 = vector.extract_strided_slice %33 {offsets = [0, 16], sizes = [64, 1], strides = [1, 1]} : vector<64x27xi32> to vector<64x1xi32>
    %181 = vector.broadcast %180 : vector<64x1xi32> to vector<64x64xi32>
    %182 = arith.cmpi eq, %181, %34 : vector<64x64xi32>
    %183 = arith.extui %182 : vector<64x64xi1> to vector<64x64xi32>
    %184 = arith.sitofp %183 : vector<64x64xi32> to vector<64x64xf32>
    %185 = arith.truncf %184 : vector<64x64xf32> to vector<64x64xbf16>
    %186 = vector.extract_strided_slice %32 {offsets = [0, 64], sizes = [64, 4], strides = [1, 1]} : vector<64x108xbf16> to vector<64x4xbf16>
    %cst_35 = arith.constant dense<0.000000e+00> : vector<64x4xf32>
    %187 = tpu.matmul %185, %186, %cst_35 {dimension_numbers = #tpu.dot_dimension_numbers<[1], [0], [0], [1], [0, 0, 1, 1], [], []>} : vector<64x64xbf16>, vector<64x4xbf16>, vector<64x4xf32> -> vector<64x4xf32>
    %188 = arith.addf %179, %187 : vector<64x4xf32>
    %189 = vector.extract_strided_slice %33 {offsets = [0, 17], sizes = [64, 1], strides = [1, 1]} : vector<64x27xi32> to vector<64x1xi32>
    %190 = vector.broadcast %189 : vector<64x1xi32> to vector<64x64xi32>
    %191 = arith.cmpi eq, %190, %34 : vector<64x64xi32>
    %192 = arith.extui %191 : vector<64x64xi1> to vector<64x64xi32>
    %193 = arith.sitofp %192 : vector<64x64xi32> to vector<64x64xf32>
    %194 = arith.truncf %193 : vector<64x64xf32> to vector<64x64xbf16>
    %195 = vector.extract_strided_slice %32 {offsets = [0, 68], sizes = [64, 4], strides = [1, 1]} : vector<64x108xbf16> to vector<64x4xbf16>
    %cst_36 = arith.constant dense<0.000000e+00> : vector<64x4xf32>
    %196 = tpu.matmul %194, %195, %cst_36 {dimension_numbers = #tpu.dot_dimension_numbers<[1], [0], [0], [1], [0, 0, 1, 1], [], []>} : vector<64x64xbf16>, vector<64x4xbf16>, vector<64x4xf32> -> vector<64x4xf32>
    %197 = arith.addf %188, %196 : vector<64x4xf32>
    %198 = vector.extract_strided_slice %33 {offsets = [0, 18], sizes = [64, 1], strides = [1, 1]} : vector<64x27xi32> to vector<64x1xi32>
    %199 = vector.broadcast %198 : vector<64x1xi32> to vector<64x64xi32>
    %200 = arith.cmpi eq, %199, %34 : vector<64x64xi32>
    %201 = arith.extui %200 : vector<64x64xi1> to vector<64x64xi32>
    %202 = arith.sitofp %201 : vector<64x64xi32> to vector<64x64xf32>
    %203 = arith.truncf %202 : vector<64x64xf32> to vector<64x64xbf16>
    %204 = vector.extract_strided_slice %32 {offsets = [0, 72], sizes = [64, 4], strides = [1, 1]} : vector<64x108xbf16> to vector<64x4xbf16>
    %cst_37 = arith.constant dense<0.000000e+00> : vector<64x4xf32>
    %205 = tpu.matmul %203, %204, %cst_37 {dimension_numbers = #tpu.dot_dimension_numbers<[1], [0], [0], [1], [0, 0, 1, 1], [], []>} : vector<64x64xbf16>, vector<64x4xbf16>, vector<64x4xf32> -> vector<64x4xf32>
    %206 = arith.addf %197, %205 : vector<64x4xf32>
    %207 = vector.extract_strided_slice %33 {offsets = [0, 19], sizes = [64, 1], strides = [1, 1]} : vector<64x27xi32> to vector<64x1xi32>
    %208 = vector.broadcast %207 : vector<64x1xi32> to vector<64x64xi32>
    %209 = arith.cmpi eq, %208, %34 : vector<64x64xi32>
    %210 = arith.extui %209 : vector<64x64xi1> to vector<64x64xi32>
    %211 = arith.sitofp %210 : vector<64x64xi32> to vector<64x64xf32>
    %212 = arith.truncf %211 : vector<64x64xf32> to vector<64x64xbf16>
    %213 = vector.extract_strided_slice %32 {offsets = [0, 76], sizes = [64, 4], strides = [1, 1]} : vector<64x108xbf16> to vector<64x4xbf16>
    %cst_38 = arith.constant dense<0.000000e+00> : vector<64x4xf32>
    %214 = tpu.matmul %212, %213, %cst_38 {dimension_numbers = #tpu.dot_dimension_numbers<[1], [0], [0], [1], [0, 0, 1, 1], [], []>} : vector<64x64xbf16>, vector<64x4xbf16>, vector<64x4xf32> -> vector<64x4xf32>
    %215 = arith.addf %206, %214 : vector<64x4xf32>
    %216 = vector.extract_strided_slice %33 {offsets = [0, 20], sizes = [64, 1], strides = [1, 1]} : vector<64x27xi32> to vector<64x1xi32>
    %217 = vector.broadcast %216 : vector<64x1xi32> to vector<64x64xi32>
    %218 = arith.cmpi eq, %217, %34 : vector<64x64xi32>
    %219 = arith.extui %218 : vector<64x64xi1> to vector<64x64xi32>
    %220 = arith.sitofp %219 : vector<64x64xi32> to vector<64x64xf32>
    %221 = arith.truncf %220 : vector<64x64xf32> to vector<64x64xbf16>
    %222 = vector.extract_strided_slice %32 {offsets = [0, 80], sizes = [64, 4], strides = [1, 1]} : vector<64x108xbf16> to vector<64x4xbf16>
    %cst_39 = arith.constant dense<0.000000e+00> : vector<64x4xf32>
    %223 = tpu.matmul %221, %222, %cst_39 {dimension_numbers = #tpu.dot_dimension_numbers<[1], [0], [0], [1], [0, 0, 1, 1], [], []>} : vector<64x64xbf16>, vector<64x4xbf16>, vector<64x4xf32> -> vector<64x4xf32>
    %224 = arith.addf %215, %223 : vector<64x4xf32>
    %225 = vector.extract_strided_slice %33 {offsets = [0, 21], sizes = [64, 1], strides = [1, 1]} : vector<64x27xi32> to vector<64x1xi32>
    %226 = vector.broadcast %225 : vector<64x1xi32> to vector<64x64xi32>
    %227 = arith.cmpi eq, %226, %34 : vector<64x64xi32>
    %228 = arith.extui %227 : vector<64x64xi1> to vector<64x64xi32>
    %229 = arith.sitofp %228 : vector<64x64xi32> to vector<64x64xf32>
    %230 = arith.truncf %229 : vector<64x64xf32> to vector<64x64xbf16>
    %231 = vector.extract_strided_slice %32 {offsets = [0, 84], sizes = [64, 4], strides = [1, 1]} : vector<64x108xbf16> to vector<64x4xbf16>
    %cst_40 = arith.constant dense<0.000000e+00> : vector<64x4xf32>
    %232 = tpu.matmul %230, %231, %cst_40 {dimension_numbers = #tpu.dot_dimension_numbers<[1], [0], [0], [1], [0, 0, 1, 1], [], []>} : vector<64x64xbf16>, vector<64x4xbf16>, vector<64x4xf32> -> vector<64x4xf32>
    %233 = arith.addf %224, %232 : vector<64x4xf32>
    %234 = vector.extract_strided_slice %33 {offsets = [0, 22], sizes = [64, 1], strides = [1, 1]} : vector<64x27xi32> to vector<64x1xi32>
    %235 = vector.broadcast %234 : vector<64x1xi32> to vector<64x64xi32>
    %236 = arith.cmpi eq, %235, %34 : vector<64x64xi32>
    %237 = arith.extui %236 : vector<64x64xi1> to vector<64x64xi32>
    %238 = arith.sitofp %237 : vector<64x64xi32> to vector<64x64xf32>
    %239 = arith.truncf %238 : vector<64x64xf32> to vector<64x64xbf16>
    %240 = vector.extract_strided_slice %32 {offsets = [0, 88], sizes = [64, 4], strides = [1, 1]} : vector<64x108xbf16> to vector<64x4xbf16>
    %cst_41 = arith.constant dense<0.000000e+00> : vector<64x4xf32>
    %241 = tpu.matmul %239, %240, %cst_41 {dimension_numbers = #tpu.dot_dimension_numbers<[1], [0], [0], [1], [0, 0, 1, 1], [], []>} : vector<64x64xbf16>, vector<64x4xbf16>, vector<64x4xf32> -> vector<64x4xf32>
    %242 = arith.addf %233, %241 : vector<64x4xf32>
    %243 = vector.extract_strided_slice %33 {offsets = [0, 23], sizes = [64, 1], strides = [1, 1]} : vector<64x27xi32> to vector<64x1xi32>
    %244 = vector.broadcast %243 : vector<64x1xi32> to vector<64x64xi32>
    %245 = arith.cmpi eq, %244, %34 : vector<64x64xi32>
    %246 = arith.extui %245 : vector<64x64xi1> to vector<64x64xi32>
    %247 = arith.sitofp %246 : vector<64x64xi32> to vector<64x64xf32>
    %248 = arith.truncf %247 : vector<64x64xf32> to vector<64x64xbf16>
    %249 = vector.extract_strided_slice %32 {offsets = [0, 92], sizes = [64, 4], strides = [1, 1]} : vector<64x108xbf16> to vector<64x4xbf16>
    %cst_42 = arith.constant dense<0.000000e+00> : vector<64x4xf32>
    %250 = tpu.matmul %248, %249, %cst_42 {dimension_numbers = #tpu.dot_dimension_numbers<[1], [0], [0], [1], [0, 0, 1, 1], [], []>} : vector<64x64xbf16>, vector<64x4xbf16>, vector<64x4xf32> -> vector<64x4xf32>
    %251 = arith.addf %242, %250 : vector<64x4xf32>
    %252 = vector.extract_strided_slice %33 {offsets = [0, 24], sizes = [64, 1], strides = [1, 1]} : vector<64x27xi32> to vector<64x1xi32>
    %253 = vector.broadcast %252 : vector<64x1xi32> to vector<64x64xi32>
    %254 = arith.cmpi eq, %253, %34 : vector<64x64xi32>
    %255 = arith.extui %254 : vector<64x64xi1> to vector<64x64xi32>
    %256 = arith.sitofp %255 : vector<64x64xi32> to vector<64x64xf32>
    %257 = arith.truncf %256 : vector<64x64xf32> to vector<64x64xbf16>
    %258 = vector.extract_strided_slice %32 {offsets = [0, 96], sizes = [64, 4], strides = [1, 1]} : vector<64x108xbf16> to vector<64x4xbf16>
    %cst_43 = arith.constant dense<0.000000e+00> : vector<64x4xf32>
    %259 = tpu.matmul %257, %258, %cst_43 {dimension_numbers = #tpu.dot_dimension_numbers<[1], [0], [0], [1], [0, 0, 1, 1], [], []>} : vector<64x64xbf16>, vector<64x4xbf16>, vector<64x4xf32> -> vector<64x4xf32>
    %260 = arith.addf %251, %259 : vector<64x4xf32>
    %261 = vector.extract_strided_slice %33 {offsets = [0, 25], sizes = [64, 1], strides = [1, 1]} : vector<64x27xi32> to vector<64x1xi32>
    %262 = vector.broadcast %261 : vector<64x1xi32> to vector<64x64xi32>
    %263 = arith.cmpi eq, %262, %34 : vector<64x64xi32>
    %264 = arith.extui %263 : vector<64x64xi1> to vector<64x64xi32>
    %265 = arith.sitofp %264 : vector<64x64xi32> to vector<64x64xf32>
    %266 = arith.truncf %265 : vector<64x64xf32> to vector<64x64xbf16>
    %267 = vector.extract_strided_slice %32 {offsets = [0, 100], sizes = [64, 4], strides = [1, 1]} : vector<64x108xbf16> to vector<64x4xbf16>
    %cst_44 = arith.constant dense<0.000000e+00> : vector<64x4xf32>
    %268 = tpu.matmul %266, %267, %cst_44 {dimension_numbers = #tpu.dot_dimension_numbers<[1], [0], [0], [1], [0, 0, 1, 1], [], []>} : vector<64x64xbf16>, vector<64x4xbf16>, vector<64x4xf32> -> vector<64x4xf32>
    %269 = arith.addf %260, %268 : vector<64x4xf32>
    %270 = vector.extract_strided_slice %33 {offsets = [0, 26], sizes = [64, 1], strides = [1, 1]} : vector<64x27xi32> to vector<64x1xi32>
    %271 = vector.broadcast %270 : vector<64x1xi32> to vector<64x64xi32>
    %272 = arith.cmpi eq, %271, %34 : vector<64x64xi32>
    %273 = arith.extui %272 : vector<64x64xi1> to vector<64x64xi32>
    %274 = arith.sitofp %273 : vector<64x64xi32> to vector<64x64xf32>
    %275 = arith.truncf %274 : vector<64x64xf32> to vector<64x64xbf16>
    %276 = vector.extract_strided_slice %32 {offsets = [0, 104], sizes = [64, 4], strides = [1, 1]} : vector<64x108xbf16> to vector<64x4xbf16>
    %cst_45 = arith.constant dense<0.000000e+00> : vector<64x4xf32>
    %277 = tpu.matmul %275, %276, %cst_45 {dimension_numbers = #tpu.dot_dimension_numbers<[1], [0], [0], [1], [0, 0, 1, 1], [], []>} : vector<64x64xbf16>, vector<64x4xbf16>, vector<64x4xf32> -> vector<64x4xf32>
    %278 = arith.addf %269, %277 : vector<64x4xf32>
    %c0_46 = arith.constant 0 : index
    %c0_47 = arith.constant 0 : index
    %279 = vector.load %arg7[%c0_46, %c0_47] : memref<1x4xf32, #tpu.memory_space<vmem>>, vector<1x4xf32>
    %c0_48 = arith.constant 0 : index
    %c0_49 = arith.constant 0 : index
    %280 = vector.load %arg8[%c0_48, %c0_49] : memref<1x4xf32, #tpu.memory_space<vmem>>, vector<1x4xf32>
    %cst_50 = arith.constant dense<0.000000e+00> : vector<4xf32>
    %281 = vector.multi_reduction <add>, %278, %cst_50 [0] : vector<64x4xf32> to vector<4xf32>
    %282 = vector.shape_cast %281 : vector<4xf32> to vector<1x4xf32>
    %283 = arith.mulf %278, %278 : vector<64x4xf32>
    %cst_51 = arith.constant dense<0.000000e+00> : vector<4xf32>
    %284 = vector.multi_reduction <add>, %283, %cst_51 [0] : vector<64x4xf32> to vector<4xf32>
    %285 = vector.shape_cast %284 : vector<4xf32> to vector<1x4xf32>
    %cst_52 = arith.constant 1.562500e-02 : f32
    %286 = vector.broadcast %cst_52 : f32 to vector<1x4xf32>
    %287 = arith.mulf %282, %286 : vector<1x4xf32>
    %cst_53 = arith.constant 1.562500e-02 : f32
    %288 = vector.broadcast %cst_53 : f32 to vector<1x4xf32>
    %289 = arith.mulf %285, %288 : vector<1x4xf32>
    %290 = arith.mulf %287, %287 : vector<1x4xf32>
    %291 = arith.subf %289, %290 : vector<1x4xf32>
    %cst_54 = arith.constant 9.99999974E-6 : f32
    %292 = vector.broadcast %cst_54 : f32 to vector<1x4xf32>
    %293 = arith.addf %291, %292 : vector<1x4xf32>
    %294 = math.rsqrt %293 : vector<1x4xf32>
    %295 = vector.broadcast %287 : vector<1x4xf32> to vector<64x4xf32>
    %296 = arith.subf %278, %295 : vector<64x4xf32>
    %297 = arith.mulf %294, %279 : vector<1x4xf32>
    %298 = vector.broadcast %297 : vector<1x4xf32> to vector<64x4xf32>
    %299 = arith.mulf %296, %298 : vector<64x4xf32>
    %300 = vector.broadcast %280 : vector<1x4xf32> to vector<64x4xf32>
    %301 = arith.addf %299, %300 : vector<64x4xf32>
    %cst_55 = arith.constant 0.000000e+00 : f32
    %302 = vector.broadcast %cst_55 : f32 to vector<64x4xf32>
    %303 = arith.maximumf %301, %302 : vector<64x4xf32>
    %304 = arith.truncf %303 : vector<64x4xf32> to vector<64x4xbf16>
    %c0_56 = arith.constant 0 : index
    %c0_57 = arith.constant 0 : index
    %305 = vector.load %arg9[%c0_56, %c0_57] : memref<4x16xbf16, #tpu.memory_space<vmem>>, vector<4x16xbf16>
    %cst_58 = arith.constant dense<0.000000e+00> : vector<64x16xf32>
    %306 = tpu.matmul %304, %305, %cst_58 {dimension_numbers = #tpu.dot_dimension_numbers<[1], [0], [0], [1], [0, 0, 1, 1], [], []>} : vector<64x4xbf16>, vector<4x16xbf16>, vector<64x16xf32> -> vector<64x16xf32>
    %c0_59 = arith.constant 0 : index
    %c0_60 = arith.constant 0 : index
    %307 = vector.load %arg10[%c0_59, %c0_60] : memref<1x16xf32, #tpu.memory_space<vmem>>, vector<1x16xf32>
    %c0_61 = arith.constant 0 : index
    %c0_62 = arith.constant 0 : index
    %308 = vector.load %arg11[%c0_61, %c0_62] : memref<1x16xf32, #tpu.memory_space<vmem>>, vector<1x16xf32>
    %cst_63 = arith.constant dense<0.000000e+00> : vector<16xf32>
    %309 = vector.multi_reduction <add>, %306, %cst_63 [0] : vector<64x16xf32> to vector<16xf32>
    %310 = vector.shape_cast %309 : vector<16xf32> to vector<1x16xf32>
    %311 = arith.mulf %306, %306 : vector<64x16xf32>
    %cst_64 = arith.constant dense<0.000000e+00> : vector<16xf32>
    %312 = vector.multi_reduction <add>, %311, %cst_64 [0] : vector<64x16xf32> to vector<16xf32>
    %313 = vector.shape_cast %312 : vector<16xf32> to vector<1x16xf32>
    %cst_65 = arith.constant 1.562500e-02 : f32
    %314 = vector.broadcast %cst_65 : f32 to vector<1x16xf32>
    %315 = arith.mulf %310, %314 : vector<1x16xf32>
    %cst_66 = arith.constant 1.562500e-02 : f32
    %316 = vector.broadcast %cst_66 : f32 to vector<1x16xf32>
    %317 = arith.mulf %313, %316 : vector<1x16xf32>
    %318 = arith.mulf %315, %315 : vector<1x16xf32>
    %319 = arith.subf %317, %318 : vector<1x16xf32>
    %cst_67 = arith.constant 9.99999974E-6 : f32
    %320 = vector.broadcast %cst_67 : f32 to vector<1x16xf32>
    %321 = arith.addf %319, %320 : vector<1x16xf32>
    %322 = math.rsqrt %321 : vector<1x16xf32>
    %323 = vector.broadcast %315 : vector<1x16xf32> to vector<64x16xf32>
    %324 = arith.subf %306, %323 : vector<64x16xf32>
    %325 = arith.mulf %322, %307 : vector<1x16xf32>
    %326 = vector.broadcast %325 : vector<1x16xf32> to vector<64x16xf32>
    %327 = arith.mulf %324, %326 : vector<64x16xf32>
    %328 = vector.broadcast %308 : vector<1x16xf32> to vector<64x16xf32>
    %329 = arith.addf %327, %328 : vector<64x16xf32>
    %330 = arith.addf %329, %0 : vector<64x16xf32>
    %cst_68 = arith.constant 0.000000e+00 : f32
    %331 = vector.broadcast %cst_68 : f32 to vector<64x16xf32>
    %332 = arith.maximumf %330, %331 : vector<64x16xf32>
    %c0_69 = arith.constant 0 : index
    %c0_70 = arith.constant 0 : index
    %333 = vector.load %arg12[%c0_69, %c0_70] : memref<64x16xf32, #tpu.memory_space<vmem>>, vector<64x16xf32>
    tpu.vector_store %arg12[%c0_69, %c0_70], %332 {strides = array<i32>} : memref<64x16xf32, #tpu.memory_space<vmem>>, vector<64x16xf32>,
    return
  }
  func.func @transform_0(%arg0: i32) -> (i32, i32) {
    %c0_i32 = arith.constant 0 : i32
    %c0_i32_0 = arith.constant 0 : i32
    %c0_i32_1 = arith.constant 0 : i32
    return %c0_i32, %c0_i32_0 : i32, i32
  }
  func.func @transform_1(%arg0: i32) -> (i32, i32) {
    %c0_i32 = arith.constant 0 : i32
    %c0_i32_0 = arith.constant 0 : i32
    %c0_i32_1 = arith.constant 0 : i32
    return %c0_i32, %c0_i32_0 : i32, i32
  }
  func.func @transform_2(%arg0: i32) -> (i32, i32) {
    %c0_i32 = arith.constant 0 : i32
    %c0_i32_0 = arith.constant 0 : i32
    %c0_i32_1 = arith.constant 0 : i32
    return %c0_i32, %c0_i32_0 : i32, i32
  }
  func.func @transform_3(%arg0: i32) -> (i32, i32) {
    %c0_i32 = arith.constant 0 : i32
    %c0_i32_0 = arith.constant 0 : i32
    %c0_i32_1 = arith.constant 0 : i32
    return %c0_i32, %c0_i32_0 : i32, i32
  }
  func.func @transform_4(%arg0: i32) -> (i32, i32) {
    %c0_i32 = arith.constant 0 : i32
    %c0_i32_0 = arith.constant 0 : i32
    %c0_i32_1 = arith.constant 0 : i32
    return %c0_i32, %c0_i32_0 : i32, i32
  }
  func.func @transform_5(%arg0: i32) -> (i32, i32) {
    %c0_i32 = arith.constant 0 : i32
    %c0_i32_0 = arith.constant 0 : i32
    %c0_i32_1 = arith.constant 0 : i32
    return %c0_i32, %c0_i32_0 : i32, i32
  }
  func.func @transform_6(%arg0: i32) -> (i32, i32) {
    %c0_i32 = arith.constant 0 : i32
    %c0_i32_0 = arith.constant 0 : i32
    %c0_i32_1 = arith.constant 0 : i32
    return %c0_i32, %c0_i32_0 : i32, i32
  }
  func.func @transform_7(%arg0: i32) -> (i32, i32) {
    %c0_i32 = arith.constant 0 : i32
    %c0_i32_0 = arith.constant 0 : i32
    %c0_i32_1 = arith.constant 0 : i32
    return %c0_i32, %c0_i32_0 : i32, i32
  }
  func.func @transform_8(%arg0: i32) -> (i32, i32) {
    %c0_i32 = arith.constant 0 : i32
    %c0_i32_0 = arith.constant 0 : i32
    %c0_i32_1 = arith.constant 0 : i32
    return %c0_i32, %c0_i32_0 : i32, i32
  }
  func.func @transform_9(%arg0: i32) -> (i32, i32) {
    %c0_i32 = arith.constant 0 : i32
    %c0_i32_0 = arith.constant 0 : i32
    %c0_i32_1 = arith.constant 0 : i32
    return %c0_i32, %c0_i32_0 : i32, i32
  }
  func.func @transform_10(%arg0: i32) -> (i32, i32) {
    %c0_i32 = arith.constant 0 : i32
    %c0_i32_0 = arith.constant 0 : i32
    %c0_i32_1 = arith.constant 0 : i32
    return %c0_i32, %c0_i32_0 : i32, i32
  }
  func.func @transform_11(%arg0: i32) -> (i32, i32) {
    %c0_i32 = arith.constant 0 : i32
    %c0_i32_0 = arith.constant 0 : i32
    %c0_i32_1 = arith.constant 0 : i32
    return %c0_i32, %c0_i32_0 : i32, i32
  }
}

</mosaic_0001>

<bundles_post_ra>
// kernel: tpu_custom_call.1
= control target key start
LH: loop header
LB: loop body
LE: loop exit
PB: predicated region body
PF: predicated region fallthrough
CT: control target
= control target key end

     0   :  { %v5837_v1 = vmov 0   ;;  %vm59_vm0 = vcmask 130048   ;;  %v5838_v22 = vmov 1   ;;  %v5839_v23 = vmov 2   ;;  %s5858_s15 = smov 124   ;;  %s5859_s16 = smov 112   ;;  %s8589_s2 = inlined_call_operand.vmem [shape: bf16[16,4], index: 2, kind: input, shape index: {}]   ;;  %s8590_s0 = inlined_call_operand.vmem [shape: f32[64,16], index: 0, kind: input, shape index: {}]   ;;  %s8591_s1 = inlined_call_operand.vmem [shape: s32[64,27], index: 1, kind: input, shape index: {}]   ;;  %s8592_s5 = inlined_call_operand.vmem [shape: bf16[4,108], index: 5, kind: input, shape index: {}]   ;;  %s8593_s3 = inlined_call_operand.vmem [shape: f32[1,4], index: 3, kind: input, shape index: {}]   ;;  %s8594_s4 = inlined_call_operand.vmem [shape: f32[1,4], index: 4, kind: input, shape index: {}]   ;;  %s8595_s8 = inlined_call_operand.vmem [shape: bf16[4,16], index: 8, kind: input, shape index: {}]   ;;  %s8596_s6 = inlined_call_operand.vmem [shape: f32[1,4], index: 6, kind: input, shape index: {}]   ;;  %s8597_s7 = inlined_call_operand.vmem [shape: f32[1,4], index: 7, kind: input, shape index: {}]   ;;  %s8598_s9 = inlined_call_operand.vmem [shape: f32[1,16], index: 9, kind: input, shape index: {}]   ;;  %s8599_s10 = inlined_call_operand.vmem [shape: f32[1,16], index: 10, kind: input, shape index: {}]   ;;  %s8600_s11 = inlined_call_operand.vmem [shape: f32[64,16], index: 11, kind: output, shape index: {}]  }
   0x1   :  { %v5808_v0 = vld [vmem:[%s8589_s2] sm:$0xff]   ;;  %5736 = vset.pattern.permute.xlu1 %v5837_v1  ;;  %5735 = vset.pattern.permute.xlu0 %v5837_v1  ;;  %v40_v3 = vld [vmem:[%s8590_s0 + $0x8] sm:$0xff]  ;;  %v41_v4 = vld [vmem:[%s8590_s0 + $0x10] sm:$0xff]  ;;  %v5840_v24 = vmov 3   ;;  %v5841_v25 = vmov 4   ;;  %v5842_v26 = vmov 5   ;;  %v205_v39 = vlaneseq }
   0x2   :  { %v39_v2 = vld [vmem:[%s8590_s0] sm:$0xff]  ;;  %5217 = vmatprep.subr.bf16.mxu0 %v5808_v0  ;;  %v42_v6 = vld [vmem:[%s8590_s0 + $0x18] sm:$0xff]  ;;  %v44_v8 = vld [vmem:[%s8590_s0 + $0x28] sm:$0xff]  ;;  %v5843_v27 = vmov 6   ;;  %v5844_v30 = vmov 7   ;;  %vm256_vm1 = vcmask 1041408  }
   0x3   :  { %v47_v5 = vpack.c.bf16 %v40_v3, %v39_v2  ;;  %v43_v7 = vld [vmem:[%s8590_s0 + $0x20] sm:$0xff]  ;;  %5218 = vmatpush3.bf16.msra.mxu0 %v5808_v0  ;;  %v48_v9 = vpack.c.bf16 %v42_v6, %v41_v4  ;;  %v5975_v11 = vld [vmem:[%s8591_s1 + $0x10] sm:$0xff]  ;;  %v5987_v13 = vld [vmem:[%s8591_s1 + $0x18] sm:$0xff]  ;;  %v6105_v40 = vand.u32 127, %v205_v39  ;;  %v8601_v43 = vmov 0.0   ;;  %s5860_s17 = smov 116  }
   0x4   :  { %v49_v10 = vpack.c.bf16 %v44_v8, %v43_v7  ;;  %346 = vperm.xlu1 %5736, %v5975_v11   ;;  %v5982_v12 = vld [vmem:[%s8591_s1] sm:$0xff]  ;;  %v5994_v14 = vld [vmem:[%s8591_s1 + $0x8] sm:$0xff]  ;;  %v45_v15 = vld [vmem:[%s8590_s0 + $0x30] sm:$0xff]  ;;  %vm459_vm4 = vcmask 523264   ;;  %v5846_v47 = vmov 8   ;;  %v5847_v48 = vmov 9  }
   0x5   :  { %5219 = vmatprep.mubr.msk.bf16.mxu0 %vm59_vm0, %v47_v5  ;;  %340 = vperm.xlu0 %5735, %v5982_v12   ;;  %v46_v16 = vld [vmem:[%s8590_s0 + $0x38] sm:$0xff]  ;;  %v6007_v17 = vld [vmem:[%s8591_s1 + $0x28] sm:$0xff]  ;;  %v6013_v19 = vld [vmem:[%s8591_s1 + $0x20] sm:$0xff]  ;;  %v5848_v51 = vmov 10   ;;  %v5849_v57 = vmov 11   ;;  %vm139_vm5 = vcmask 31744  }
   0x6   :  { %5220 = vmatmul.mubr.msk.bf16.vlgmr.msra.gmra.mxu0 %vm59_vm0, %v48_v9  ;;  %v50_v18 = vpack.c.bf16 %v46_v16, %v45_v15  ;;  %v6019_v20 = vld [vmem:[%s8591_s1 + $0x38] sm:$0xff]  ;;  %v6026_v21 = vld [vmem:[%s8591_s1 + $0x30] sm:$0xff]  ;;  %v243_v33 = vld [vmem:[%s8592_s5] sm:$0x3]  ;;  %s5861_s18 = smov 104   ;;  %s5862_s19 = smov 108  }
   0x7   :  { %5223 = vmatprep.mubr.msk.bf16.mxu0 %vm59_vm0, %v49_v10  ;;  %5679 = vmatprep.subr.msk.bf16.mxu1 %vm256_vm1, %v243_v33  ;;  %v258_v36 = vsel %vm256_vm1, %v243_v33, 0  ;;  %s5863_s20 = smov 92   ;;  %s5864_s21 = smov 100  }
   0x8   :  { %349 = vperm.xlu1 %5736, %v5987_v13   ;;  %5228 = vmatpush3.bf16.msra.mxu1 %v258_v36  ;;  %s5865_s22 = smov 88   ;;  %s5866_s23 = smov 96  }
   0x9   :  { %343 = vperm.xlu0 %5735, %v5994_v14   ;;  %s5867_s24 = smov 84   ;;  %s5868_s25 = smov 80  }
   0xa   :  { %s5869_s2 = smov 76   ;;  %s5870_s26 = smov 72  }
   0xb   :  { %s5871_s27 = smov 68   ;;  %s5872_s28 = smov 64  }
   0xc   :  { %355 = vperm.xlu1 %5736, %v6007_v17   ;;  %s5873_s29 = smov 60   ;;  %s5874_s30 = smov 56  }
   0xd   :  { %352 = vperm.xlu0 %5735, %v6013_v19  }
   0xe   :  { %5224 = vmatmul.mubr.msk.bf16.gmra.mxu0 %vm59_vm0, %v50_v18 }
  0x10   :  { %361 = vperm.xlu1 %5736, %v6019_v20  }
  0x11   :  { %358 = vperm.xlu0 %5735, %v6026_v21  }
  0x14   :  { %5738 = vset.pattern.permute.xlu1 %v5838_v22 }
  0x15   :  { %395 = vperm.xlu1 %5738, %v5994_v14   ;;  %5737 = vset.pattern.permute.xlu0 %v5838_v22 }
  0x16   :  { %392 = vperm.xlu0 %5737, %v5982_v12  }
  0x19   :  { %398 = vperm.xlu1 %5738, %v5975_v11  }
  0x1a   :  { %401 = vperm.xlu0 %5737, %v5987_v13  }
  0x1d   :  { %404 = vperm.xlu1 %5738, %v6013_v19  }
  0x1e   :  { %407 = vperm.xlu0 %5737, %v6007_v17  }
  0x21   :  { %410 = vperm.xlu1 %5738, %v6026_v21  }
  0x22   :  { %413 = vperm.xlu0 %5737, %v6019_v20  }
  0x25   :  { %5739 = vset.pattern.permute.xlu1 %v5839_v23 }
  0x26   :  { %615 = vperm.xlu1 %5739, %v5982_v12   ;;  %5740 = vset.pattern.permute.xlu0 %v5839_v23 }
  0x27   :  { %618 = vperm.xlu0 %5740, %v5994_v14  }
  0x2a   :  { %621 = vperm.xlu1 %5739, %v5975_v11  }
  0x2b   :  { %627 = vperm.xlu0 %5740, %v6013_v19  }
  0x2e   :  { %624 = vperm.xlu1 %5739, %v5987_v13  }
  0x2f   :  { %633 = vperm.xlu0 %5740, %v6026_v21  }
  0x32   :  { %630 = vperm.xlu1 %5739, %v6007_v17  }
  0x33   :  { %5741 = vset.pattern.permute.xlu0 %v5840_v24 }
  0x34   :  { %764 = vperm.xlu0 %5741, %v5982_v12  }
  0x36   :  { %636 = vperm.xlu1 %5739, %v6019_v20  }
  0x38   :  { %773 = vperm.xlu0 %5741, %v5987_v13  }
  0x3a   :  { %5742 = vset.pattern.permute.xlu1 %v5840_v24 }
  0x3b   :  { %767 = vperm.xlu1 %5742, %v5994_v14  }
  0x3c   :  { %779 = vperm.xlu0 %5741, %v6007_v17  }
  0x3f   :  { %770 = vperm.xlu1 %5742, %v5975_v11  }
  0x40   :  { %785 = vperm.xlu0 %5741, %v6019_v20  }
  0x43   :  { %776 = vperm.xlu1 %5742, %v6013_v19  }
  0x44   :  { %5744 = vset.pattern.permute.xlu0 %v5841_v25 }
  0x45   :  { %916 = vperm.xlu0 %5744, %v5994_v14  }
  0x47   :  { %782 = vperm.xlu1 %5742, %v6026_v21  }
  0x49   :  { %925 = vperm.xlu0 %5744, %v6013_v19  }
  0x4b   :  { %5743 = vset.pattern.permute.xlu1 %v5841_v25 }
  0x4c   :  { %913 = vperm.xlu1 %5743, %v5982_v12  }
  0x4d   :  { %931 = vperm.xlu0 %5744, %v6026_v21  }
  0x50   :  { %919 = vperm.xlu1 %5743, %v5975_v11  }
  0x51   :  { %5745 = vset.pattern.permute.xlu0 %v5842_v26 }
  0x52   :  { %1062 = vperm.xlu0 %5745, %v5982_v12  }
  0x54   :  { %922 = vperm.xlu1 %5743, %v5987_v13  }
  0x56   :  { %1071 = vperm.xlu0 %5745, %v5987_v13  }
  0x58   :  { %928 = vperm.xlu1 %5743, %v6007_v17  }
  0x5a   :  { %1077 = vperm.xlu0 %5745, %v6007_v17  }
  0x5c   :  { %934 = vperm.xlu1 %5743, %v6019_v20  }
  0x5e   :  { %1083 = vperm.xlu0 %5745, %v6019_v20  }
  0x60   :  { %5746 = vset.pattern.permute.xlu1 %v5842_v26 }
  0x61   :  { %1065 = vperm.xlu1 %5746, %v5994_v14  }
  0x62   :  { %5748 = vset.pattern.permute.xlu0 %v5843_v27 }
  0x63   :  { %1214 = vperm.xlu0 %5748, %v5994_v14  }
  0x65   :  { %1068 = vperm.xlu1 %5746, %v5975_v11  }
  0x67   :  { %1223 = vperm.xlu0 %5748, %v6013_v19  }
  0x69   :  { %1074 = vperm.xlu1 %5746, %v6013_v19  }
  0x6b   :  { %1229 = vperm.xlu0 %5748, %v6026_v21  }
  0x6d   :  { %1080 = vperm.xlu1 %5746, %v6026_v21  }
  0x6f   :  { %5749 = vset.pattern.permute.xlu0 %v5844_v30 }
  0x70   :  { %1360 = vperm.xlu0 %5749, %v5982_v12  }
  0x71   :  { %5747 = vset.pattern.permute.xlu1 %v5843_v27 }
  0x72   :  { %1211 = vperm.xlu1 %5747, %v5982_v12  }
  0x74   :  { %1369 = vperm.xlu0 %5749, %v5987_v13  }
  0x76   :  { %1217 = vperm.xlu1 %5747, %v5975_v11  }
  0x78   :  { %1375 = vperm.xlu0 %5749, %v6007_v17  }
  0x7a   :  { %1220 = vperm.xlu1 %5747, %v5987_v13  }
  0x7c   :  { %1381 = vperm.xlu0 %5749, %v6019_v20  }
  0x7e   :  { %1226 = vperm.xlu1 %5747, %v6007_v17  }
  0x7f   :  { %v6077_v28 = vpop.permute.xlu1 %346 }
  0x80   :  { %v6079_v29 = vpop.permute.xlu0 %340  ;;  %5752 = vset.pattern.permute.xlu0 %v5846_v47  ;;  %vm365_vm8 = vcmp.eq.s32.totalorder %v6077_v28, %v6105_v40 }
  0x81   :  { %1512 = vperm.xlu0 %5752, %v5994_v14   ;;  %vm363_vm6 = vcmp.eq.s32.totalorder %v6079_v29, %v6105_v40 }
  0x82   :  { %1232 = vperm.xlu1 %5747, %v6019_v20  }
  0x83   :  { %v6082_v31 = vpop.permute.xlu1 %349 }
  0x84   :  { %v6085_v32 = vpop.permute.xlu0 %343  ;;  %vm366_vm9 = vcmp.eq.s32.totalorder %v6082_v31, %v6105_v40 }
  0x85   :  { %1521 = vperm.xlu0 %5752, %v6013_v19   ;;  %vm364_vm7 = vcmp.eq.s32.totalorder %v6085_v32, %v6105_v40  ;;  %v5853_v32 = vmov 15  }
  0x86   :  { %5750 = vset.pattern.permute.xlu1 %v5844_v30 }
  0x87   :  { %v6090_v34 = vpop.permute.xlu1 %355  ;;  %1363 = vperm.xlu1 %5750, %v5994_v14  }
  0x88   :  { %v6094_v35 = vpop.permute.xlu0 %352  ;;  %vm368_vm10 = vcmp.eq.s32.totalorder %v6090_v34, %v6105_v40 }
  0x89   :  { %1524 = vperm.xlu0 %5752, %v6007_v17   ;;  %vm367_vm11 = vcmp.eq.s32.totalorder %v6094_v35, %v6105_v40 }
  0x8b   :  { %v6098_v37 = vpop.permute.xlu1 %361  ;;  %1366 = vperm.xlu1 %5750, %v5975_v11  }
  0x8c   :  { %v6101_v38 = vpop.permute.xlu0 %358  ;;  %vm370_vm12 = vcmp.eq.s32.totalorder %v6098_v37, %v6105_v40 }
  0x8d   :  { %1530 = vperm.xlu0 %5752, %v6019_v20   ;;  %vm369_vm13 = vcmp.eq.s32.totalorder %v6101_v38, %v6105_v40 }
  0x8f   :  { %1372 = vperm.xlu1 %5750, %v6013_v19  }
  0x90   :  { %v396_v41 = vpop.permute.xlu1 %395 }
  0x91   :  { %vm416_vm2 = vcmp.eq.s32.totalorder %v396_v41, %v6105_v40  ;;  %v393_v42 = vpop.permute.xlu0 %392  ;;  %5754 = vset.pattern.permute.xlu0 %v5847_v48 }
  0x92   :  { %v4665_v44 = vsel %vm416_vm2, 1.0, %v8601_v43  ;;  %vm415_vm3 = vcmp.eq.s32.totalorder %v393_v42, %v6105_v40  ;;  %1661 = vperm.xlu0 %5754, %v5994_v14  }
  0x93   :  { %v4664_v45 = vsel %vm415_vm3, 1.0, %v8601_v43  ;;  %1378 = vperm.xlu1 %5750, %v6026_v21  }
  0x94   :  { %v439_v46 = vpack.c.bf16 %v4665_v44, %v4664_v45  ;;  %v6124_v49 = vpop.permute.xlu1 %398 }
  0x95   :  { %vm417_vm2 = vcmp.eq.s32.totalorder %v6124_v49, %v6105_v40 }
  0x96   :  { %5245 = vmatprep.mubr.msk.bf16.mxu0 %vm459_vm4, %v439_v46  ;;  %1667 = vperm.xlu0 %5754, %v5987_v13  }
  0x97   :  { %5751 = vset.pattern.permute.xlu1 %v5846_v47  ;;  %v5850_v47 = vmov 12  }
  0x98   :  { %1509 = vperm.xlu1 %5751, %v5982_v12   ;;  %v6129_v50 = vpop.permute.xlu1 %404 }
  0x9a   :  { %1673 = vperm.xlu0 %5754, %v6007_v17  }
  0x9c   :  { %1515 = vperm.xlu1 %5751, %v5975_v11   ;;  %v6134_v52 = vpop.permute.xlu1 %410 }
  0x9e   :  { %1679 = vperm.xlu0 %5754, %v6019_v20  }
  0xa0   :  { %1518 = vperm.xlu1 %5751, %v5987_v13  }
  0xa1   :  { %v6138_v53 = vpop.permute.xlu1 %615 }
  0xa2   :  { %5757 = vset.pattern.permute.xlu0 %v5848_v51 }
  0xa3   :  { %1807 = vperm.xlu0 %5757, %v5982_v12  }
  0xa4   :  { %1527 = vperm.xlu1 %5751, %v6026_v21  }
  0xa5   :  { %v6144_v54 = vpop.permute.xlu1 %621 }
  0xa7   :  { %1816 = vperm.xlu0 %5757, %v5987_v13  }
  0xa8   :  { %5753 = vset.pattern.permute.xlu1 %v5847_v48 }
  0xa9   :  { %1658 = vperm.xlu1 %5753, %v5982_v12   ;;  %v6150_v56 = vpop.permute.xlu1 %624 }
  0xab   :  { %1822 = vperm.xlu0 %5757, %v6007_v17  }
  0xad   :  { %1664 = vperm.xlu1 %5753, %v5975_v11   ;;  %v6163_v62 = vpop.permute.xlu1 %630 }
  0xaf   :  { %1828 = vperm.xlu0 %5757, %v6019_v20  }
  0xb1   :  { %5755 = vset.pattern.permute.xlu1 %v5848_v51  ;;  %v6195_v26 = vpop.permute.xlu1 %636 }
  0xb2   :  { %1810 = vperm.xlu1 %5755, %v5994_v14  }
  0xb3   :  { %5760 = vset.pattern.permute.xlu0 %v5849_v57 }
  0xb4   :  { %1959 = vperm.xlu0 %5760, %v5994_v14  }
  0xb6   :  { %1813 = vperm.xlu1 %5755, %v5975_v11  }
  0xb8   :  { %1965 = vperm.xlu0 %5760, %v5987_v13  }
  0xba   :  { %5756 = vset.pattern.permute.xlu1 %v5847_v48 }
  0xbb   :  { %1670 = vperm.xlu1 %5756, %v6013_v19  }
  0xbc   :  { %1971 = vperm.xlu0 %5760, %v6007_v17  }
  0xbf   :  { %1676 = vperm.xlu1 %5756, %v6026_v21  }
  0xc0   :  { %1977 = vperm.xlu0 %5760, %v6019_v20  }
  0xc3   :  { %5758 = vset.pattern.permute.xlu1 %v5848_v51 }
  0xc4   :  { %1819 = vperm.xlu1 %5758, %v6013_v19   ;;  %5763 = vset.pattern.permute.xlu0 %v5850_v47 }
  0xc5   :  { %2105 = vperm.xlu0 %5763, %v5982_v12  }
  0xc6   :  { %v6148_v55 = vpop.f32.mrf.mxu0 }
  0xc7   :  { %v163_v63 = vmul.f32 %v6148_v55, %v6148_v55  ;;  %v143_v5 = vsel %vm139_vm5, %v6148_v55, 0.0 }
  0xc8   :  { %v6153_v58 = vpop.f32.mrf.mxu0  ;;  %1825 = vperm.xlu1 %5758, %v6026_v21  }
  0xc9   :  { %v161_v60 = vmul.f32 %v6153_v58, %v6153_v58  ;;  %v140_v0 = vsel %vm139_vm5, %v6153_v58, 0.0  ;;  %v172_v16 = vsel %vm139_vm5, %v163_v63, 0.0  ;;  %2114 = vperm.xlu0 %5763, %v5987_v13  }
  0xca   :  { %v6157_v59 = vpop.f32.mrf.mxu0 }
  0xcb   :  { %v169_v6 = vsel %vm139_vm5, %v161_v60, 0.0  ;;  %v164_v7 = vmul.f32 %v6157_v59, %v6157_v59  ;;  %v145_v18 = vsel %vm139_vm5, %v6157_v59, 0.0  ;;  %v6210_v60 = vpop.permute.xlu1 %767 }
  0xcc   :  { %v6161_v61 = vpop.f32.mrf.mxu0  ;;  %5759 = vset.pattern.permute.xlu1 %v5849_v57  ;;  %vm788_vm14 = vcmp.eq.s32.totalorder %v6210_v60, %v6105_v40 }
  0xcd   :  { %v141_v1 = vsel %vm139_vm5, %v6161_v61, 0.0  ;;  %v162_v2 = vmul.f32 %v6161_v61, %v6161_v61  ;;  %1956 = vperm.xlu1 %5759, %v5982_v12   ;;  %v174_v27 = vsel %vm139_vm5, %v164_v7, 0.0  ;;  %2120 = vperm.xlu0 %5763, %v6007_v17  }
  0xce   :  { %v142_v3 = vadd.f32 %v141_v1, %v140_v0  ;;  %v6176_v4 = vpop.f32.mrf.mxu0 }
  0xcf   :  { %v170_v8 = vsel %vm139_vm5, %v162_v2, 0.0  ;;  %v167_v42 = vmul.f32 %v6176_v4, %v6176_v4  ;;  %v151_v63 = vsel %vm139_vm5, %v6176_v4, 0.0 }
  0xd0   :  { %v171_v9 = vadd.f32 %v170_v8, %v169_v6  ;;  %v6184_v10 = vpop.f32.mrf.mxu0  ;;  %v144_v15 = vadd.f32 %v143_v5, %v142_v3 }
  0xd1   :  { %v165_v22 = vmul.f32 %v6184_v10, %v6184_v10  ;;  %1962 = vperm.xlu1 %5759, %v5975_v11   ;;  %v147_v30 = vsel %vm139_vm5, %v6184_v10, 0.0  ;;  %v180_v5 = vsel %vm139_vm5, %v167_v42, 0.0  ;;  %2126 = vperm.xlu0 %5763, %v6019_v20  }
  0xd2   :  { %v146_v23 = vadd.f32 %v145_v18, %v144_v15  ;;  %v173_v24 = vadd.f32 %v172_v16, %v171_v9  ;;  %v6193_v25 = vpop.f32.mrf.mxu0  ;;  %v6224_v18 = vpop.permute.xlu1 %770 }
  0xd3   :  { %v176_v44 = vsel %vm139_vm5, %v165_v22, 0.0  ;;  %v168_v0 = vmul.f32 %v6193_v25, %v6193_v25  ;;  %v153_v6 = vsel %vm139_vm5, %v6193_v25, 0.0 }
  0xd4   :  { %v148_v33 = vadd.f32 %v147_v30, %v146_v23  ;;  %v175_v36 = vadd.f32 %v174_v27, %v173_v24  ;;  %v6200_v41 = vpop.f32.mrf.mxu0 }
  0xd5   :  { %v149_v45 = vsel %vm139_vm5, %v6200_v41, 0.0  ;;  %v166_v46 = vmul.f32 %v6200_v41, %v6200_v41  ;;  %5761 = vset.pattern.permute.xlu1 %v5850_v47  ;;  %v182_v9 = vsel %vm139_vm5, %v168_v0, 0.0  ;;  %v5851_v0 = vmov 13  }
  0xd6   :  { %v177_v48 = vadd.f32 %v176_v44, %v175_v36  ;;  %v150_v51 = vadd.f32 %v149_v45, %v148_v33  ;;  %2108 = vperm.xlu1 %5761, %v5994_v14   ;;  %v6230_v36 = vpop.permute.xlu1 %776  ;;  %5766 = vset.pattern.permute.xlu0 %v5851_v0 }
  0xd7   :  { %v178_v1 = vsel %vm139_vm5, %v166_v46, 0.0  ;;  %2257 = vperm.xlu0 %5766, %v5994_v14  }
  0xd8   :  { %v152_v2 = vadd.f32 %v151_v63, %v150_v51  ;;  %v179_v3 = vadd.f32 %v178_v1, %v177_v48  ;;  %v6236_v51 = vpop.permute.xlu0 %401 }
  0xd9   :  { %vm418_vm3 = vcmp.eq.s32.totalorder %v6236_v51, %v6105_v40 }
  0xda   :  { %v154_v7 = vadd.f32 %v153_v6, %v152_v2  ;;  %v181_v8 = vadd.f32 %v180_v5, %v179_v3  ;;  %2111 = vperm.xlu1 %5761, %v5975_v11   ;;  %v6238_v63 = vpop.permute.xlu1 %782 }
  0xdb   :  { %2263 = vperm.xlu0 %5766, %v5987_v13  }
  0xdc   :  { %v155_v15 = vrot.slane %v154_v7, 4  ;;  %v183_v16 = vadd.f32 %v182_v9, %v181_v8  ;;  %v6245_v5 = vpop.permute.xlu0 %407  ;;  %v206_v9 = vshrl.u32 %v205_v39, 7 }
  0xde   :  { %v156_v22 = vadd.f32 %v155_v15, %v154_v7  ;;  %v184_v23 = vrot.slane %v183_v16, 4  ;;  %5762 = vset.pattern.permute.xlu1 %v5849_v57  ;;  %v6247_v6 = vpop.permute.xlu1 %913 }
  0xdf   :  { %1968 = vperm.xlu1 %5762, %v6013_v19   ;;  %2269 = vperm.xlu0 %5766, %v6007_v17  }
  0xe0   :  { %v157_v24 = vrot.slane %v156_v22, 2  ;;  %v185_v27 = vadd.f32 %v184_v23, %v183_v16  ;;  %v6252_v7 = vpop.permute.xlu0 %413  ;;  %v8603_v16 = vmov 14   ;;  %v137_v23 = vld [vmem:[%s8593_s3] sm:$0x1] }
  0xe2   :  { %v158_v30 = vadd.f32 %v157_v24, %v156_v22  ;;  %v186_v33 = vrot.slane %v185_v27, 2  ;;  %v6254_v8 = vpop.permute.xlu1 %919  ;;  %v6270_v24 = vsub.s32 0, %v206_v9 }
  0xe3   :  { %1974 = vperm.xlu1 %5762, %v6026_v21   ;;  %8698 = vst [vmem:[#allocation2_spill] sm:$0xff] %v6254_v8  ;;  %2275 = vperm.xlu0 %5766, %v6019_v20   ;;  %v8836_v8 = vmov 20  }
  0xe4   :  { %v159_v42 = vrot.slane %v158_v30, 1  ;;  %v187_v44 = vadd.f32 %v186_v33, %v185_v27  ;;  %v6259_v15 = vpop.permute.xlu0 %618  ;;  %8700 = vst [vmem:[#allocation4_spill] sm:$0xff] %v6270_v24 }
  0xe6   :  { %v160_v45 = vadd.f32 %v159_v42, %v158_v30  ;;  %v188_v46 = vrot.slane %v187_v44, 1  ;;  %v6262_v22 = vpop.permute.xlu1 %922 }
  0xe7   :  { %5764 = vset.pattern.permute.xlu1 %v5850_v47  ;;  %8699 = vst [vmem:[#allocation3_spill] sm:$0xff] %v6262_v22  ;;  %5769 = vset.pattern.permute.xlu0 %v8603_v16 }
  0xe8   :  { %v189_v57 = vadd.f32 %v188_v46, %v187_v44  ;;  %v6234_v48 = vmul.f32 0.015625, %v160_v45  ;;  %2117 = vperm.xlu1 %5764, %v6013_v19   ;;  %2403 = vperm.xlu0 %5769, %v5982_v12   ;;  %v6272_v30 = vpop.permute.xlu0 %627 }
  0xea   :  { %v191_v1 = vmul.f32 0.015625, %v189_v57  ;;  %v192_v2 = vmul.f32 %v6234_v48, %v6234_v48  ;;  %v201_v33 = vsub.f32 %v6200_v41, %v6234_v48  ;;  %v196_v44 = vsub.f32 %v6153_v58, %v6234_v48  ;;  %v6285_v57 = vpop.permute.xlu1 %928 }
  0xeb   :  { %v197_v45 = vsub.f32 %v6161_v61, %v6234_v48  ;;  %v198_v46 = vsub.f32 %v6148_v55, %v6234_v48  ;;  %8701 = vst [vmem:[#allocation5_spill] sm:$0xff] %v6285_v57  ;;  %v199_v41 = vsub.f32 %v6157_v59, %v6234_v48  ;;  %v202_v55 = vsub.f32 %v6176_v4, %v6234_v48 }
  0xec   :  { %v193_v3 = vsub.f32 %v191_v1, %v192_v2  ;;  %2123 = vperm.xlu1 %5764, %v6026_v21   ;;  %2412 = vperm.xlu0 %5769, %v5987_v13   ;;  %v4651_v1 = vld [vmem:[%s8594_s4] ss:$0 sm:$0xff]  ;;  %v200_v2 = vsub.f32 %v6184_v10, %v6234_v48  ;;  %v6299_v10 = vpop.permute.xlu0 %633  ;;  %s5857_s4 = smov 120  }
  0xee   :  { %v194_v47 = vadd.f32 1e-05, %v193_v3 }
  0xf0   :  { %5809 = vrsqrt.f32 %v194_v47  ;;  %5765 = vset.pattern.permute.xlu1 %v5851_v0  ;;  %2418 = vperm.xlu0 %5769, %v6007_v17  }
  0xf1   :  { %2254 = vperm.xlu1 %5765, %v5982_v12  }
  0xf4   :  { %2424 = vperm.xlu0 %5769, %v6019_v20  }
  0xf5   :  { %2260 = vperm.xlu1 %5765, %v5975_v11  }
  0xf8   :  { %5772 = vset.pattern.permute.xlu0 %v5853_v32 }
  0xf9   :  { %5767 = vset.pattern.permute.xlu1 %v8603_v16  ;;  %2555 = vperm.xlu0 %5772, %v5994_v14  }
  0xfa   :  { %2406 = vperm.xlu1 %5767, %v5994_v14  }
  0xfd   :  { %v5810_v39 = vpop.eup %5809  ;;  %2561 = vperm.xlu0 %5772, %v5987_v13  }
  0xfe   :  { %v204_v27 = vmul.f32 %v5810_v39, %v137_v23  ;;  %2409 = vperm.xlu1 %5767, %v5975_v11   ;;  %v203_v39 = vsub.f32 %v6193_v25, %v6234_v48 }
 0x100   :  { %v208_v42 = vrot.slane %v204_v27, %v6270_v24  ;;  %v6302_v24 = vpop.permute.xlu1 %934 }
 0x101   :  { %8702 = vst [vmem:[#allocation6_spill] sm:$0xff] %v6302_v24  ;;  %2567 = vperm.xlu0 %5772, %v6007_v17  }
 0x102   :  { %v214_v3 = vmul.f32 %v208_v42, %v201_v33  ;;  %v209_v58 = vmul.f32 %v208_v42, %v196_v44  ;;  %v210_v47 = vmul.f32 %v208_v42, %v197_v45  ;;  %v211_v9 = vmul.f32 %v208_v42, %v198_v46  ;;  %5768 = vset.pattern.permute.xlu1 %v5851_v0 }
 0x103   :  { %v212_v61 = vmul.f32 %v208_v42, %v199_v41  ;;  %v213_v23 = vmul.f32 %v208_v42, %v200_v2  ;;  %2266 = vperm.xlu1 %5768, %v6013_v19   ;;  %v215_v44 = vmul.f32 %v208_v42, %v202_v55  ;;  %v216_v45 = vmul.f32 %v208_v42, %v203_v39 }
 0x104   :  { %v228_v27 = vadd.f32 %v4651_v1, %v214_v3  ;;  %v223_v59 = vadd.f32 %v4651_v1, %v209_v58  ;;  %v224_v43 = vadd.f32 %v4651_v1, %v210_v47  ;;  %v225_v16 = vadd.f32 %v4651_v1, %v211_v9  ;;  %v6305_v58 = vpop.permute.xlu0 %764 }
 0x105   :  { %v226_v33 = vadd.f32 %v4651_v1, %v212_v61  ;;  %v227_v0 = vadd.f32 %v4651_v1, %v213_v23  ;;  %v229_v9 = vadd.f32 %v4651_v1, %v215_v44  ;;  %v230_v61 = vadd.f32 %v4651_v1, %v216_v45  ;;  %2573 = vperm.xlu0 %5772, %v6019_v20  }
 0x106   :  { %v231_v46 = vmax.f32 %v223_v59, 0.0  ;;  %v232_v41 = vmax.f32 %v224_v43, 0.0  ;;  %v233_v4 = vmax.f32 %v225_v16, 0.0  ;;  %v236_v2 = vmax.f32 %v228_v27, 0.0  ;;  %v6313_v16 = vpop.permute.xlu1 %1065 }
 0x107   :  { %v234_v25 = vmax.f32 %v226_v33, 0.0  ;;  %v235_v48 = vmax.f32 %v227_v0, 0.0  ;;  %2272 = vperm.xlu1 %5768, %v6026_v21   ;;  %v8703_v42 = vmov 14   ;;  %v8704_v1 = vmov 0.0  }
 0x108   :  { %v239_v3 = vpack.c.bf16 %v232_v41, %v231_v46  ;;  %v4656_v23 = vsel %vm363_vm6, 1.0, %v8704_v1  ;;  %v4657_v29 = vsel %vm364_vm7, 1.0, %v8704_v1  ;;  %v237_v55 = vmax.f32 %v229_v9, 0.0  ;;  %v6321_v27 = vpop.permute.xlu0 %773 }
 0x109   :  { %v240_v47 = vpack.c.bf16 %v234_v25, %v233_v4  ;;  %v241_v43 = vpack.c.bf16 %v236_v2, %v235_v48  ;;  %v238_v39 = vmax.f32 %v230_v61, 0.0  ;;  %v387_v59 = vpack.c.bf16 %v4657_v29, %v4656_v23 }
 0x10a   :  { %5229 = vmatprep.mubr.msk.bf16.mxu1 %vm139_vm5, %v239_v3  ;;  %v6324_v33 = vpop.permute.xlu1 %1068  ;;  %v5854_v4 = vmov 16   ;;  %v4658_v28 = vsel %vm365_vm8, 1.0, %v8704_v1  ;;  %v4659_v31 = vsel %vm366_vm9, 1.0, %v8704_v1  ;;  %v4661_v34 = vsel %vm368_vm10, 1.0, %v8704_v1 }
 0x10b   :  { %5230 = vmatmul.mubr.msk.bf16.vlgmr.msra.gmra.mxu1 %vm139_vm5, %v240_v47  ;;  %5770 = vset.pattern.permute.xlu1 %v8703_v42  ;;  %v242_v0 = vpack.c.bf16 %v238_v39, %v237_v55  ;;  %v8606_v55 = vmov 18   ;;  %v4660_v35 = vsel %vm367_vm11, 1.0, %v8704_v1  ;;  %vm787_vm15 = vcmp.eq.s32.totalorder %v6305_v58, %v6105_v40 }
 0x10c   :  { %5233 = vmatprep.mubr.msk.bf16.mxu1 %vm139_vm5, %v241_v43  ;;  %2415 = vperm.xlu1 %5770, %v6013_v19   ;;  %v6329_v44 = vpop.permute.xlu0 %779  ;;  %v5855_v43 = vmov 17   ;;  %v4693_v37 = vsel %vm788_vm14, 1.0, %v8704_v1  ;;  %v4692_v38 = vsel %vm787_vm15, 1.0, %v8704_v1  ;;  %vm419_vm6 = vcmp.eq.s32.totalorder %v6129_v50, %v6105_v40 }
 0x10d   :  { %5775 = vset.pattern.permute.xlu0 %v5854_v4  ;;  %vm420_vm7 = vcmp.eq.s32.totalorder %v6245_v5, %v6105_v40  ;;  %v4667_v49 = vsel %vm418_vm3, 1.0, %v8704_v1  ;;  %v4668_v51 = vsel %vm419_vm6, 1.0, %v8704_v1  ;;  %vm789_vm8 = vcmp.eq.s32.totalorder %v6224_v18, %v6105_v40 }
 0x10e   :  { %v6333_v45 = vpop.permute.xlu1 %1074  ;;  %2701 = vperm.xlu0 %5775, %v5982_v12   ;;  %v4669_v5 = vsel %vm420_vm7, 1.0, %v8704_v1  ;;  %vm790_vm9 = vcmp.eq.s32.totalorder %v6321_v27, %v6105_v40  ;;  %vm791_vm10 = vcmp.eq.s32.totalorder %v6230_v36, %v6105_v40  ;;  %vm792_vm11 = vcmp.eq.s32.totalorder %v6329_v44, %v6105_v40 }
 0x10f   :  { %v441_v18 = vpack.c.bf16 %v4669_v5, %v4668_v51  ;;  %v4696_v36 = vsel %vm791_vm10, 1.0, %v8704_v1  ;;  %v4697_v44 = vsel %vm792_vm11, 1.0, %v8704_v1  ;;  %vm638_vm14 = vcmp.eq.s32.totalorder %v6138_v53, %v6105_v40 }
 0x110   :  { %2421 = vperm.xlu1 %5770, %v6026_v21   ;;  %v6337_v46 = vpop.permute.xlu0 %785  ;;  %vm639_vm15 = vcmp.eq.s32.totalorder %v6259_v15, %v6105_v40  ;;  %v4680_v53 = vsel %vm638_vm14, 1.0, %v8704_v1  ;;  %vm1086_vm6 = vcmp.eq.s32.totalorder %v6313_v16, %v6105_v40  ;;  %vm643_vm10 = vcmp.eq.s32.totalorder %v6163_v62, %v6105_v40 }
 0x111   :  { %v4681_v15 = vsel %vm639_vm15, 1.0, %v8704_v1  ;;  %vm794_vm3 = vcmp.eq.s32.totalorder %v6337_v46, %v6105_v40  ;;  %vm642_vm11 = vcmp.eq.s32.totalorder %v6272_v30, %v6105_v40  ;;  %v4685_v62 = vsel %vm643_vm10, 1.0, %v8704_v1 }
 0x112   :  { %v6340_v41 = vpop.permute.xlu1 %1080  ;;  %2710 = vperm.xlu0 %5775, %v5987_v13   ;;  %v4684_v30 = vsel %vm642_vm11, 1.0, %v8704_v1  ;;  %vm1089_vm14 = vcmp.eq.s32.totalorder %v6333_v45, %v6105_v40 }
 0x113   :  { %5234 = vmatmul.mubr.msk.bf16.gmra.mxu1 %vm139_vm5, %v242_v0 }
 0x114   :  { %5771 = vset.pattern.permute.xlu1 %v5853_v32  ;;  %5261 = vmatprep.mubr.msk.bf16.mxu1 %vm459_vm4, %v387_v59  ;;  %v6342_v2 = vpop.permute.xlu0 %916 }
 0x115   :  { %2552 = vperm.xlu1 %5771, %v5982_v12  }
 0x116   :  { %v6346_v25 = vpop.permute.xlu1 %1211  ;;  %2716 = vperm.xlu0 %5775, %v6007_v17  }
 0x117   :  { %8705 = vst [vmem:[#allocation7_spill] sm:$0xff] %v6346_v25 }
 0x118   :  { %v6350_v48 = vpop.permute.xlu0 %925 }
 0x119   :  { %2558 = vperm.xlu1 %5771, %v5975_v11   ;;  %8706 = vst [vmem:[#allocation8_spill] sm:$0xff] %v6350_v48  ;;  %v8673_v48 = vmov 23  }
 0x11a   :  { %v6354_v3 = vpop.permute.xlu1 %1217  ;;  %2722 = vperm.xlu0 %5775, %v6019_v20  }
 0x11b   :  { %8707 = vst [vmem:[#allocation9_spill] sm:$0xff] %v6354_v3 }
 0x11c   :  { %v6356_v47 = vpop.permute.xlu0 %931 }
 0x11d   :  { %5773 = vset.pattern.permute.xlu1 %v5854_v4  ;;  %8708 = vst [vmem:[#allocation10_spill] sm:$0xff] %v6356_v47 }
 0x11e   :  { %2704 = vperm.xlu1 %5773, %v5994_v14   ;;  %v6362_v61 = vpop.permute.xlu1 %1220  ;;  %5778 = vset.pattern.permute.xlu0 %v5855_v43 }
 0x11f   :  { %8709 = vst [vmem:[#allocation11_spill] sm:$0xff] %v6362_v61  ;;  %2853 = vperm.xlu0 %5778, %v5994_v14  }
 0x120   :  { %v6360_v9 = vpop.permute.xlu0 %1062 }
 0x121   :  { %vm1085_vm7 = vcmp.eq.s32.totalorder %v6360_v9, %v6105_v40 }
 0x122   :  { %2707 = vperm.xlu1 %5773, %v5975_v11   ;;  %v6368_v42 = vpop.permute.xlu1 %1226  ;;  %v4716_v5 = vsel %vm1085_vm7, 1.0, %v8704_v1  ;;  %vm937_vm7 = vcmp.eq.s32.totalorder %v6342_v2, %v6105_v40 }
 0x123   :  { %8710 = vst [vmem:[#allocation12_spill] sm:$0xff] %v6368_v42  ;;  %2859 = vperm.xlu0 %5778, %v5987_v13  }
 0x124   :  { %v6366_v17 = vpop.permute.xlu0 %1071 }
 0x126   :  { %5774 = vset.pattern.permute.xlu1 %v5853_v32  ;;  %v6375_v23 = vpop.permute.xlu1 %1232 }
 0x127   :  { %2564 = vperm.xlu1 %5774, %v6013_v19   ;;  %8711 = vst [vmem:[#allocation13_spill] sm:$0xff] %v6375_v23 }
 0x128   :  { %v6373_v20 = vpop.permute.xlu0 %1077 }
 0x129   :  { %vm1090_vm15 = vcmp.eq.s32.totalorder %v6373_v20, %v6105_v40 }
 0x12b   :  { %2570 = vperm.xlu1 %5774, %v6026_v21  }
 0x12c   :  { %v6380_v29 = vpop.permute.xlu0 %1083 }
 0x12d   :  { %8713 = vst [vmem:[#allocation15_spill] sm:$0xff] %v6380_v29 }
 0x12f   :  { %5776 = vset.pattern.permute.xlu1 %v5854_v4 }
 0x130   :  { %2713 = vperm.xlu1 %5776, %v6013_v19   ;;  %v6378_v19 = vpop.permute.xlu1 %1363 }
 0x131   :  { %8712 = vst [vmem:[#allocation14_spill] sm:$0xff] %v6378_v19 }
 0x134   :  { %2719 = vperm.xlu1 %5776, %v6026_v21   ;;  %v6384_v21 = vpop.permute.xlu0 %1214  ;;  %v6386_v13 = vpop.permute.xlu1 %1366 }
 0x135   :  { %8714 = vst [vmem:[#allocation16_spill] sm:$0xff] %v6384_v21  ;;  %8715 = vst [vmem:[#allocation17_spill] sm:$0xff] %v6386_v13 }
 0x138   :  { %5777 = vset.pattern.permute.xlu1 %v5855_v43  ;;  %v6391_v39 = vpop.permute.xlu1 %1372 }
 0x139   :  { %2850 = vperm.xlu1 %5777, %v5982_v12   ;;  %v6389_v12 = vpop.permute.xlu0 %1223  ;;  %8717 = vst [vmem:[#allocation19_spill] sm:$0xff] %v6391_v39 }
 0x13a   :  { %8716 = vst [vmem:[#allocation18_spill] sm:$0xff] %v6389_v12 }
 0x13c   :  { %v6395_v59 = vpop.permute.xlu1 %1378 }
 0x13d   :  { %2856 = vperm.xlu1 %5777, %v5975_v11   ;;  %v6393_v32 = vpop.permute.xlu0 %1229  ;;  %8719 = vst [vmem:[#allocation21_spill] sm:$0xff] %v6395_v59 }
 0x13e   :  { %8718 = vst [vmem:[#allocation20_spill] sm:$0xff] %v6393_v32 }
 0x140   :  { %v6399_v4 = vpop.permute.xlu1 %1509 }
 0x141   :  { %5779 = vset.pattern.permute.xlu1 %v8606_v55  ;;  %v6397_v0 = vpop.permute.xlu0 %1360  ;;  %8721 = vst [vmem:[#allocation23_spill] sm:$0xff] %v6399_v4 }
 0x142   :  { %3002 = vperm.xlu1 %5779, %v5994_v14   ;;  %8720 = vst [vmem:[#allocation22_spill] sm:$0xff] %v6397_v0 }
 0x144   :  { %v6403_v55 = vpop.permute.xlu1 %1515 }
 0x145   :  { %v6401_v14 = vpop.permute.xlu0 %1369  ;;  %8723 = vst [vmem:[#allocation25_spill] sm:$0xff] %v6403_v55 }
 0x146   :  { %3005 = vperm.xlu1 %5779, %v5975_v11   ;;  %8722 = vst [vmem:[#allocation24_spill] sm:$0xff] %v6401_v14 }
 0x148   :  { %v6407_v11 = vpop.permute.xlu1 %1518 }
 0x149   :  { %v6405_v23 = vpop.permute.xlu0 %1375  ;;  %8725 = vst [vmem:[#allocation27_spill] sm:$0xff] %v6407_v11 }
 0x14a   :  { %5780 = vset.pattern.permute.xlu1 %v5855_v43  ;;  %8724 = vst [vmem:[#allocation26_spill] sm:$0xff] %v6405_v23 }
 0x14c   :  { %v6411_v42 = vpop.permute.xlu1 %1527 }
 0x14d   :  { %v6409_v12 = vpop.permute.xlu0 %1381  ;;  %8727 = vst [vmem:[#allocation29_spill] sm:$0xff] %v6411_v42 }
 0x14e   :  { %8726 = vst [vmem:[#allocation28_spill] sm:$0xff] %v6409_v12 }
 0x150   :  { %v6415_v32 = vpop.permute.xlu1 %1658 }
 0x151   :  { %v6413_v43 = vpop.permute.xlu0 %1512  ;;  %8729 = vst [vmem:[#allocation31_spill] sm:$0xff] %v6415_v32 }
 0x152   :  { %8728 = vst [vmem:[#allocation30_spill] sm:$0xff] %v6413_v43 }
 0x154   :  { %v6419_v3 = vpop.permute.xlu1 %1664 }
 0x155   :  { %v6417_v61 = vpop.permute.xlu0 %1521  ;;  %8731 = vst [vmem:[#allocation33_spill] sm:$0xff] %v6419_v3 }
 0x156   :  { %8730 = vst [vmem:[#allocation32_spill] sm:$0xff] %v6417_v61 }
 0x158   :  { %v6423_v59 = vpop.permute.xlu1 %1810 }
 0x159   :  { %v6421_v4 = vpop.permute.xlu0 %1524  ;;  %8733 = vst [vmem:[#allocation35_spill] sm:$0xff] %v6423_v59 }
 0x15a   :  { %8732 = vst [vmem:[#allocation34_spill] sm:$0xff] %v6421_v4 }
 0x15c   :  { %v6427_v21 = vpop.permute.xlu1 %1813 }
 0x15d   :  { %v6425_v55 = vpop.permute.xlu0 %1530  ;;  %8735 = vst [vmem:[#allocation37_spill] sm:$0xff] %v6427_v21 }
 0x15e   :  { %8734 = vst [vmem:[#allocation36_spill] sm:$0xff] %v6425_v55 }
 0x160   :  { %v6431_v12 = vpop.permute.xlu1 %1670 }
 0x161   :  { %v6429_v11 = vpop.permute.xlu0 %1661  ;;  %8737 = vst [vmem:[#allocation39_spill] sm:$0xff] %v6431_v12 }
 0x162   :  { %8736 = vst [vmem:[#allocation38_spill] sm:$0xff] %v6429_v11 }
 0x164   :  { %v6435_v43 = vpop.permute.xlu1 %1676 }
 0x165   :  { %v6433_v42 = vpop.permute.xlu0 %1667  ;;  %8739 = vst [vmem:[#allocation41_spill] sm:$0xff] %v6435_v43 }
 0x166   :  { %8738 = vst [vmem:[#allocation40_spill] sm:$0xff] %v6433_v42 }
 0x168   :  { %v6439_v61 = vpop.permute.xlu1 %1819 }
 0x169   :  { %v6437_v32 = vpop.permute.xlu0 %1673  ;;  %8741 = vst [vmem:[#allocation43_spill] sm:$0xff] %v6439_v61 }
 0x16a   :  { %8740 = vst [vmem:[#allocation42_spill] sm:$0xff] %v6437_v32 }
 0x16c   :  { %v6443_v4 = vpop.permute.xlu1 %1825 }
 0x16d   :  { %v6441_v3 = vpop.permute.xlu0 %1679  ;;  %8743 = vst [vmem:[#allocation45_spill] sm:$0xff] %v6443_v4 }
 0x16e   :  { %8742 = vst [vmem:[#allocation44_spill] sm:$0xff] %v6441_v3 }
 0x170   :  { %v6447_v55 = vpop.permute.xlu1 %1956 }
 0x171   :  { %v6445_v59 = vpop.permute.xlu0 %1807  ;;  %8745 = vst [vmem:[#allocation47_spill] sm:$0xff] %v6447_v55 }
 0x172   :  { %8744 = vst [vmem:[#allocation46_spill] sm:$0xff] %v6445_v59 }
 0x174   :  { %v6451_v11 = vpop.permute.xlu1 %1962 }
 0x175   :  { %v6449_v21 = vpop.permute.xlu0 %1816  ;;  %8747 = vst [vmem:[#allocation49_spill] sm:$0xff] %v6451_v11 }
 0x176   :  { %8746 = vst [vmem:[#allocation48_spill] sm:$0xff] %v6449_v21 }
 0x178   :  { %v6455_v42 = vpop.permute.xlu1 %2108 }
 0x179   :  { %v6453_v12 = vpop.permute.xlu0 %1822  ;;  %8749 = vst [vmem:[#allocation51_spill] sm:$0xff] %v6455_v42 }
 0x17a   :  { %8748 = vst [vmem:[#allocation50_spill] sm:$0xff] %v6453_v12 }
 0x17c   :  { %v6459_v32 = vpop.permute.xlu1 %2111 }
 0x17d   :  { %v6457_v43 = vpop.permute.xlu0 %1828  ;;  %8751 = vst [vmem:[#allocation53_spill] sm:$0xff] %v6459_v32 }
 0x17e   :  { %8750 = vst [vmem:[#allocation52_spill] sm:$0xff] %v6457_v43 }
 0x180   :  { %v6463_v3 = vpop.permute.xlu1 %1968 }
 0x181   :  { %v6461_v61 = vpop.permute.xlu0 %1959  ;;  %8753 = vst [vmem:[#allocation55_spill] sm:$0xff] %v6463_v3 }
 0x182   :  { %8752 = vst [vmem:[#allocation54_spill] sm:$0xff] %v6461_v61 }
 0x184   :  { %v6467_v59 = vpop.permute.xlu1 %1974 }
 0x185   :  { %v6465_v4 = vpop.permute.xlu0 %1965  ;;  %8755 = vst [vmem:[#allocation57_spill] sm:$0xff] %v6467_v59 }
 0x186   :  { %8754 = vst [vmem:[#allocation56_spill] sm:$0xff] %v6465_v4 }
 0x188   :  { %v6471_v21 = vpop.permute.xlu1 %2117 }
 0x189   :  { %v6469_v55 = vpop.permute.xlu0 %1971  ;;  %8757 = vst [vmem:[#allocation59_spill] sm:$0xff] %v6471_v21 }
 0x18a   :  { %8756 = vst [vmem:[#allocation58_spill] sm:$0xff] %v6469_v55 }
 0x18c   :  { %v6475_v12 = vpop.permute.xlu1 %2123 }
 0x18d   :  { %v6473_v11 = vpop.permute.xlu0 %1977  ;;  %8759 = vst [vmem:[#allocation61_spill] sm:$0xff] %v6475_v12 }
 0x18e   :  { %8758 = vst [vmem:[#allocation60_spill] sm:$0xff] %v6473_v11 }
 0x190   :  { %v6479_v32 = vpop.permute.xlu1 %2254 }
 0x191   :  { %v6477_v42 = vpop.permute.xlu0 %2105  ;;  %8761 = vst [vmem:[#allocation63_spill] sm:$0xff] %v6479_v32 }
 0x192   :  { %8760 = vst [vmem:[#allocation62_spill] sm:$0xff] %v6477_v42 }
 0x194   :  { %v6491_v21 = vpop.permute.xlu1 %2260 }
 0x195   :  { %v6481_v25 = vpop.permute.xlu0 %2114  ;;  %8764 = vst [vmem:[#allocation66_spill] sm:$0xff] %v6491_v21 }
 0x196   :  { %8762 = vst [vmem:[#allocation64_spill] sm:$0xff] %v6481_v25 }
 0x198   :  { %v6501_v11 = vpop.permute.xlu1 %2406 }
 0x199   :  { %v6489_v12 = vpop.permute.xlu0 %2120  ;;  %8766 = vst [vmem:[#allocation68_spill] sm:$0xff] %v6501_v11 }
 0x19a   :  { %8763 = vst [vmem:[#allocation65_spill] sm:$0xff] %v6489_v12 }
 0x19d   :  { %v6499_v25 = vpop.permute.xlu0 %2126 }
 0x19e   :  { %8765 = vst [vmem:[#allocation67_spill] sm:$0xff] %v6499_v25 }
 0x1cb   :  { %v5231_v43 = vpop.f32.mrf.mxu1 }
 0x1cd   :  { %v294_v61 = vpop.f32.mrf.mxu1 }
 0x1cf   :  { %v5232_v3 = vpop.f32.mrf.mxu1 }
 0x1d0   :  { %v6483_v4 = vpack.c.bf16 %v5232_v3, %v5231_v43 }
 0x1d1   :  { %v297_v59 = vpop.f32.mrf.mxu1 }
 0x1d2   :  { %668 = vrot.lane.b32.xlu1 %v6483_v4, %s5857_s4  ;;  %449 = vrot.lane.b32.xlu0 %v6483_v4, %s5858_s15 }
 0x1d3   :  { %v5235_v42 = vpop.f32.mrf.mxu1 }
 0x1d5   :  { %v310_v32 = vpop.f32.mrf.mxu1 }
 0x1d6   :  { %966 = vrot.lane.b32.xlu1 %v6483_v4, %s5859_s16  ;;  %817 = vrot.lane.b32.xlu0 %v6483_v4, %s5860_s17 }
 0x1d7   :  { %v5236_v3 = vpop.f32.mrf.mxu1 }
 0x1d8   :  { %v6497_v43 = vpack.c.bf16 %v5236_v3, %v5235_v42  ;;  %v6516_v42 = vpop.permute.xlu0 %2257 }
 0x1d9   :  { %v313_v12 = vpop.f32.mrf.mxu1  ;;  %8767 = vst [vmem:[#allocation69_spill] sm:$0xff] %v6516_v42  ;;  %v8636_v42 = vmov 19  }
 0x1da   :  { %v6503_v55 = vpack.c.bf16 %v313_v12, %v310_v32  ;;  %1264 = vrot.lane.b32.xlu1 %v6483_v4, %s5861_s18  ;;  %1115 = vrot.lane.b32.xlu0 %v6483_v4, %s5862_s19  ;;  %v6518_v12 = vpop.permute.xlu1 %2409  ;;  %v6530_v32 = vpack.c.bf16 %v297_v59, %v294_v61  ;;  %v388_v61 = vpack.c.bf16 %v4659_v31, %v4658_v28  ;;  %v4663_v28 = vsel %vm370_vm12, 1.0, %v8704_v1 }
 0x1db   :  { %5253 = vmatprep.subr.bf16.mxu1 %v6497_v43  ;;  %8768 = vst [vmem:[#allocation70_spill] sm:$0xff] %v6518_v12  ;;  %v389_v59 = vpack.c.bf16 %v4661_v34, %v4660_v35  ;;  %v4662_v31 = vsel %vm369_vm13, 1.0, %v8704_v1  ;;  %v811_v35 = vpack.c.bf16 %v4693_v37, %v4692_v38  ;;  %vm421_vm12 = vcmp.eq.s32.totalorder %v6134_v52, %v6105_v40 }
 0x1dc   :  { %5254 = vmatpush3.bf16.msra.mxu1 %v6497_v43  ;;  %v6537_v3 = vpop.permute.xlu0 %2263  ;;  %v390_v34 = vpack.c.bf16 %v4663_v28, %v4662_v31  ;;  %vm422_vm13 = vcmp.eq.s32.totalorder %v6252_v7, %v6105_v40 }
 0x1dd   :  { %5255 = vmatprep.subr.bf16.mxu1 %v6503_v55  ;;  %8769 = vst [vmem:[#allocation71_spill] sm:$0xff] %v6537_v3 }
 0x1de   :  { %1711 = vrot.lane.b32.xlu1 %v6483_v4, %s5863_s20  ;;  %1413 = vrot.lane.b32.xlu0 %v6483_v4, %s5864_s21  ;;  %v6539_v12 = vpop.permute.xlu1 %2266 }
 0x1df   :  { %8770 = vst [vmem:[#allocation72_spill] sm:$0xff] %v6539_v12 }
 0x1e0   :  { %5256 = vmatpush3.bf16.msra.mxu1 %v6503_v55  ;;  %v6555_v11 = vpop.permute.xlu0 %2269 }
 0x1e1   :  { %5257 = vmatprep.subr.bf16.mxu1 %v6483_v4  ;;  %8771 = vst [vmem:[#allocation73_spill] sm:$0xff] %v6555_v11 }
 0x1e2   :  { %1860 = vrot.lane.b32.xlu1 %v6483_v4, %s5865_s22  ;;  %1562 = vrot.lane.b32.xlu0 %v6483_v4, %s5866_s23  ;;  %v6557_v25 = vpop.permute.xlu1 %2272 }
 0x1e3   :  { %8772 = vst [vmem:[#allocation74_spill] sm:$0xff] %v6557_v25 }
 0x1e4   :  { %5258 = vmatpush3.bf16.msra.mxu1 %v6483_v4  ;;  %v6577_v60 = vpop.permute.xlu0 %2275 }
 0x1e5   :  { %5259 = vmatprep.subr.bf16.mxu1 %v6530_v32  ;;  %8773 = vst [vmem:[#allocation75_spill] sm:$0xff] %v6577_v60 }
 0x1e6   :  { %2009 = vrot.lane.b32.xlu1 %v6483_v4, %s5867_s24  ;;  %666 = vrot.lane.b32.xlu0 %v6530_v32, %s5857_s4  ;;  %v6579_v58 = vpop.permute.xlu1 %2415 }
 0x1e7   :  { %8774 = vst [vmem:[#allocation76_spill] sm:$0xff] %v6579_v58 }
 0x1e8   :  { %5260 = vmatpush3.bf16.msra.mxu1 %v6530_v32 }
 0x1ea   :  { %2158 = vrot.lane.b32.xlu1 %v6483_v4, %s5868_s25  ;;  %964 = vrot.lane.b32.xlu0 %v6530_v32, %s5859_s16 }
 0x1eb   :  { %5262 = vmatmul.mubr.msk.bf16.vlgmr.msra.gmra.mxu1 %vm459_vm4, %v388_v61  ;;  %v6591_v61 = vpop.permute.xlu0 %2403 }
 0x1ec   :  { %5265 = vmatprep.mubr.msk.bf16.mxu1 %vm459_vm4, %v389_v59  ;;  %8775 = vst [vmem:[#allocation77_spill] sm:$0xff] %v6591_v61  ;;  %v6593_v59 = vpop.permute.xlu1 %2421 }
 0x1ed   :  { %8776 = vst [vmem:[#allocation78_spill] sm:$0xff] %v6593_v59 }
 0x1ee   :  { %2307 = vrot.lane.b32.xlu1 %v6483_v4, %s5869_s2  ;;  %1262 = vrot.lane.b32.xlu0 %v6530_v32, %s5861_s18 }
 0x1ef   :  { %v6599_v28 = vpop.permute.xlu0 %2412 }
 0x1f0   :  { %8777 = vst [vmem:[#allocation79_spill] sm:$0xff] %v6599_v28  ;;  %v6601_v31 = vpop.permute.xlu1 %2552 }
 0x1f1   :  { %8778 = vst [vmem:[#allocation80_spill] sm:$0xff] %v6601_v31 }
 0x1f2   :  { %2456 = vrot.lane.b32.xlu1 %v6483_v4, %s5870_s26  ;;  %1560 = vrot.lane.b32.xlu0 %v6530_v32, %s5866_s23 }
 0x1f3   :  { %5266 = vmatmul.mubr.msk.bf16.gmra.mxu1 %vm459_vm4, %v390_v34  ;;  %v6607_v37 = vpop.permute.xlu0 %2418 }
 0x1f4   :  { %5293 = vmatprep.mubr.msk.bf16.mxu1 %vm459_vm4, %v811_v35  ;;  %8779 = vst [vmem:[#allocation81_spill] sm:$0xff] %v6607_v37  ;;  %v6613_v38 = vpop.permute.xlu1 %2558 }
 0x1f5   :  { %8780 = vst [vmem:[#allocation82_spill] sm:$0xff] %v6613_v38  ;;  %v6731_v38 = vld [vmem:[%s8591_s1] sm:$0xff] }
 0x1f6   :  { %2605 = vrot.lane.b32.xlu1 %v6483_v4, %s5871_s27  ;;  %1709 = vrot.lane.b32.xlu0 %v6530_v32, %s5863_s20 }
 0x1f7   :  { %v6619_v34 = vpop.permute.xlu0 %2424 }
 0x1f8   :  { %8781 = vst [vmem:[#allocation83_spill] sm:$0xff] %v6619_v34  ;;  %v6621_v35 = vpop.permute.xlu1 %2704 }
 0x1f9   :  { %8782 = vst [vmem:[#allocation84_spill] sm:$0xff] %v6621_v35 }
 0x1fa   :  { %2754 = vrot.lane.b32.xlu1 %v6483_v4, %s5872_s28  ;;  %2007 = vrot.lane.b32.xlu0 %v6530_v32, %s5867_s24 }
 0x1fb   :  { %v6627_v59 = vpop.permute.xlu0 %2555 }
 0x1fc   :  { %8783 = vst [vmem:[#allocation85_spill] sm:$0xff] %v6627_v59  ;;  %v6633_v58 = vpop.permute.xlu1 %2707 }
 0x1fd   :  { %8784 = vst [vmem:[#allocation86_spill] sm:$0xff] %v6633_v58 }
 0x1fe   :  { %2903 = vrot.lane.b32.xlu1 %v6483_v4, %s5873_s29  ;;  %2305 = vrot.lane.b32.xlu0 %v6530_v32, %s5869_s2 }
 0x1ff   :  { %v6635_v37 = vpop.permute.xlu0 %2561 }
 0x200   :  { %8785 = vst [vmem:[#allocation87_spill] sm:$0xff] %v6635_v37  ;;  %v6641_v35 = vpop.permute.xlu1 %2564 }
 0x201   :  { %8786 = vst [vmem:[#allocation88_spill] sm:$0xff] %v6641_v35 }
 0x202   :  { %3052 = vrot.lane.b32.xlu1 %v6483_v4, %s5874_s30  ;;  %2603 = vrot.lane.b32.xlu0 %v6530_v32, %s5871_s27 }
 0x203   :  { %v6647_v34 = vpop.permute.xlu0 %2567 }
 0x204   :  { %8787 = vst [vmem:[#allocation89_spill] sm:$0xff] %v6647_v34  ;;  %v6653_v58 = vpop.permute.xlu1 %2570 }
 0x205   :  { %8788 = vst [vmem:[#allocation90_spill] sm:$0xff] %v6653_v58 }
 0x206   :  { %2901 = vrot.lane.b32.xlu0 %v6530_v32, %s5873_s29  ;;  %447 = vrot.lane.b32.xlu1 %v6530_v32, %s5858_s15 }
 0x207   :  { %v6655_v28 = vpop.permute.xlu0 %2573 }
 0x208   :  { %8789 = vst [vmem:[#allocation91_spill] sm:$0xff] %v6655_v28  ;;  %v6661_v61 = vpop.permute.xlu1 %2713 }
 0x209   :  { %8790 = vst [vmem:[#allocation92_spill] sm:$0xff] %v6661_v61 }
 0x20a   :  { %815 = vrot.lane.b32.xlu1 %v6530_v32, %s5860_s17  ;;  %453 = vrot.lane.b32.xlu0 %v6497_v43, %s5858_s15 }
 0x20b   :  { %v6667_v35 = vpop.permute.xlu0 %2701 }
 0x20c   :  { %8791 = vst [vmem:[#allocation93_spill] sm:$0xff] %v6667_v35  ;;  %v6673_v58 = vpop.permute.xlu1 %2719 }
 0x20d   :  { %8792 = vst [vmem:[#allocation94_spill] sm:$0xff] %v6673_v58 }
 0x20e   :  { %1113 = vrot.lane.b32.xlu1 %v6530_v32, %s5862_s19  ;;  %821 = vrot.lane.b32.xlu0 %v6497_v43, %s5860_s17 }
 0x20f   :  { %v6675_v28 = vpop.permute.xlu0 %2710 }
 0x210   :  { %8793 = vst [vmem:[#allocation95_spill] sm:$0xff] %v6675_v28  ;;  %v6681_v61 = vpop.permute.xlu1 %2850 }
 0x211   :  { %8794 = vst [vmem:[#allocation96_spill] sm:$0xff] %v6681_v61 }
 0x212   :  { %1411 = vrot.lane.b32.xlu1 %v6530_v32, %s5864_s21  ;;  %1119 = vrot.lane.b32.xlu0 %v6497_v43, %s5862_s19 }
 0x213   :  { %v6687_v35 = vpop.permute.xlu0 %2716 }
 0x214   :  { %8795 = vst [vmem:[#allocation97_spill] sm:$0xff] %v6687_v35  ;;  %v6693_v58 = vpop.permute.xlu1 %2856  ;;  %v6710_v35 = vld [vmem:[%s8591_s1 + $0x28] sm:$0xff] }
 0x215   :  { %8796 = vst [vmem:[#allocation98_spill] sm:$0xff] %v6693_v58 }
 0x216   :  { %1858 = vrot.lane.b32.xlu1 %v6530_v32, %s5865_s22  ;;  %1417 = vrot.lane.b32.xlu0 %v6497_v43, %s5864_s21 }
 0x217   :  { %v6695_v28 = vpop.permute.xlu0 %2722 }
 0x218   :  { %8797 = vst [vmem:[#allocation99_spill] sm:$0xff] %v6695_v28  ;;  %v6701_v61 = vpop.permute.xlu1 %3002  ;;  %v6718_v28 = vld [vmem:[%s8591_s1 + $0x38] sm:$0xff] }
 0x219   :  { %8798 = vst [vmem:[#allocation100_spill] sm:$0xff] %v6701_v61 }
 0x21a   :  { %2156 = vrot.lane.b32.xlu1 %v6530_v32, %s5868_s25  ;;  %670 = vrot.lane.b32.xlu0 %v6503_v55, %s5857_s4 }
 0x21b   :  { %v6703_v34 = vpop.permute.xlu0 %2853 }
 0x21c   :  { %8799 = vst [vmem:[#allocation101_spill] sm:$0xff] %v6703_v34  ;;  %v6721_v61 = vpop.permute.xlu1 %3005  ;;  %v8802_v34 = vmov 18  }
 0x21d   :  { %8800 = vst [vmem:[#allocation102_spill] sm:$0xff] %v6721_v61  ;;  %v6743_v61 = vld [vmem:[%s8591_s1 + $0x18] sm:$0xff] }
 0x21e   :  { %2454 = vrot.lane.b32.xlu1 %v6530_v32, %s5870_s26  ;;  %968 = vrot.lane.b32.xlu0 %v6503_v55, %s5859_s16 }
 0x21f   :  { %v6723_v58 = vpop.permute.xlu0 %2859 }
 0x220   :  { %8801 = vst [vmem:[#allocation103_spill] sm:$0xff] %v6723_v58 }
 0x222   :  { %2752 = vrot.lane.b32.xlu1 %v6530_v32, %s5872_s28  ;;  %1266 = vrot.lane.b32.xlu0 %v6503_v55, %s5861_s18 }
 0x226   :  { %672 = vrot.lane.b32.xlu1 %v6497_v43, %s5857_s4  ;;  %1713 = vrot.lane.b32.xlu0 %v6503_v55, %s5863_s20 }
 0x22a   :  { %970 = vrot.lane.b32.xlu1 %v6497_v43, %s5859_s16  ;;  %2011 = vrot.lane.b32.xlu0 %v6503_v55, %s5867_s24  ;;  %s5890_s16 = smov 24  }
 0x22e   :  { %1268 = vrot.lane.b32.xlu1 %v6497_v43, %s5861_s18  ;;  %2309 = vrot.lane.b32.xlu0 %v6503_v55, %s5869_s2 }
 0x232   :  { %1566 = vrot.lane.b32.xlu1 %v6497_v43, %s5866_s23  ;;  %2607 = vrot.lane.b32.xlu0 %v6503_v55, %s5871_s27 }
 0x236   :  { %1715 = vrot.lane.b32.xlu1 %v6497_v43, %s5863_s20  ;;  %2905 = vrot.lane.b32.xlu0 %v6503_v55, %s5873_s29  ;;  %s5875_s20 = smov 52  }
 0x23a   :  { %1864 = vrot.lane.b32.xlu1 %v6497_v43, %s5865_s22  ;;  %2865 = vperm.xlu0 %5778, %v6710_v35  }
 0x23e   :  { %2013 = vrot.lane.b32.xlu1 %v6497_v43, %s5867_s24  ;;  %2871 = vperm.xlu0 %5778, %v6718_v28  }
 0x242   :  { %2162 = vrot.lane.b32.xlu1 %v6497_v43, %s5868_s25  ;;  %5781 = vset.pattern.permute.xlu0 %v8802_v34 }
 0x243   :  { %2999 = vperm.xlu0 %5781, %v6731_v38  }
 0x244   :  { %v6734_v37 = vpop.permute.xlu1 %668  ;;  %v6736_v31 = vpop.permute.xlu0 %449 }
 0x246   :  { %2311 = vrot.lane.b32.xlu1 %v6497_v43, %s5869_s2 }
 0x247   :  { %3008 = vperm.xlu0 %5781, %v6743_v61  }
 0x248   :  { %v6746_v58 = vpop.permute.xlu1 %966  ;;  %v6748_v59 = vpop.permute.xlu0 %817 }
 0x249   :  { %8803 = vst [vmem:[#allocation104_spill] sm:$0xff] %v6746_v58 }
 0x24a   :  { %2460 = vrot.lane.b32.xlu1 %v6497_v43, %s5870_s26 }
 0x24b   :  { %3014 = vperm.xlu0 %5781, %v6710_v35  }
 0x24c   :  { %v6753_v25 = vpop.permute.xlu1 %1264  ;;  %v6755_v60 = vpop.permute.xlu0 %1115 }
 0x24d   :  { %8804 = vst [vmem:[#allocation105_spill] sm:$0xff] %v6753_v25 }
 0x24e   :  { %2609 = vrot.lane.b32.xlu1 %v6497_v43, %s5871_s27 }
 0x24f   :  { %3020 = vperm.xlu0 %5781, %v6718_v28  }
 0x250   :  { %v6760_v12 = vpop.permute.xlu1 %1711  ;;  %v6762_v11 = vpop.permute.xlu0 %1413 }
 0x251   :  { %8805 = vst [vmem:[#allocation106_spill] sm:$0xff] %v6760_v12  ;;  %8806 = vst [vmem:[#allocation107_spill] sm:$0xff] %v6762_v11  ;;  %v6778_v12 = vld [vmem:[%s8591_s1 + $0x8] sm:$0xff] }
 0x252   :  { %2758 = vrot.lane.b32.xlu1 %v6497_v43, %s5872_s28 }
 0x253   :  { %3203 = vrot.lane.b32.xlu0 %v6503_v55, %s5875_s20 }
 0x254   :  { %v6768_v21 = vpop.permute.xlu1 %1860  ;;  %v6770_v3 = vpop.permute.xlu0 %1562  ;;  %5784 = vset.pattern.permute.xlu0 %v8636_v42 }
 0x255   :  { %8807 = vst [vmem:[#allocation108_spill] sm:$0xff] %v6768_v21  ;;  %8808 = vst [vmem:[#allocation109_spill] sm:$0xff] %v6770_v3 }
 0x256   :  { %2907 = vrot.lane.b32.xlu1 %v6497_v43, %s5873_s29  ;;  %s5887_s29 = smov 40  }
 0x257   :  { %3151 = vperm.xlu0 %5784, %v6778_v12  }
 0x258   :  { %v6781_v25 = vpop.permute.xlu1 %2009  ;;  %v6783_v47 = vpop.permute.xlu0 %666 }
 0x259   :  { %8809 = vst [vmem:[#allocation110_spill] sm:$0xff] %v6781_v25 }
 0x25a   :  { %3056 = vrot.lane.b32.xlu1 %v6497_v43, %s5874_s30 }
 0x25b   :  { %3157 = vperm.xlu0 %5784, %v6743_v61  }
 0x25c   :  { %v6788_v42 = vpop.permute.xlu1 %2158  ;;  %v6790_v21 = vpop.permute.xlu0 %964 }
 0x25d   :  { %8810 = vst [vmem:[#allocation111_spill] sm:$0xff] %v6788_v42  ;;  %8811 = vst [vmem:[#allocation112_spill] sm:$0xff] %v6790_v21 }
 0x25e   :  { %451 = vrot.lane.b32.xlu1 %v6503_v55, %s5858_s15  ;;  %s5878_s15 = smov 44  }
 0x25f   :  { %3199 = vrot.lane.b32.xlu0 %v6530_v32, %s5875_s20 }
 0x260   :  { %v6796_v3 = vpop.permute.xlu1 %2307  ;;  %v6798_v25 = vpop.permute.xlu0 %1262 }
 0x261   :  { %8812 = vst [vmem:[#allocation113_spill] sm:$0xff] %v6796_v3  ;;  %8813 = vst [vmem:[#allocation114_spill] sm:$0xff] %v6798_v25  ;;  %v8648_v3 = vmov 20  }
 0x262   :  { %819 = vrot.lane.b32.xlu1 %v6503_v55, %s5860_s17 }
 0x263   :  { %3163 = vperm.xlu0 %5784, %v6710_v35  }
 0x264   :  { %v6803_v24 = vpop.permute.xlu1 %2456  ;;  %v6805_v42 = vpop.permute.xlu0 %1560 }
 0x265   :  { %8814 = vst [vmem:[#allocation115_spill] sm:$0xff] %v6803_v24  ;;  %8815 = vst [vmem:[#allocation116_spill] sm:$0xff] %v6805_v42 }
 0x266   :  { %1117 = vrot.lane.b32.xlu1 %v6503_v55, %s5862_s19 }
 0x267   :  { %3169 = vperm.xlu0 %5784, %v6718_v28  }
 0x268   :  { %v6810_v23 = vpop.permute.xlu1 %2605  ;;  %v6812_v39 = vpop.permute.xlu0 %1709 }
 0x269   :  { %8816 = vst [vmem:[#allocation117_spill] sm:$0xff] %v6810_v23  ;;  %8817 = vst [vmem:[#allocation118_spill] sm:$0xff] %v6812_v39 }
 0x26a   :  { %1415 = vrot.lane.b32.xlu1 %v6503_v55, %s5864_s21 }
 0x26b   :  { %5787 = vset.pattern.permute.xlu0 %v8648_v3 }
 0x26c   :  { %v6817_v25 = vpop.permute.xlu1 %2754  ;;  %v6819_v24 = vpop.permute.xlu0 %2007  ;;  %3297 = vperm.xlu0 %5787, %v6731_v38  }
 0x26d   :  { %8818 = vst [vmem:[#allocation119_spill] sm:$0xff] %v6817_v25  ;;  %8819 = vst [vmem:[#allocation120_spill] sm:$0xff] %v6819_v24 }
 0x26e   :  { %1564 = vrot.lane.b32.xlu1 %v6503_v55, %s5866_s23  ;;  %s5881_s23 = smov 48  }
 0x270   :  { %v6824_v42 = vpop.permute.xlu1 %2903  ;;  %v6826_v23 = vpop.permute.xlu0 %2305  ;;  %3306 = vperm.xlu0 %5787, %v6743_v61  }
 0x271   :  { %8820 = vst [vmem:[#allocation121_spill] sm:$0xff] %v6824_v42  ;;  %8821 = vst [vmem:[#allocation122_spill] sm:$0xff] %v6826_v23 }
 0x272   :  { %1862 = vrot.lane.b32.xlu1 %v6503_v55, %s5865_s22 }
 0x274   :  { %v6831_v39 = vpop.permute.xlu1 %3052  ;;  %v6833_v3 = vpop.permute.xlu0 %2603  ;;  %3312 = vperm.xlu0 %5787, %v6710_v35  }
 0x275   :  { %8822 = vst [vmem:[#allocation123_spill] sm:$0xff] %v6831_v39  ;;  %8823 = vst [vmem:[#allocation124_spill] sm:$0xff] %v6833_v3  ;;  %v8658_v39 = vmov 21  }
 0x276   :  { %2160 = vrot.lane.b32.xlu1 %v6503_v55, %s5868_s25  ;;  %s5882_s25 = smov 36  }
 0x278   :  { %v6838_v25 = vpop.permute.xlu0 %2901  ;;  %v6840_v24 = vpop.permute.xlu1 %447  ;;  %3318 = vperm.xlu0 %5787, %v6718_v28  }
 0x279   :  { %8824 = vst [vmem:[#allocation125_spill] sm:$0xff] %v6838_v25 }
 0x27a   :  { %2458 = vrot.lane.b32.xlu1 %v6503_v55, %s5870_s26 }
 0x27c   :  { %v6845_v42 = vpop.permute.xlu1 %815  ;;  %v454_v23 = vpop.permute.xlu0 %453  ;;  %3501 = vrot.lane.b32.xlu0 %v6503_v55, %s5878_s15 }
 0x27d   :  { %5237 = vmatprep.subr.bf16.mxu0 %v454_v23  ;;  %5790 = vset.pattern.permute.xlu0 %v8658_v39 }
 0x27e   :  { %5238 = vmatpush3.bf16.msra.mxu0 %v454_v23  ;;  %2756 = vrot.lane.b32.xlu1 %v6503_v55, %s5872_s28  ;;  %v6863_v23 = vld [vmem:[%s8591_s1 + $0x20] sm:$0xff]  ;;  %s5885_s28 = smov 28  }
 0x280   :  { %v6852_v25 = vpop.permute.xlu1 %1113  ;;  %v822_v3 = vpop.permute.xlu0 %821  ;;  %3449 = vperm.xlu0 %5790, %v6778_v12  }
 0x281   :  { %5285 = vmatprep.subr.bf16.mxu1 %v822_v3 }
 0x282   :  { %3054 = vrot.lane.b32.xlu1 %v6503_v55, %s5874_s30  ;;  %5286 = vmatpush3.bf16.msra.mxu1 %v822_v3 }
 0x284   :  { %v6857_v14 = vpop.permute.xlu1 %1411  ;;  %3455 = vperm.xlu0 %5790, %v6743_v61  }
 0x285   :  { %8825 = vst [vmem:[#allocation126_spill] sm:$0xff] %v6857_v14  ;;  %v6878_v14 = vld [vmem:[%s8591_s1 + $0x30] sm:$0xff] }
 0x286   :  { %2862 = vperm.xlu1 %5780, %v6863_v23  }
 0x288   :  { %v6866_v39 = vpop.permute.xlu1 %1858  ;;  %3497 = vrot.lane.b32.xlu0 %v6530_v32, %s5878_s15 }
 0x289   :  { %8826 = vst [vmem:[#allocation127_spill] sm:$0xff] %v6866_v39 }
 0x28a   :  { %3050 = vrot.lane.b32.xlu1 %v6530_v32, %s5874_s30  ;;  %s5889_s30 = smov 32  }
 0x28c   :  { %v6872_v3 = vpop.permute.xlu1 %2156  ;;  %3461 = vperm.xlu0 %5790, %v6710_v35  }
 0x28d   :  { %8827 = vst [vmem:[#allocation128_spill] sm:$0xff] %v6872_v3  ;;  %v8666_v3 = vmov 22  }
 0x28e   :  { %2868 = vperm.xlu1 %5780, %v6878_v14  }
 0x290   :  { %v6881_v13 = vpop.permute.xlu1 %2454  ;;  %3467 = vperm.xlu0 %5790, %v6718_v28  }
 0x291   :  { %8828 = vst [vmem:[#allocation129_spill] sm:$0xff] %v6881_v13 }
 0x292   :  { %5782 = vset.pattern.permute.xlu1 %v8802_v34 }
 0x293   :  { %3011 = vperm.xlu1 %5782, %v6863_v23  }
 0x294   :  { %v6886_v39 = vpop.permute.xlu1 %2752  ;;  %5793 = vset.pattern.permute.xlu0 %v8666_v3  ;;  %v8831_v3 = vmov 19  }
 0x295   :  { %8829 = vst [vmem:[#allocation130_spill] sm:$0xff] %v6886_v39  ;;  %3595 = vperm.xlu0 %5793, %v6731_v38   ;;  %v6906_v39 = vpop.permute.xlu0 %1119 }
 0x297   :  { %3205 = vrot.lane.b32.xlu1 %v6497_v43, %s5875_s20 }
 0x298   :  { %v6892_v11 = vpop.permute.xlu1 %672 }
 0x299   :  { %3604 = vperm.xlu0 %5793, %v6743_v61   ;;  %v6918_v57 = vpop.permute.xlu0 %1417 }
 0x29b   :  { %3017 = vperm.xlu1 %5782, %v6878_v14  }
 0x29c   :  { %v6896_v13 = vpop.permute.xlu1 %970 }
 0x29d   :  { %3610 = vperm.xlu0 %5793, %v6710_v35  }
 0x29f   :  { %3354 = vrot.lane.b32.xlu1 %v6497_v43, %s5881_s23 }
 0x2a0   :  { %v6901_v34 = vpop.permute.xlu1 %1268  ;;  %5783 = vset.pattern.permute.xlu1 %v8831_v3 }
 0x2a1   :  { %8830 = vst [vmem:[#allocation131_spill] sm:$0xff] %v6901_v34  ;;  %3616 = vperm.xlu0 %5793, %v6718_v28  }
 0x2a3   :  { %3148 = vperm.xlu1 %5783, %v6731_v38  }
 0x2a4   :  { %v6908_v21 = vpop.permute.xlu1 %1566 }
 0x2a5   :  { %8832 = vst [vmem:[#allocation132_spill] sm:$0xff] %v6908_v21  ;;  %3799 = vrot.lane.b32.xlu0 %v6503_v55, %s5882_s25  ;;  %v6923_v21 = vld [vmem:[%s8591_s1 + $0x10] sm:$0xff] }
 0x2a6   :  { %5796 = vset.pattern.permute.xlu0 %v8673_v48  ;;  %v6931_v48 = vpop.permute.xlu0 %670 }
 0x2a7   :  { %3352 = vrot.lane.b32.xlu1 %v6503_v55, %s5881_s23 }
 0x2a8   :  { %v6915_v34 = vpop.permute.xlu1 %1715 }
 0x2a9   :  { %8833 = vst [vmem:[#allocation133_spill] sm:$0xff] %v6915_v34  ;;  %3747 = vperm.xlu0 %5796, %v6778_v12  }
 0x2ab   :  { %3154 = vperm.xlu1 %5783, %v6923_v21  }
 0x2ac   :  { %v6926_v22 = vpop.permute.xlu1 %1864 }
 0x2ad   :  { %8834 = vst [vmem:[#allocation134_spill] sm:$0xff] %v6926_v22  ;;  %3753 = vperm.xlu0 %5796, %v6743_v61   ;;  %v6942_v22 = vpop.permute.xlu0 %968 }
 0x2af   :  { %3201 = vrot.lane.b32.xlu1 %v6483_v4, %s5875_s20 }
 0x2b0   :  { %v6933_v34 = vpop.permute.xlu1 %2013  ;;  %5785 = vset.pattern.permute.xlu1 %v8836_v8 }
 0x2b1   :  { %8835 = vst [vmem:[#allocation135_spill] sm:$0xff] %v6933_v34  ;;  %3795 = vrot.lane.b32.xlu0 %v6530_v32, %s5882_s25  ;;  %v6950_v34 = vpop.permute.xlu0 %1266 }
 0x2b2   :  { %8839 = vst [vmem:[#allocation138_spill] sm:$0xff] %v6950_v34 }
 0x2b3   :  { %3300 = vperm.xlu1 %5785, %v6778_v12  }
 0x2b4   :  { %v6939_v58 = vpop.permute.xlu1 %2162 }
 0x2b5   :  { %8837 = vst [vmem:[#allocation136_spill] sm:$0xff] %v6939_v58  ;;  %3759 = vperm.xlu0 %5796, %v6710_v35   ;;  %v8685_v58 = vmov 24  }
 0x2b7   :  { %3303 = vperm.xlu1 %5785, %v6923_v21  }
 0x2b8   :  { %v6945_v0 = vpop.permute.xlu1 %2311 }
 0x2b9   :  { %8838 = vst [vmem:[#allocation137_spill] sm:$0xff] %v6945_v0  ;;  %3765 = vperm.xlu0 %5796, %v6718_v28   ;;  %v6960_v0 = vpop.permute.xlu0 %1713 }
 0x2bb   :  { %3350 = vrot.lane.b32.xlu1 %v6483_v4, %s5881_s23 }
 0x2bc   :  { %v6952_v19 = vpop.permute.xlu1 %2460  ;;  %5786 = vset.pattern.permute.xlu1 %v8831_v3 }
 0x2bd   :  { %8840 = vst [vmem:[#allocation139_spill] sm:$0xff] %v6952_v19  ;;  %5799 = vset.pattern.permute.xlu0 %v8685_v58  ;;  %v6969_v3 = vpop.permute.xlu0 %2011 }
 0x2be   :  { %3893 = vperm.xlu0 %5799, %v6731_v38  }
 0x2bf   :  { %3160 = vperm.xlu1 %5786, %v6863_v23  }
 0x2c0   :  { %v6958_v29 = vpop.permute.xlu1 %2609 }
 0x2c1   :  { %8841 = vst [vmem:[#allocation140_spill] sm:$0xff] %v6958_v29  ;;  %v6978_v29 = vpop.permute.xlu0 %2309 }
 0x2c2   :  { %3902 = vperm.xlu0 %5799, %v6743_v61  }
 0x2c3   :  { %3348 = vrot.lane.b32.xlu1 %v6530_v32, %s5881_s23 }
 0x2c4   :  { %v6965_v34 = vpop.permute.xlu1 %2758 }
 0x2c5   :  { %8842 = vst [vmem:[#allocation141_spill] sm:$0xff] %v6965_v34  ;;  %v8692_v34 = vmov 26  }
 0x2c6   :  { %3908 = vperm.xlu0 %5799, %v6710_v35  }
 0x2c7   :  { %3166 = vperm.xlu1 %5786, %v6878_v14  }
 0x2c8   :  { %v6971_v58 = vpop.permute.xlu1 %2907 }
 0x2c9   :  { %8843 = vst [vmem:[#allocation142_spill] sm:$0xff] %v6971_v58 }
 0x2ca   :  { %3914 = vperm.xlu0 %5799, %v6718_v28  }
 0x2cb   :  { %5788 = vset.pattern.permute.xlu1 %v8836_v8  ;;  %v6987_v8 = vpop.permute.xlu0 %2607 }
 0x2cc   :  { %v6975_v19 = vpop.permute.xlu1 %3056  ;;  %3309 = vperm.xlu1 %5788, %v6863_v23   ;;  %8845 = vst [vmem:[#allocation144_spill] sm:$0xff] %v6987_v8 }
 0x2cd   :  { %8844 = vst [vmem:[#allocation143_spill] sm:$0xff] %v6975_v19 }
 0x2ce   :  { %4097 = vrot.lane.b32.xlu0 %v6503_v55, %s5885_s28 }
 0x2cf   :  { %5802 = vset.pattern.permute.xlu0 %v8692_v34  ;;  %v8695_v34 = vmov 25  }
 0x2d0   :  { %3503 = vrot.lane.b32.xlu1 %v6497_v43, %s5878_s15  ;;  %v452_v58 = vpop.permute.xlu1 %451 }
 0x2d1   :  { %5239 = vmatprep.subr.bf16.mxu0 %v452_v58 }
 0x2d2   :  { %4191 = vperm.xlu0 %5802, %v6731_v38   ;;  %5240 = vmatpush3.bf16.msra.mxu0 %v452_v58  ;;  %v4666_v58 = vsel %vm417_vm2, 1.0, %v8704_v1  ;;  %vm793_vm2 = vcmp.eq.s32.totalorder %v6238_v63, %v6105_v40  ;;  %v662_v63 = vpack.c.bf16 %v4681_v15, %v4680_v53  ;;  %v8855_v15 = vld [vmem:[#allocation8_spill] sm:$0xff] }
 0x2d3   :  { %5241 = vmatprep.subr.bf16.mxu0 %v6736_v31  ;;  %v440_v8 = vpack.c.bf16 %v4667_v49, %v4666_v58  ;;  %v4695_v58 = vsel %vm790_vm9, 1.0, %v8704_v1  ;;  %v813_v49 = vpack.c.bf16 %v4697_v44, %v4696_v36  ;;  %v4698_v46 = vsel %vm793_vm2, 1.0, %v8704_v1  ;;  %v8849_v44 = vld [vmem:[#allocation14_spill] sm:$0xff] }
 0x2d4   :  { %3315 = vperm.xlu1 %5788, %v6878_v14   ;;  %v820_v19 = vpop.permute.xlu1 %819  ;;  %vm641_vm9 = vcmp.eq.s32.totalorder %v6150_v56, %v6105_v40  ;;  %vm645_vm2 = vcmp.eq.s32.totalorder %v6195_v26, %v6105_v40  ;;  %v4721_v26 = vsel %vm1090_vm15, 1.0, %v8704_v1  ;;  %vm1384_vm10 = vcmp.eq.s32.totalorder %v8849_v44, %v6105_v40  ;;  %v8867_v44 = vld [vmem:[#allocation7_spill] sm:$0xff] }
 0x2d5   :  { %5287 = vmatprep.subr.bf16.mxu1 %v820_v19  ;;  %v4683_v16 = vsel %vm641_vm9, 1.0, %v8704_v1  ;;  %v4687_v20 = vsel %vm645_vm2, 1.0, %v8704_v1  ;;  %vm940_vm15 = vcmp.eq.s32.totalorder %v8855_v15, %v6105_v40 }
 0x2d6   :  { %4200 = vperm.xlu0 %5802, %v6743_v61   ;;  %5242 = vmatpush3.bf16.msra.mxu0 %v6736_v31  ;;  %v8846_v31 = vmov 21  }
 0x2d7   :  { %5288 = vmatpush3.bf16.msra.mxu1 %v820_v19  ;;  %5243 = vmatprep.subr.bf16.mxu0 %v6840_v24  ;;  %v7015_v19 = vpop.permute.xlu0 %2905 }
 0x2d8   :  { %5289 = vmatprep.subr.bf16.mxu1 %v6748_v59  ;;  %3652 = vrot.lane.b32.xlu1 %v6497_v43, %s5887_s29  ;;  %v7006_v50 = vpop.permute.xlu1 %1117 }
 0x2d9   :  { %5789 = vset.pattern.permute.xlu1 %v8846_v31 }
 0x2da   :  { %5804 = vset.pattern.permute.xlu0 %v8695_v34  ;;  %5244 = vmatpush3.bf16.msra.mxu0 %v6840_v24  ;;  %v4694_v24 = vsel %vm789_vm8, 1.0, %v8704_v1  ;;  %vm640_vm8 = vcmp.eq.s32.totalorder %v6144_v54, %v6105_v40  ;;  %v8958_v34 = vld [vmem:[#allocation124_spill] sm:$0xff] }
 0x2db   :  { %5290 = vmatpush3.bf16.msra.mxu1 %v6748_v59  ;;  %4045 = vperm.xlu0 %5804, %v6778_v12   ;;  %v7039_v59 = vpop.permute.xlu0 %2865  ;;  %v812_v52 = vpack.c.bf16 %v4695_v58, %v4694_v24  ;;  %v4682_v56 = vsel %vm640_vm8, 1.0, %v8704_v1  ;;  %vm1091_vm8 = vcmp.eq.s32.totalorder %v6340_v41, %v6105_v40  ;;  %v8851_v41 = vld [vmem:[#allocation104_spill] sm:$0xff] }
 0x2dc   :  { %5269 = vmatprep.subr.bf16.mxu0 %v6892_v11  ;;  %5291 = vmatprep.subr.bf16.mxu1 %v6845_v42  ;;  %v7027_v27 = vpop.permute.xlu1 %1415  ;;  %v663_v24 = vpack.c.bf16 %v4683_v16, %v4682_v56  ;;  %v8857_v56 = vld [vmem:[#allocation107_spill] sm:$0xff] }
 0x2dd   :  { %3446 = vperm.xlu1 %5789, %v6731_v38   ;;  %5246 = vmatmul.mubr.msk.bf16.vlgmr.msra.gmra.mxu0 %vm459_vm4, %v440_v8  ;;  %v4670_v8 = vsel %vm421_vm12, 1.0, %v8704_v1  ;;  %vm1087_vm12 = vcmp.eq.s32.totalorder %v6324_v33, %v6105_v40  ;;  %v664_v33 = vpack.c.bf16 %v4685_v62, %v4684_v30  ;;  %v8859_v62 = vld [vmem:[#allocation17_spill] sm:$0xff]  ;;  %v8860_v30 = vld [vmem:[#allocation24_spill] sm:$0xff] }
 0x2de   :  { %5249 = vmatprep.mubr.msk.bf16.mxu0 %vm459_vm4, %v441_v18  ;;  %5270 = vmatpush3.bf16.msra.mxu0 %v6892_v11  ;;  %v4671_v11 = vsel %vm422_vm13, 1.0, %v8704_v1  ;;  %vm1088_vm13 = vcmp.eq.s32.totalorder %v6366_v17, %v6105_v40  ;;  %v4718_v45 = vsel %vm1087_vm12, 1.0, %v8704_v1  ;;  %v4720_v17 = vsel %vm1089_vm14, 1.0, %v8704_v1 }
 0x2df   :  { %5292 = vmatpush3.bf16.msra.mxu1 %v6845_v42  ;;  %4051 = vperm.xlu0 %5804, %v6743_v61   ;;  %v442_v42 = vpack.c.bf16 %v4671_v11, %v4670_v8  ;;  %v7071_v61 = vpop.permute.xlu0 %2871  ;;  %v1111_v58 = vpack.c.bf16 %v4721_v26, %v4720_v17  ;;  %v8852_v8 = vld [vmem:[#allocation2_spill] sm:$0xff]  ;;  %v4722_v11 = vsel %vm1091_vm8, 1.0, %v8704_v1  ;;  %vm1385_vm2 = vcmp.eq.s32.totalorder %v8859_v62, %v6105_v40 }
 0x2e0   :  { %5271 = vmatprep.subr.bf16.mxu0 %v6931_v48  ;;  %5317 = vmatprep.subr.bf16.mxu1 %v6906_v39  ;;  %v7051_v7 = vpop.permute.xlu1 %1564  ;;  %vm938_vm12 = vcmp.eq.s32.totalorder %v8852_v8, %v6105_v40 }
 0x2e1   :  { %3650 = vrot.lane.b32.xlu1 %v6503_v55, %s5887_s29 }
 0x2e2   :  { %5294 = vmatmul.mubr.msk.bf16.vlgmr.msra.gmra.mxu1 %vm459_vm4, %v812_v52  ;;  %5272 = vmatpush3.bf16.msra.mxu0 %v6931_v48  ;;  %v4699_v48 = vsel %vm794_vm3, 1.0, %v8704_v1  ;;  %vm644_vm3 = vcmp.eq.s32.totalorder %v6299_v10, %v6105_v40  ;;  %v8850_v52 = vld [vmem:[#allocation22_spill] sm:$0xff] }
 0x2e3   :  { %5297 = vmatprep.mubr.msk.bf16.mxu1 %vm459_vm4, %v813_v49  ;;  %5318 = vmatpush3.bf16.msra.mxu1 %v6906_v39  ;;  %v4717_v39 = vsel %vm1086_vm6, 1.0, %v8704_v1  ;;  %v814_v54 = vpack.c.bf16 %v4699_v48, %v4698_v46  ;;  %vm936_vm6 = vcmp.eq.s32.totalorder %v6247_v6, %v6105_v40  ;;  %v4686_v6 = vsel %vm644_vm3, 1.0, %v8704_v1 }
 0x2e4   :  { %4093 = vrot.lane.b32.xlu0 %v6530_v32, %s5885_s28  ;;  %5273 = vmatprep.subr.bf16.mxu0 %v6734_v37  ;;  %v7080_v51 = vpop.permute.xlu1 %1862  ;;  %v1109_v9 = vpack.c.bf16 %v4717_v39, %v4716_v5  ;;  %v665_v36 = vpack.c.bf16 %v4687_v20, %v4686_v6  ;;  %vm1383_vm11 = vcmp.eq.s32.totalorder %v8850_v52, %v6105_v40  ;;  %v4706_v48 = vsel %vm938_vm12, 1.0, %v8704_v1  ;;  %v8863_v20 = vld [vmem:[#allocation131_spill] sm:$0xff]  ;;  %v8864_v6 = vld [vmem:[#allocation126_spill] sm:$0xff]  ;;  %v8868_v52 = vld [vmem:[#allocation16_spill] sm:$0xff] }
 0x2e5   :  { %5319 = vmatprep.subr.bf16.mxu1 %v7006_v50  ;;  %3452 = vperm.xlu1 %5789, %v6923_v21   ;;  %vm1386_vm3 = vcmp.eq.s32.totalorder %v8860_v30, %v6105_v40  ;;  %v8876_v30 = vld [vmem:[#allocation9_spill] sm:$0xff] }
 0x2e6   :  { %5250 = vmatmul.mubr.msk.bf16.gmra.mxu0 %vm459_vm4, %v442_v42  ;;  %v4741_v42 = vsel %vm1384_vm10, 1.0, %v8704_v1  ;;  %vm1234_vm10 = vcmp.eq.s32.totalorder %v8867_v44, %v6105_v40 }
 0x2e7   :  { %5274 = vmatpush3.bf16.msra.mxu0 %v6734_v37  ;;  %5277 = vmatprep.mubr.msk.bf16.mxu0 %vm459_vm4, %v662_v63  ;;  %v7110_v37 = vpop.permute.xlu0 %2999  ;;  %v4740_v63 = vsel %vm1383_vm11, 1.0, %v8704_v1  ;;  %vm1235_vm11 = vcmp.eq.s32.totalorder %v8868_v52, %v6105_v40  ;;  %v8883_v52 = vld [vmem:[#allocation33_spill] sm:$0xff] }
 0x2e8   :  { %5320 = vmatpush3.bf16.msra.mxu1 %v7006_v50  ;;  %5275 = vmatprep.subr.bf16.mxu0 %v6783_v47  ;;  %v8847_v50 = vmov 22   ;;  %v7118_v18 = vpop.permute.xlu1 %2160 }
 0x2e9   :  { %5321 = vmatprep.subr.bf16.mxu1 %v6755_v60  ;;  %3499 = vrot.lane.b32.xlu1 %v6483_v4, %s5878_s15 }
 0x2ea   :  { %5298 = vmatmul.mubr.msk.bf16.gmra.mxu1 %vm459_vm4, %v814_v54  ;;  %5791 = vset.pattern.permute.xlu1 %v8847_v50  ;;  %v8856_v54 = vld [vmem:[#allocation112_spill] sm:$0xff] }
 0x2eb   :  { %5276 = vmatpush3.bf16.msra.mxu0 %v6783_v47  ;;  %5325 = vmatprep.mubr.msk.bf16.mxu1 %vm459_vm4, %v1109_v9  ;;  %v4719_v47 = vsel %vm1088_vm13, 1.0, %v8704_v1  ;;  %v7146_v10 = vpop.permute.xlu0 %3008  ;;  %v8858_v9 = vmov 26  }
 0x2ec   :  { %5322 = vmatpush3.bf16.msra.mxu1 %v6755_v60  ;;  %5301 = vmatprep.subr.bf16.mxu0 %v6896_v13  ;;  %v7152_v2 = vpop.permute.xlu1 %2458  ;;  %v4704_v60 = vsel %vm936_vm6, 1.0, %v8704_v1 }
 0x2ed   :  { %5323 = vmatprep.subr.bf16.mxu1 %v6852_v25  ;;  %3598 = vperm.xlu1 %5791, %v6778_v12   ;;  %v1110_v12 = vpack.c.bf16 %v4719_v47, %v4718_v45  ;;  %v8862_v45 = vld [vmem:[#allocation26_spill] sm:$0xff] }
 0x2ee   :  { %5278 = vmatmul.mubr.msk.bf16.vlgmr.msra.gmra.mxu0 %vm459_vm4, %v663_v24  ;;  %4057 = vperm.xlu0 %5804, %v6710_v35  }
 0x2ef   :  { %5281 = vmatprep.mubr.msk.bf16.mxu0 %vm459_vm4, %v664_v33  ;;  %5302 = vmatpush3.bf16.msra.mxu0 %v6896_v13  ;;  %v4705_v13 = vsel %vm937_vm7, 1.0, %v8704_v1  ;;  %v7179_v53 = vpop.permute.xlu0 %3014  ;;  %v8861_v33 = vld [vmem:[#allocation19_spill] sm:$0xff]  ;;  %vm1388_vm7 = vcmp.eq.s32.totalorder %v8862_v45, %v6105_v40  ;;  %v8879_v45 = vld [vmem:[#allocation18_spill] sm:$0xff] }
 0x2f0   :  { %5324 = vmatpush3.bf16.msra.mxu1 %v6852_v25  ;;  %5303 = vmatprep.subr.bf16.mxu0 %v6942_v22  ;;  %v8848_v25 = vld [vmem:[#allocation15_spill] sm:$0xff]  ;;  %v7196_v46 = vpop.permute.xlu1 %2756  ;;  %vm1387_vm6 = vcmp.eq.s32.totalorder %v8861_v33, %v6105_v40  ;;  %v8878_v33 = vld [vmem:[#allocation12_spill] sm:$0xff] }
 0x2f1   :  { %5349 = vmatprep.subr.bf16.mxu1 %v6918_v57  ;;  %3601 = vperm.xlu1 %5791, %v6923_v21   ;;  %vm1092_vm9 = vcmp.eq.s32.totalorder %v8848_v25, %v6105_v40  ;;  %v4744_v25 = vsel %vm1387_vm6, 1.0, %v8704_v1  ;;  %vm1239_vm6 = vcmp.eq.s32.totalorder %v8878_v33, %v6105_v40 }
 0x2f2   :  { %4063 = vperm.xlu0 %5804, %v6718_v28   ;;  %v960_v28 = vpack.c.bf16 %v4705_v13, %v4704_v60  ;;  %v4723_v49 = vsel %vm1092_vm9, 1.0, %v8704_v1  ;;  %v8866_v60 = vld [vmem:[#allocation10_spill] sm:$0xff]  ;;  %v4742_v13 = vsel %vm1385_vm2, 1.0, %v8704_v1  ;;  %vm1236_vm2 = vcmp.eq.s32.totalorder %v8876_v30, %v6105_v40 }
 0x2f3   :  { %5326 = vmatmul.mubr.msk.bf16.vlgmr.msra.gmra.mxu1 %vm459_vm4, %v1110_v12  ;;  %5304 = vmatpush3.bf16.msra.mxu0 %v6942_v22  ;;  %v8853_v22 = vld [vmem:[#allocation3_spill] sm:$0xff]  ;;  %v1112_v5 = vpack.c.bf16 %v4723_v49, %v4722_v11  ;;  %v7226_v47 = vpop.permute.xlu0 %3020  ;;  %v8865_v12 = vld [vmem:[#allocation6_spill] sm:$0xff]  ;;  %vm942_vm9 = vcmp.eq.s32.totalorder %v8866_v60, %v6105_v40  ;;  %v8870_v11 = vld [vmem:[#allocation133_spill] sm:$0xff] }
 0x2f4   :  { %5329 = vmatprep.mubr.msk.bf16.mxu1 %vm459_vm4, %v1111_v58  ;;  %5350 = vmatpush3.bf16.msra.mxu1 %v6918_v57  ;;  %vm939_vm13 = vcmp.eq.s32.totalorder %v8853_v22, %v6105_v40  ;;  %v8854_v57 = vld [vmem:[#allocation5_spill] sm:$0xff]  ;;  %v7230_v26 = vpop.permute.xlu1 %3054  ;;  %vm943_vm8 = vcmp.eq.s32.totalorder %v8865_v12, %v6105_v40  ;;  %v4743_v58 = vsel %vm1386_vm3, 1.0, %v8704_v1  ;;  %v4710_v8 = vsel %vm942_vm9, 1.0, %v8704_v1  ;;  %v8881_v12 = vld [vmem:[#allocation106_spill] sm:$0xff] }
 0x2f5   :  { %5305 = vmatprep.subr.bf16.mxu0 %v8851_v41  ;;  %5351 = vmatprep.subr.bf16.mxu1 %v7027_v27  ;;  %vm941_vm14 = vcmp.eq.s32.totalorder %v8854_v57, %v6105_v40  ;;  %v4707_v39 = vsel %vm939_vm13, 1.0, %v8704_v1  ;;  %v1408_v22 = vpack.c.bf16 %v4743_v58, %v4742_v13  ;;  %v4730_v13 = vsel %vm1236_vm2, 1.0, %v8704_v1 }
 0x2f6   :  { %3648 = vrot.lane.b32.xlu1 %v6483_v4, %s5887_s29  ;;  %5282 = vmatmul.mubr.msk.bf16.gmra.mxu0 %vm459_vm4, %v665_v36  ;;  %v4709_v16 = vsel %vm941_vm14, 1.0, %v8704_v1  ;;  %v961_v24 = vpack.c.bf16 %v4707_v39, %v4706_v48  ;;  %v4745_v36 = vsel %vm1388_vm7, 1.0, %v8704_v1  ;;  %v8871_v48 = vld [vmem:[#allocation21_spill] sm:$0xff]  ;;  %v8872_v39 = vld [vmem:[#allocation28_spill] sm:$0xff]  ;;  %vm1238_vm7 = vcmp.eq.s32.totalorder %v8879_v45, %v6105_v40 }
 0x2f7   :  { %5306 = vmatpush3.bf16.msra.mxu0 %v8851_v41  ;;  %5309 = vmatprep.mubr.msk.bf16.mxu0 %vm459_vm4, %v960_v28  ;;  %v8869_v28 = vld [vmem:[#allocation138_spill] sm:$0xff]  ;;  %v4711_v41 = vsel %vm943_vm8, 1.0, %v8704_v1  ;;  %v1409_v57 = vpack.c.bf16 %v4745_v36, %v4744_v25  ;;  %v7265_v15 = vpop.permute.xlu0 %3203  ;;  %vm1389_vm12 = vcmp.eq.s32.totalorder %v8871_v48, %v6105_v40  ;;  %vm1390_vm13 = vcmp.eq.s32.totalorder %v8872_v39, %v6105_v40  ;;  %v8888_v48 = vld [vmem:[#allocation13_spill] sm:$0xff]  ;;  %v8889_v39 = vld [vmem:[#allocation20_spill] sm:$0xff] }
 0x2f8   :  { %5352 = vmatpush3.bf16.msra.mxu1 %v7027_v27  ;;  %5792 = vset.pattern.permute.xlu1 %v8846_v31  ;;  %v4708_v27 = vsel %vm940_vm15, 1.0, %v8704_v1  ;;  %v1407_v31 = vpack.c.bf16 %v4741_v42, %v4740_v63  ;;  %v4728_v42 = vsel %vm1234_vm10, 1.0, %v8704_v1  ;;  %v4729_v63 = vsel %vm1235_vm11, 1.0, %v8704_v1 }
 0x2f9   :  { %5307 = vmatprep.subr.bf16.mxu0 %v8856_v54  ;;  %5353 = vmatprep.subr.bf16.mxu1 %v8857_v56  ;;  %v962_v17 = vpack.c.bf16 %v4709_v16, %v4708_v27  ;;  %v1258_v27 = vpack.c.bf16 %v4729_v63, %v4728_v42  ;;  %v4747_v62 = vsel %vm1390_vm13, 1.0, %v8704_v1  ;;  %v4733_v25 = vsel %vm1239_vm6, 1.0, %v8704_v1  ;;  %v8887_v42 = vld [vmem:[#allocation118_spill] sm:$0xff] }
 0x2fa   :  { %3458 = vperm.xlu1 %5792, %v6863_v23   ;;  %5807 = vset.pattern.permute.xlu0 %v8858_v9  ;;  %v4732_v36 = vsel %vm1238_vm7, 1.0, %v8704_v1  ;;  %vm1683_vm9 = vcmp.eq.s32.totalorder %v8883_v52, %v6105_v40  ;;  %vm1240_vm13 = vcmp.eq.s32.totalorder %v8889_v39, %v6105_v40 }
 0x2fb   :  { %5330 = vmatmul.mubr.msk.bf16.gmra.mxu1 %vm459_vm4, %v1112_v5  ;;  %5308 = vmatpush3.bf16.msra.mxu0 %v8856_v54  ;;  %v8873_v5 = vld [vmem:[#allocation38_spill] sm:$0xff]  ;;  %v8874_v54 = vld [vmem:[#allocation31_spill] sm:$0xff] }
 0x2fc   :  { %5354 = vmatpush3.bf16.msra.mxu1 %v8857_v56  ;;  %5357 = vmatprep.mubr.msk.bf16.mxu1 %vm459_vm4, %v1407_v31  ;;  %vm1682_vm14 = vcmp.eq.s32.totalorder %v8873_v5, %v6105_v40  ;;  %vm1681_vm15 = vcmp.eq.s32.totalorder %v8874_v54, %v6105_v40  ;;  %v8875_v56 = vld [vmem:[#allocation105_spill] sm:$0xff]  ;;  %v4746_v31 = vsel %vm1389_vm12, 1.0, %v8704_v1  ;;  %vm1241_vm12 = vcmp.eq.s32.totalorder %v8888_v48, %v6105_v40 }
 0x2fd   :  { %5333 = vmatprep.subr.bf16.mxu0 %v8863_v20  ;;  %5355 = vmatprep.subr.bf16.mxu1 %v8864_v6  ;;  %v4766_v5 = vsel %vm1683_vm9, 1.0, %v8704_v1 }
 0x2fe   :  { %3646 = vrot.lane.b32.xlu1 %v6530_v32, %s5887_s29  ;;  %5310 = vmatmul.mubr.msk.bf16.vlgmr.msra.gmra.mxu0 %vm459_vm4, %v961_v24  ;;  %v8877_v24 = vld [vmem:[#allocation11_spill] sm:$0xff] }
 0x2ff   :  { %5313 = vmatprep.mubr.msk.bf16.mxu0 %vm459_vm4, %v962_v17  ;;  %5334 = vmatpush3.bf16.msra.mxu0 %v8863_v20  ;;  %vm1237_vm3 = vcmp.eq.s32.totalorder %v8877_v24, %v6105_v40  ;;  %v4764_v17 = vsel %vm1681_vm15, 1.0, %v8704_v1  ;;  %v7308_v20 = vpop.permute.xlu0 %3151  ;;  %v8892_v24 = vld [vmem:[#allocation135_spill] sm:$0xff] }
 0x300   :  { %5356 = vmatpush3.bf16.msra.mxu1 %v8864_v6  ;;  %5335 = vmatprep.subr.bf16.mxu0 %v8869_v28  ;;  %v8880_v6 = vld [vmem:[#allocation114_spill] sm:$0xff]  ;;  %v4731_v58 = vsel %vm1237_vm3, 1.0, %v8704_v1 }
 0x301   :  { %5381 = vmatprep.subr.bf16.mxu1 %v8870_v11  ;;  %v7262_v49 = vpop.permute.xlu1 %2862  ;;  %4206 = vperm.xlu0 %5807, %v6710_v35   ;;  %v963_v35 = vpack.c.bf16 %v4711_v41, %v4710_v8  ;;  %v8884_v41 = vld [vmem:[#allocation42_spill] sm:$0xff]  ;;  %v8885_v8 = vld [vmem:[#allocation39_spill] sm:$0xff] }
 0x302   :  { %3464 = vperm.xlu1 %5792, %v6878_v14   ;;  %vm1686_vm10 = vcmp.eq.s32.totalorder %v8884_v41, %v6105_v40  ;;  %vm1685_vm11 = vcmp.eq.s32.totalorder %v8885_v8, %v6105_v40  ;;  %v8899_v41 = vld [vmem:[#allocation25_spill] sm:$0xff]  ;;  %v8900_v8 = vld [vmem:[#allocation27_spill] sm:$0xff] }
 0x303   :  { %5358 = vmatmul.mubr.msk.bf16.vlgmr.msra.gmra.mxu1 %vm459_vm4, %v1408_v22  ;;  %5336 = vmatpush3.bf16.msra.mxu0 %v8869_v28  ;;  %v1259_v28 = vpack.c.bf16 %v4731_v58, %v4730_v13  ;;  %v8886_v22 = vld [vmem:[#allocation132_spill] sm:$0xff]  ;;  %v4769_v54 = vsel %vm1686_vm10, 1.0, %v8704_v1  ;;  %v8895_v58 = vld [vmem:[#allocation54_spill] sm:$0xff]  ;;  %vm1535_vm9 = vcmp.eq.s32.totalorder %v8900_v8, %v6105_v40  ;;  %v8913_v8 = vld [vmem:[#allocation35_spill] sm:$0xff] }
 0x304   :  { %5361 = vmatprep.mubr.msk.bf16.mxu1 %vm459_vm4, %v1409_v57  ;;  %5382 = vmatpush3.bf16.msra.mxu1 %v8870_v11  ;;  %v1260_v11 = vpack.c.bf16 %v4733_v25, %v4732_v36  ;;  %v7335_v57 = vpop.permute.xlu0 %3157  ;;  %vm1980_vm6 = vcmp.eq.s32.totalorder %v8895_v58, %v6105_v40  ;;  %v8896_v25 = vld [vmem:[#allocation47_spill] sm:$0xff]  ;;  %v8897_v36 = vld [vmem:[#allocation109_spill] sm:$0xff] }
 0x305   :  { %5337 = vmatprep.subr.bf16.mxu0 %v8875_v56  ;;  %5383 = vmatprep.subr.bf16.mxu1 %v6960_v0  ;;  %v7284_v16 = vpop.permute.xlu1 %3050  ;;  %vm1979_vm7 = vcmp.eq.s32.totalorder %v8896_v25, %v6105_v40  ;;  %v8911_v58 = vld [vmem:[#allocation29_spill] sm:$0xff]  ;;  %v8912_v25 = vld [vmem:[#allocation36_spill] sm:$0xff] }
 0x306   :  { %5794 = vset.pattern.permute.xlu1 %v8847_v50  ;;  %5314 = vmatmul.mubr.msk.bf16.gmra.mxu0 %vm459_vm4, %v963_v35  ;;  %v4765_v50 = vsel %vm1682_vm14, 1.0, %v8704_v1  ;;  %v4788_v48 = vsel %vm1979_vm7, 1.0, %v8704_v1 }
 0x307   :  { %3607 = vperm.xlu1 %5794, %v6863_v23   ;;  %5338 = vmatpush3.bf16.msra.mxu0 %v8875_v56  ;;  %v1410_v23 = vpack.c.bf16 %v4747_v62, %v4746_v31  ;;  %v1705_v44 = vpack.c.bf16 %v4765_v50, %v4764_v17  ;;  %v4768_v56 = vsel %vm1685_vm11, 1.0, %v8704_v1  ;;  %v8891_v31 = vld [vmem:[#allocation30_spill] sm:$0xff]  ;;  %v4734_v62 = vsel %vm1240_vm13, 1.0, %v8704_v1 }
 0x308   :  { %5341 = vmatprep.mubr.msk.bf16.mxu0 %vm459_vm4, %v1258_v27  ;;  %5384 = vmatpush3.bf16.msra.mxu1 %v6960_v0  ;;  %v8882_v0 = vld [vmem:[#allocation40_spill] sm:$0xff]  ;;  %v8890_v27 = vld [vmem:[#allocation23_spill] sm:$0xff]  ;;  %vm1533_vm15 = vcmp.eq.s32.totalorder %v8891_v31, %v6105_v40  ;;  %v1707_v45 = vpack.c.bf16 %v4769_v54, %v4768_v56 }
 0x309   :  { %5339 = vmatprep.subr.bf16.mxu0 %v8880_v6  ;;  %5385 = vmatprep.subr.bf16.mxu1 %v8881_v12  ;;  %v7314_v60 = vpop.permute.xlu1 %2868  ;;  %vm1684_vm8 = vcmp.eq.s32.totalorder %v8882_v0, %v6105_v40  ;;  %vm1532_vm14 = vcmp.eq.s32.totalorder %v8890_v27, %v6105_v40  ;;  %v4753_v17 = vsel %vm1533_vm15, 1.0, %v8704_v1  ;;  %v4755_v27 = vsel %vm1535_vm9, 1.0, %v8704_v1 }
 0x30a   :  { %v4767_v35 = vsel %vm1684_vm8, 1.0, %v8704_v1  ;;  %v4752_v50 = vsel %vm1532_vm14, 1.0, %v8704_v1  ;;  %vm1534_vm8 = vcmp.eq.s32.totalorder %v8899_v41, %v6105_v40 }
 0x30b   :  { %3801 = vrot.lane.b32.xlu1 %v6497_v43, %s5882_s25  ;;  %5362 = vmatmul.mubr.msk.bf16.gmra.mxu1 %vm459_vm4, %v1410_v23  ;;  %v1706_v30 = vpack.c.bf16 %v4767_v35, %v4766_v5  ;;  %v8893_v23 = vld [vmem:[#allocation44_spill] sm:$0xff]  ;;  %v1556_v0 = vpack.c.bf16 %v4753_v17, %v4752_v50  ;;  %v8904_v5 = vld [vmem:[#allocation110_spill] sm:$0xff]  ;;  %v4754_v56 = vsel %vm1534_vm8, 1.0, %v8704_v1  ;;  %v8908_v50 = vld [vmem:[#allocation55_spill] sm:$0xff] }
 0x30c   :  { %5340 = vmatpush3.bf16.msra.mxu0 %v8880_v6  ;;  %5386 = vmatpush3.bf16.msra.mxu1 %v8881_v12  ;;  %vm1688_vm2 = vcmp.eq.s32.totalorder %v8893_v23, %v6105_v40  ;;  %v8894_v6 = vld [vmem:[#allocation41_spill] sm:$0xff]  ;;  %v7371_v12 = vpop.permute.xlu0 %3199  ;;  %v8903_v35 = vld [vmem:[#allocation116_spill] sm:$0xff]  ;;  %vm1983_vm15 = vcmp.eq.s32.totalorder %v8908_v50, %v6105_v40  ;;  %v8909_v17 = vld [vmem:[#allocation134_spill] sm:$0xff] }
 0x30d   :  { %5389 = vmatprep.mubr.msk.bf16.mxu1 %vm459_vm4, %v1705_v44  ;;  %5365 = vmatprep.subr.bf16.mxu0 %v8886_v22  ;;  %vm1687_vm3 = vcmp.eq.s32.totalorder %v8894_v6, %v6105_v40  ;;  %v4792_v41 = vsel %vm1983_vm15, 1.0, %v8704_v1  ;;  %v8920_v50 = vld [vmem:[#allocation108_spill] sm:$0xff] }
 0x30e   :  { %5387 = vmatprep.subr.bf16.mxu1 %v8887_v42  ;;  %v7338_v63 = vpop.permute.xlu1 %3011  ;;  %v4770_v52 = vsel %vm1687_vm3, 1.0, %v8704_v1  ;;  %vm1539_vm3 = vcmp.eq.s32.totalorder %v8912_v25, %v6105_v40  ;;  %v8923_v25 = vld [vmem:[#allocation48_spill] sm:$0xff] }
 0x30f   :  { %3613 = vperm.xlu1 %5794, %v6878_v14   ;;  %5342 = vmatmul.mubr.msk.bf16.vlgmr.msra.gmra.mxu0 %vm459_vm4, %v1259_v28  ;;  %v4735_v14 = vsel %vm1241_vm12, 1.0, %v8704_v1  ;;  %v8898_v28 = vmov 23  }
 0x310   :  { %5345 = vmatprep.mubr.msk.bf16.mxu0 %vm459_vm4, %v1260_v11  ;;  %5366 = vmatpush3.bf16.msra.mxu0 %v8886_v22  ;;  %v1261_v13 = vpack.c.bf16 %v4735_v14, %v4734_v62  ;;  %v8901_v22 = vld [vmem:[#allocation32_spill] sm:$0xff]  ;;  %v8902_v11 = vld [vmem:[#allocation34_spill] sm:$0xff]  ;;  %v7409_v39 = vpop.permute.xlu0 %3163 }
 0x311   :  { %5388 = vmatpush3.bf16.msra.mxu1 %v8887_v42  ;;  %5367 = vmatprep.subr.bf16.mxu0 %v7051_v7  ;;  %vm1536_vm10 = vcmp.eq.s32.totalorder %v8901_v22, %v6105_v40  ;;  %vm1537_vm11 = vcmp.eq.s32.totalorder %v8902_v11, %v6105_v40  ;;  %v4789_v42 = vsel %vm1980_vm6, 1.0, %v8704_v1  ;;  %vm1831_vm6 = vcmp.eq.s32.totalorder %v8913_v8, %v6105_v40  ;;  %v8914_v22 = vld [vmem:[#allocation46_spill] sm:$0xff] }
 0x312   :  { %5413 = vmatprep.subr.bf16.mxu1 %v8892_v24  ;;  %v7361_v33 = vpop.permute.xlu1 %3205  ;;  %v4756_v31 = vsel %vm1536_vm10, 1.0, %v8704_v1  ;;  %v4757_v14 = vsel %vm1537_vm11, 1.0, %v8704_v1  ;;  %v2003_v62 = vpack.c.bf16 %v4789_v42, %v4788_v48  ;;  %vm1830_vm7 = vcmp.eq.s32.totalorder %v8914_v22, %v6105_v40 }
 0x313   :  { %3950 = vrot.lane.b32.xlu1 %v6497_v43, %s5889_s30  ;;  %v1558_v6 = vpack.c.bf16 %v4757_v14, %v4756_v31  ;;  %v4759_v48 = vsel %vm1539_vm3, 1.0, %v8704_v1  ;;  %v8916_v31 = vld [vmem:[#allocation60_spill] sm:$0xff]  ;;  %v8917_v14 = vld [vmem:[#allocation57_spill] sm:$0xff] }
 0x314   :  { %5390 = vmatmul.mubr.msk.bf16.vlgmr.msra.gmra.mxu1 %vm459_vm4, %v1706_v30  ;;  %5368 = vmatpush3.bf16.msra.mxu0 %v7051_v7  ;;  %v4771_v7 = vsel %vm1688_vm2, 1.0, %v8704_v1  ;;  %v8906_v30 = vld [vmem:[#allocation49_spill] sm:$0xff]  ;;  %vm1538_vm2 = vcmp.eq.s32.totalorder %v8911_v58, %v6105_v40  ;;  %vm1986_vm8 = vcmp.eq.s32.totalorder %v8916_v31, %v6105_v40  ;;  %vm1985_vm9 = vcmp.eq.s32.totalorder %v8917_v14, %v6105_v40 }
 0x315   :  { %5393 = vmatprep.mubr.msk.bf16.mxu1 %vm459_vm4, %v1707_v45  ;;  %5414 = vmatpush3.bf16.msra.mxu1 %v8892_v24  ;;  %vm1981_vm13 = vcmp.eq.s32.totalorder %v8906_v30, %v6105_v40  ;;  %v1557_v24 = vpack.c.bf16 %v4755_v27, %v4754_v56  ;;  %v8907_v45 = vld [vmem:[#allocation58_spill] sm:$0xff]  ;;  %v4758_v42 = vsel %vm1538_vm2, 1.0, %v8704_v1  ;;  %v4777_v56 = vsel %vm1831_vm6, 1.0, %v8704_v1  ;;  %v8922_v58 = vld [vmem:[#allocation37_spill] sm:$0xff] }
 0x316   :  { %5369 = vmatprep.subr.bf16.mxu0 %v8897_v36  ;;  %5415 = vmatprep.subr.bf16.mxu1 %v6969_v3  ;;  %v7383_v44 = vpop.permute.xlu1 %3017  ;;  %vm1984_vm14 = vcmp.eq.s32.totalorder %v8907_v45, %v6105_v40  ;;  %v4776_v27 = vsel %vm1830_vm7, 1.0, %v8704_v1  ;;  %v8919_v45 = vld [vmem:[#allocation63_spill] sm:$0xff] }
 0x317   :  { %5795 = vset.pattern.permute.xlu1 %v8898_v28  ;;  %5346 = vmatmul.mubr.msk.bf16.gmra.mxu0 %vm459_vm4, %v1261_v13  ;;  %v8910_v13 = vld [vmem:[#allocation120_spill] sm:$0xff]  ;;  %vm2277_vm11 = vcmp.eq.s32.totalorder %v8919_v45, %v6105_v40 }
 0x318   :  { %3744 = vperm.xlu1 %5795, %v6731_v38   ;;  %5370 = vmatpush3.bf16.msra.mxu0 %v8897_v36  ;;  %v1708_v38 = vpack.c.bf16 %v4771_v7, %v4770_v52  ;;  %v7443_v7 = vpop.permute.xlu0 %3169  ;;  %v4793_v52 = vsel %vm1984_vm14, 1.0, %v8704_v1  ;;  %v4812_v8 = vsel %vm2277_vm11, 1.0, %v8704_v1 }
 0x319   :  { %5373 = vmatprep.mubr.msk.bf16.mxu0 %vm459_vm4, %v1556_v0  ;;  %5416 = vmatpush3.bf16.msra.mxu1 %v6969_v3  ;;  %v8905_v3 = vld [vmem:[#allocation56_spill] sm:$0xff]  ;;  %v4790_v0 = vsel %vm1981_vm13, 1.0, %v8704_v1  ;;  %vm1833_vm13 = vcmp.eq.s32.totalorder %v8923_v25, %v6105_v40  ;;  %v8935_v25 = vld [vmem:[#allocation45_spill] sm:$0xff] }
 0x31a   :  { %5371 = vmatprep.subr.bf16.mxu0 %v8903_v35  ;;  %5417 = vmatprep.subr.bf16.mxu1 %v8904_v5  ;;  %v7413_v54 = vpop.permute.xlu1 %3354  ;;  %vm1982_vm12 = vcmp.eq.s32.totalorder %v8905_v3, %v6105_v40 }
 0x31b   :  { %v4791_v36 = vsel %vm1982_vm12, 1.0, %v8704_v1  ;;  %vm1832_vm12 = vcmp.eq.s32.totalorder %v8922_v58, %v6105_v40  ;;  %v8934_v58 = vld [vmem:[#allocation52_spill] sm:$0xff] }
 0x31c   :  { %3948 = vrot.lane.b32.xlu1 %v6503_v55, %s5889_s30  ;;  %5394 = vmatmul.mubr.msk.bf16.gmra.mxu1 %vm459_vm4, %v1708_v38  ;;  %v2004_v38 = vpack.c.bf16 %v4791_v36, %v4790_v0  ;;  %v7478_v3 = vpop.permute.xlu0 %3297  ;;  %v7501_v36 = vld [vmem:[%s8591_s1 + $0x8] sm:$0xff]  ;;  %v8924_v0 = vld [vmem:[#allocation50_spill] sm:$0xff] }
 0x31d   :  { %5372 = vmatpush3.bf16.msra.mxu0 %v8903_v35  ;;  %5418 = vmatpush3.bf16.msra.mxu1 %v8904_v5  ;;  %v8915_v35 = vld [vmem:[#allocation137_spill] sm:$0xff]  ;;  %v2005_v5 = vpack.c.bf16 %v4793_v52, %v4792_v41  ;;  %vm1835_vm14 = vcmp.eq.s32.totalorder %v8924_v0, %v6105_v40  ;;  %v8925_v52 = vld [vmem:[#allocation43_spill] sm:$0xff] }
 0x31e   :  { %5421 = vmatprep.mubr.msk.bf16.mxu1 %vm459_vm4, %v2003_v62  ;;  %5397 = vmatprep.subr.bf16.mxu0 %v8909_v17  ;;  %v7434_v23 = vpop.permute.xlu1 %3148  ;;  %v1559_v62 = vpack.c.bf16 %v4759_v48, %v4758_v42  ;;  %vm1834_vm15 = vcmp.eq.s32.totalorder %v8925_v52, %v6105_v40  ;;  %v8926_v48 = vld [vmem:[#allocation127_spill] sm:$0xff] }
 0x31f   :  { %5419 = vmatprep.subr.bf16.mxu1 %v8910_v13  ;;  %v4780_v31 = vsel %vm1834_vm15, 1.0, %v8704_v1 }
 0x320   :  { %3750 = vperm.xlu1 %5795, %v6923_v21   ;;  %5374 = vmatmul.mubr.msk.bf16.vlgmr.msra.gmra.mxu0 %vm459_vm4, %v1557_v24  ;;  %v8918_v24 = vld [vmem:[#allocation69_spill] sm:$0xff] }
 0x321   :  { %5377 = vmatprep.mubr.msk.bf16.mxu0 %vm459_vm4, %v1558_v6  ;;  %5398 = vmatpush3.bf16.msra.mxu0 %v8909_v17  ;;  %vm2278_vm10 = vcmp.eq.s32.totalorder %v8918_v24, %v6105_v40  ;;  %v4795_v17 = vsel %vm1986_vm8, 1.0, %v8704_v1  ;;  %v4794_v6 = vsel %vm1985_vm9, 1.0, %v8704_v1  ;;  %vm1837_vm8 = vcmp.eq.s32.totalorder %v8934_v58, %v6105_v40  ;;  %v8942_v58 = vld [vmem:[#allocation80_spill] sm:$0xff] }
 0x322   :  { %5420 = vmatpush3.bf16.msra.mxu1 %v8910_v13  ;;  %5399 = vmatprep.subr.bf16.mxu0 %v7080_v51  ;;  %v7457_v11 = vpop.permute.xlu1 %3352  ;;  %v8921_v13 = vmov 24   ;;  %v4813_v41 = vsel %vm2278_vm10, 1.0, %v8704_v1  ;;  %v2006_v42 = vpack.c.bf16 %v4795_v17, %v4794_v6  ;;  %v8933_v6 = vld [vmem:[#allocation122_spill] sm:$0xff]  ;;  %vm1836_vm9 = vcmp.eq.s32.totalorder %v8935_v25, %v6105_v40 }
 0x323   :  { %5445 = vmatprep.subr.bf16.mxu1 %v8915_v35  ;;  %v2301_v14 = vpack.c.bf16 %v4813_v41, %v4812_v8  ;;  %v8936_v41 = vld [vmem:[#allocation51_spill] sm:$0xff]  ;;  %v8937_v8 = vld [vmem:[#allocation62_spill] sm:$0xff]  ;;  %vm2575_vm15 = vcmp.eq.s32.totalorder %v8942_v58, %v6105_v40 }
 0x324   :  { %3797 = vrot.lane.b32.xlu1 %v6483_v4, %s5882_s25  ;;  %vm2129_vm10 = vcmp.eq.s32.totalorder %v8936_v41, %v6105_v40  ;;  %vm2128_vm11 = vcmp.eq.s32.totalorder %v8937_v8, %v6105_v40  ;;  %v8945_v41 = vld [vmem:[#allocation144_spill] sm:$0xff] }
 0x325   :  { %5422 = vmatmul.mubr.msk.bf16.vlgmr.msra.gmra.mxu1 %vm459_vm4, %v2004_v38  ;;  %5400 = vmatpush3.bf16.msra.mxu0 %v7080_v51  ;;  %v1854_v51 = vpack.c.bf16 %v4777_v56, %v4776_v27  ;;  %v8927_v38 = vld [vmem:[#allocation113_spill] sm:$0xff]  ;;  %v7525_v56 = vpop.permute.xlu0 %3306  ;;  %v4781_v27 = vsel %vm1835_vm14, 1.0, %v8704_v1  ;;  %v8947_v8 = vld [vmem:[#allocation64_spill] sm:$0xff] }
 0x326   :  { %5425 = vmatprep.mubr.msk.bf16.mxu1 %vm459_vm4, %v2005_v5  ;;  %5446 = vmatpush3.bf16.msra.mxu1 %v8915_v35  ;;  %v7482_v30 = vpop.permute.xlu1 %3154  ;;  %v4778_v35 = vsel %vm1832_vm12, 1.0, %v8704_v1  ;;  %v4779_v5 = vsel %vm1833_vm13, 1.0, %v8704_v1  ;;  %v1856_v17 = vpack.c.bf16 %v4781_v27, %v4780_v31  ;;  %v4782_v27 = vsel %vm1836_vm9, 1.0, %v8704_v1 }
 0x327   :  { %5401 = vmatprep.subr.bf16.mxu0 %v8920_v50  ;;  %5447 = vmatprep.subr.bf16.mxu1 %v6978_v29  ;;  %v1855_v45 = vpack.c.bf16 %v4779_v5, %v4778_v35  ;;  %v4783_v5 = vsel %vm1837_vm8, 1.0, %v8704_v1 }
 0x328   :  { %5797 = vset.pattern.permute.xlu1 %v8921_v13  ;;  %5378 = vmatmul.mubr.msk.bf16.gmra.mxu0 %vm459_vm4, %v1559_v62  ;;  %v8929_v62 = vld [vmem:[#allocation66_spill] sm:$0xff] }
 0x329   :  { %3896 = vperm.xlu1 %5797, %v7501_v36   ;;  %5402 = vmatpush3.bf16.msra.mxu0 %v8920_v50  ;;  %vm2279_vm3 = vcmp.eq.s32.totalorder %v8929_v62, %v6105_v40  ;;  %v8930_v50 = vld [vmem:[#allocation73_spill] sm:$0xff]  ;;  %v4800_v62 = vsel %vm2128_vm11, 1.0, %v8704_v1 }
 0x32a   :  { %5405 = vmatprep.mubr.msk.bf16.mxu0 %vm459_vm4, %v1854_v51  ;;  %5448 = vmatpush3.bf16.msra.mxu1 %v6978_v29  ;;  %v7519_v22 = vpop.permute.xlu1 %3201  ;;  %v8928_v29 = vld [vmem:[#allocation71_spill] sm:$0xff]  ;;  %vm2282_vm6 = vcmp.eq.s32.totalorder %v8930_v50, %v6105_v40  ;;  %v8932_v51 = vld [vmem:[#allocation136_spill] sm:$0xff]  ;;  %v4814_v52 = vsel %vm2279_vm3, 1.0, %v8704_v1  ;;  %v7584_v50 = vld [vmem:[%s8591_s1 + $0x20] sm:$0xff]  ;;  %vm2131_vm3 = vcmp.eq.s32.totalorder %v8947_v8, %v6105_v40 }
 0x32b   :  { %5403 = vmatprep.subr.bf16.mxu0 %v8926_v48  ;;  %5449 = vmatprep.subr.bf16.mxu1 %v8927_v38  ;;  %vm2280_vm2 = vcmp.eq.s32.totalorder %v8928_v29, %v6105_v40  ;;  %v4801_v29 = vsel %vm2129_vm10, 1.0, %v8704_v1 }
 0x32c   :  { %v4815_v0 = vsel %vm2280_vm2, 1.0, %v8704_v1  ;;  %v2152_v25 = vpack.c.bf16 %v4801_v29, %v4800_v62  ;;  %v8950_v62 = vld [vmem:[#allocation128_spill] sm:$0xff] }
 0x32d   :  { %3899 = vperm.xlu1 %5797, %v6923_v21   ;;  %5426 = vmatmul.mubr.msk.bf16.gmra.mxu1 %vm459_vm4, %v2006_v42  ;;  %v8931_v21 = vld [vmem:[#allocation72_spill] sm:$0xff]  ;;  %v4817_v42 = vsel %vm2282_vm6, 1.0, %v8704_v1  ;;  %v2302_v31 = vpack.c.bf16 %v4815_v0, %v4814_v52  ;;  %v8944_v52 = vld [vmem:[#allocation111_spill] sm:$0xff] }
 0x32e   :  { %5404 = vmatpush3.bf16.msra.mxu0 %v8926_v48  ;;  %5450 = vmatpush3.bf16.msra.mxu1 %v8927_v38  ;;  %v7537_v24 = vpop.permute.xlu1 %3300  ;;  %vm2281_vm7 = vcmp.eq.s32.totalorder %v8931_v21, %v6105_v40  ;;  %v7561_v38 = vpop.permute.xlu0 %3312  ;;  %v8939_v21 = vld [vmem:[#allocation75_spill] sm:$0xff] }
 0x32f   :  { %5453 = vmatprep.mubr.msk.bf16.mxu1 %vm459_vm4, %v2301_v14  ;;  %5429 = vmatprep.subr.bf16.mxu0 %v8932_v51  ;;  %v4816_v48 = vsel %vm2281_vm7, 1.0, %v8704_v1  ;;  %v8938_v14 = vld [vmem:[#allocation140_spill] sm:$0xff]  ;;  %vm2284_vm12 = vcmp.eq.s32.totalorder %v8939_v21, %v6105_v40  ;;  %v4803_v21 = vsel %vm2131_vm3, 1.0, %v8704_v1 }
 0x330   :  { %5451 = vmatprep.subr.bf16.mxu1 %v8933_v6 }
 0x331   :  { %3946 = vrot.lane.b32.xlu1 %v6483_v4, %s5889_s30  ;;  %5406 = vmatmul.mubr.msk.bf16.vlgmr.msra.gmra.mxu0 %vm459_vm4, %v1855_v45  ;;  %v2303_v45 = vpack.c.bf16 %v4817_v42, %v4816_v48  ;;  %v4819_v42 = vsel %vm2284_vm12, 1.0, %v8704_v1 }
 0x332   :  { %5409 = vmatprep.mubr.msk.bf16.mxu0 %vm459_vm4, %v1856_v17  ;;  %5430 = vmatpush3.bf16.msra.mxu0 %v8932_v51  ;;  %v7565_v35 = vpop.permute.xlu1 %3303  ;;  %v8940_v51 = vld [vmem:[#allocation74_spill] sm:$0xff]  ;;  %v1857_v17 = vpack.c.bf16 %v4783_v5, %v4782_v27  ;;  %v7601_v0 = vpop.permute.xlu0 %3318  ;;  %v8948_v5 = vld [vmem:[#allocation65_spill] sm:$0xff]  ;;  %v8949_v27 = vld [vmem:[#allocation59_spill] sm:$0xff] }
 0x333   :  { %5452 = vmatpush3.bf16.msra.mxu1 %v8933_v6  ;;  %5431 = vmatprep.subr.bf16.mxu0 %v7118_v18  ;;  %vm2283_vm13 = vcmp.eq.s32.totalorder %v8940_v51, %v6105_v40  ;;  %v8941_v6 = vld [vmem:[#allocation85_spill] sm:$0xff]  ;;  %8943 = vst [vmem:[#allocation15_spill] sm:$0xff] %v7601_v0  ;;  %vm2133_vm6 = vcmp.eq.s32.totalorder %v8948_v5, %v6105_v40 }
 0x334   :  { %5477 = vmatprep.subr.bf16.mxu1 %v8938_v14  ;;  %5798 = vset.pattern.permute.xlu1 %v8898_v28  ;;  %vm2576_vm14 = vcmp.eq.s32.totalorder %v8941_v6, %v6105_v40  ;;  %v4818_v48 = vsel %vm2283_vm13, 1.0, %v8704_v1  ;;  %vm2132_vm7 = vcmp.eq.s32.totalorder %v8949_v27, %v6105_v40  ;;  %v4805_v6 = vsel %vm2133_vm6, 1.0, %v8704_v1  ;;  %v8955_v5 = vld [vmem:[#allocation89_spill] sm:$0xff]  ;;  %v8956_v27 = vld [vmem:[#allocation88_spill] sm:$0xff] }
 0x335   :  { %3756 = vperm.xlu1 %5798, %v7584_v50   ;;  %v2304_v51 = vpack.c.bf16 %v4819_v42, %v4818_v48  ;;  %v4804_v58 = vsel %vm2132_vm7, 1.0, %v8704_v1  ;;  %vm2580_vm10 = vcmp.eq.s32.totalorder %v8955_v5, %v6105_v40  ;;  %vm2579_vm11 = vcmp.eq.s32.totalorder %v8956_v27, %v6105_v40  ;;  %v8963_v27 = vld [vmem:[#allocation142_spill] sm:$0xff]  ;;  %v8974_v0 = vld [vmem:[#allocation121_spill] sm:$0xff] }
 0x336   :  { %5454 = vmatmul.mubr.msk.bf16.vlgmr.msra.gmra.mxu1 %vm459_vm4, %v2302_v31  ;;  %5432 = vmatpush3.bf16.msra.mxu0 %v7118_v18  ;;  %v7593_v28 = vpop.permute.xlu1 %3350  ;;  %v8946_v18 = vld [vmem:[#allocation53_spill] sm:$0xff]  ;;  %v4837_v31 = vsel %vm2576_vm14, 1.0, %v8704_v1  ;;  %v7653_v8 = vpop.permute.xlu0 %3501 }
 0x337   :  { %5457 = vmatprep.mubr.msk.bf16.mxu1 %vm459_vm4, %v2303_v45  ;;  %5478 = vmatpush3.bf16.msra.mxu1 %v8938_v14  ;;  %vm2130_vm2 = vcmp.eq.s32.totalorder %v8946_v18, %v6105_v40  ;;  %v4836_v14 = vsel %vm2575_vm15, 1.0, %v8704_v1  ;;  %v8953_v18 = vld [vmem:[#allocation82_spill] sm:$0xff] }
 0x338   :  { %5433 = vmatprep.subr.bf16.mxu0 %v8944_v52  ;;  %5479 = vmatprep.subr.bf16.mxu1 %v8945_v41  ;;  %v4802_v45 = vsel %vm2130_vm2, 1.0, %v8704_v1  ;;  %vm2577_vm9 = vcmp.eq.s32.totalorder %v8953_v18, %v6105_v40 }
 0x339   :  { %3944 = vrot.lane.b32.xlu1 %v6530_v32, %s5889_s30  ;;  %5410 = vmatmul.mubr.msk.bf16.gmra.mxu0 %vm459_vm4, %v1857_v17  ;;  %v8951_v17 = vld [vmem:[#allocation117_spill] sm:$0xff]  ;;  %v2153_v48 = vpack.c.bf16 %v4803_v21, %v4802_v45 }
 0x33a   :  { %5434 = vmatpush3.bf16.msra.mxu0 %v8944_v52  ;;  %5437 = vmatprep.mubr.msk.bf16.mxu0 %vm459_vm4, %v2152_v25  ;;  %v7634_v29 = vpop.permute.xlu1 %3160  ;;  %v2599_v52 = vpack.c.bf16 %v4837_v31, %v4836_v14  ;;  %v7646_v25 = vld [vmem:[%s8591_s1 + $0x30] sm:$0xff]  ;;  %v2154_v31 = vpack.c.bf16 %v4805_v6, %v4804_v58  ;;  %v8957_v14 = vld [vmem:[#allocation139_spill] sm:$0xff]  ;;  %v8960_v45 = vld [vmem:[#allocation61_spill] sm:$0xff]  ;;  %v4841_v58 = vsel %vm2580_vm10, 1.0, %v8704_v1  ;;  %v7695_v5 = vpop.permute.xlu0 %3449 }
 0x33b   :  { %5480 = vmatpush3.bf16.msra.mxu1 %v8945_v41  ;;  %5435 = vmatprep.subr.bf16.mxu0 %v8950_v62  ;;  %v8952_v41 = vld [vmem:[#allocation87_spill] sm:$0xff]  ;;  %vm2134_vm13 = vcmp.eq.s32.totalorder %v8960_v45, %v6105_v40  ;;  %v8962_v6 = vld [vmem:[#allocation77_spill] sm:$0xff] }
 0x33c   :  { %5481 = vmatprep.subr.bf16.mxu1 %v8951_v17  ;;  %vm2578_vm8 = vcmp.eq.s32.totalorder %v8952_v41, %v6105_v40  ;;  %vm2426_vm15 = vcmp.eq.s32.totalorder %v8962_v6, %v6105_v40  ;;  %v4806_v18 = vsel %vm2134_vm13, 1.0, %v8704_v1  ;;  %v8964_v45 = vld [vmem:[#allocation91_spill] sm:$0xff] }
 0x33d   :  { %3762 = vperm.xlu1 %5798, %v7646_v25   ;;  %v4839_v21 = vsel %vm2578_vm8, 1.0, %v8704_v1  ;;  %vm2582_vm2 = vcmp.eq.s32.totalorder %v8964_v45, %v6105_v40 }
 0x33e   :  { %5458 = vmatmul.mubr.msk.bf16.gmra.mxu1 %vm459_vm4, %v2304_v51  ;;  %5436 = vmatpush3.bf16.msra.mxu0 %v8950_v62  ;;  %v7657_v42 = vpop.permute.xlu1 %3348  ;;  %v8959_v62 = vld [vmem:[#allocation67_spill] sm:$0xff]  ;;  %v4838_v51 = vsel %vm2577_vm9, 1.0, %v8704_v1  ;;  %v7738_v45 = vpop.permute.xlu0 %3455 }
 0x33f   :  { %8954 = vst [vmem:[#allocation14_spill] sm:$0xff] %v7657_v42  ;;  %5482 = vmatpush3.bf16.msra.mxu1 %v8951_v17  ;;  %5485 = vmatprep.mubr.msk.bf16.mxu1 %vm459_vm4, %v2599_v52  ;;  %vm2135_vm12 = vcmp.eq.s32.totalorder %v8959_v62, %v6105_v40  ;;  %v8961_v17 = vld [vmem:[#allocation68_spill] sm:$0xff]  ;;  %v4840_v52 = vsel %vm2579_vm11, 1.0, %v8704_v1  ;;  %v8975_v42 = vld [vmem:[#allocation98_spill] sm:$0xff] }
 0x340   :  { %5461 = vmatprep.subr.bf16.mxu0 %v8957_v14  ;;  %5483 = vmatprep.subr.bf16.mxu1 %v8958_v34  ;;  %vm2427_vm14 = vcmp.eq.s32.totalorder %v8961_v17, %v6105_v40  ;;  %v2601_v62 = vpack.c.bf16 %v4841_v58, %v4840_v52  ;;  %v8967_v17 = vld [vmem:[#allocation101_spill] sm:$0xff]  ;;  %v8968_v52 = vld [vmem:[#allocation115_spill] sm:$0xff] }
 0x341   :  { %5800 = vset.pattern.permute.xlu1 %v8921_v13  ;;  %5438 = vmatmul.mubr.msk.bf16.vlgmr.msra.gmra.mxu0 %vm459_vm4, %v2153_v48  ;;  %v4807_v13 = vsel %vm2135_vm12, 1.0, %v8704_v1  ;;  %v2600_v48 = vpack.c.bf16 %v4839_v21, %v4838_v51  ;;  %v8966_v51 = vld [vmem:[#allocation96_spill] sm:$0xff]  ;;  %vm2874_vm7 = vcmp.eq.s32.totalorder %v8967_v17, %v6105_v40  ;;  %vm2875_vm12 = vcmp.eq.s32.totalorder %v8975_v42, %v6105_v40  ;;  %v8977_v42 = vld [vmem:[#allocation141_spill] sm:$0xff] }
 0x342   :  { %5441 = vmatprep.mubr.msk.bf16.mxu0 %vm459_vm4, %v2154_v31  ;;  %5462 = vmatpush3.bf16.msra.mxu0 %v8957_v14  ;;  %v7689_v41 = vpop.permute.xlu1 %3166  ;;  %v4825_v31 = vsel %vm2427_vm14, 1.0, %v8704_v1  ;;  %v4824_v14 = vsel %vm2426_vm15, 1.0, %v8704_v1  ;;  %v2155_v21 = vpack.c.bf16 %v4807_v13, %v4806_v18  ;;  %vm2873_vm6 = vcmp.eq.s32.totalorder %v8966_v51, %v6105_v40  ;;  %v8970_v13 = vld [vmem:[#allocation79_spill] sm:$0xff] }
 0x343   :  { %3905 = vperm.xlu1 %5800, %v7584_v50   ;;  %5484 = vmatpush3.bf16.msra.mxu1 %v8958_v34  ;;  %v8965_v34 = vld [vmem:[#allocation90_spill] sm:$0xff]  ;;  %v2450_v58 = vpack.c.bf16 %v4825_v31, %v4824_v14  ;;  %vm2429_vm9 = vcmp.eq.s32.totalorder %v8970_v13, %v6105_v40  ;;  %v4843_v18 = vsel %vm2582_vm2, 1.0, %v8704_v1  ;;  %v8971_v31 = vld [vmem:[#allocation81_spill] sm:$0xff]  ;;  %v4860_v14 = vsel %vm2873_vm6, 1.0, %v8704_v1  ;;  %v8976_v13 = vld [vmem:[#allocation103_spill] sm:$0xff] }
 0x344   :  { %5463 = vmatprep.subr.bf16.mxu0 %v7152_v2  ;;  %5509 = vmatprep.subr.bf16.mxu1 %v8963_v27  ;;  %vm2581_vm3 = vcmp.eq.s32.totalorder %v8965_v34, %v6105_v40  ;;  %vm2431_vm10 = vcmp.eq.s32.totalorder %v8971_v31, %v6105_v40  ;;  %v8973_v34 = vld [vmem:[#allocation129_spill] sm:$0xff]  ;;  %v4827_v17 = vsel %vm2429_vm9, 1.0, %v8704_v1  ;;  %vm2876_vm13 = vcmp.eq.s32.totalorder %v8976_v13, %v6105_v40 }
 0x345   :  { %vm2877_vm14 = vcmp.eq.s32.totalorder %v7262_v49, %v6105_v40  ;;  %v4863_v49 = vsel %vm2876_vm13, 1.0, %v8704_v1  ;;  %vm3172_vm9 = vcmp.eq.s32.totalorder %v7308_v20, %v6105_v40  ;;  %v8989_v20 = vld [vmem:[#allocation130_spill] sm:$0xff] }
 0x346   :  { %5486 = vmatmul.mubr.msk.bf16.vlgmr.msra.gmra.mxu1 %vm459_vm4, %v2600_v48  ;;  %5464 = vmatpush3.bf16.msra.mxu0 %v7152_v2  ;;  %v8969_v2 = vld [vmem:[#allocation70_spill] sm:$0xff]  ;;  %v4842_v48 = vsel %vm2581_vm3, 1.0, %v8704_v1  ;;  %vm2878_vm3 = vcmp.eq.s32.totalorder %v7039_v59, %v6105_v40 }
 0x347   :  { %4099 = vrot.lane.b32.xlu1 %v6497_v43, %s5885_s28  ;;  %5489 = vmatprep.mubr.msk.bf16.mxu1 %vm459_vm4, %v2601_v62  ;;  %v7714_v6 = vpop.permute.xlu1 %3309  ;;  %vm2428_vm8 = vcmp.eq.s32.totalorder %v8969_v2, %v6105_v40  ;;  %v4861_v62 = vsel %vm2874_vm7, 1.0, %v8704_v1  ;;  %v2602_v31 = vpack.c.bf16 %v4843_v18, %v4842_v48  ;;  %v7771_v48 = vpop.permute.xlu0 %3497  ;;  %v4865_v13 = vsel %vm2878_vm3, 1.0, %v8704_v1 }
 0x348   :  { %5510 = vmatpush3.bf16.msra.mxu1 %v8963_v27  ;;  %5465 = vmatprep.subr.bf16.mxu0 %v8968_v52  ;;  %v8972_v27 = vld [vmem:[#allocation76_spill] sm:$0xff]  ;;  %v4826_v51 = vsel %vm2428_vm8, 1.0, %v8704_v1  ;;  %vm2879_vm8 = vcmp.eq.s32.totalorder %v7314_v60, %v6105_v40  ;;  %v8985_v60 = vld [vmem:[#allocation86_spill] sm:$0xff]  ;;  %vm3173_vm3 = vcmp.eq.s32.totalorder %v7482_v30, %v6105_v40 }
 0x349   :  { %5511 = vmatprep.subr.bf16.mxu1 %v7015_v19  ;;  %5442 = vmatmul.mubr.msk.bf16.gmra.mxu0 %vm459_vm4, %v2155_v21  ;;  %vm2430_vm11 = vcmp.eq.s32.totalorder %v8972_v27, %v6105_v40  ;;  %v2897_v27 = vpack.c.bf16 %v4861_v62, %v4860_v14  ;;  %v2451_v2 = vpack.c.bf16 %v4827_v17, %v4826_v51  ;;  %v8978_v14 = vld [vmem:[#allocation83_spill] sm:$0xff]  ;;  %v8979_v62 = vld [vmem:[#allocation125_spill] sm:$0xff]  ;;  %v8982_v51 = vld [vmem:[#allocation84_spill] sm:$0xff] }
 0x34a   :  { %5466 = vmatpush3.bf16.msra.mxu0 %v8968_v52  ;;  %5469 = vmatprep.mubr.msk.bf16.mxu0 %vm459_vm4, %v2450_v58  ;;  %v4829_v58 = vsel %vm2431_vm10, 1.0, %v8704_v1  ;;  %v4828_v52 = vsel %vm2430_vm11, 1.0, %v8704_v1  ;;  %vm2433_vm15 = vcmp.eq.s32.totalorder %v8978_v14, %v6105_v40  ;;  %vm2725_vm6 = vcmp.eq.s32.totalorder %v8982_v51, %v6105_v40  ;;  %v8983_v17 = vld [vmem:[#allocation93_spill] sm:$0xff]  ;;  %v8991_v30 = vld [vmem:[#allocation94_spill] sm:$0xff] }
 0x34b   :  { %3911 = vperm.xlu1 %5800, %v7646_v25   ;;  %5467 = vmatprep.subr.bf16.mxu0 %v8973_v34  ;;  %v7744_v21 = vpop.permute.xlu1 %3503  ;;  %v2452_v18 = vpack.c.bf16 %v4829_v58, %v4828_v52  ;;  %vm2724_vm7 = vcmp.eq.s32.totalorder %v8983_v17, %v6105_v40  ;;  %v5826_v58 = vld [vmem:[%s8591_s1] sm:$0xff]  ;;  %v4831_v52 = vsel %vm2433_vm15, 1.0, %v8704_v1  ;;  %v7812_v51 = vpop.permute.xlu0 %3461  ;;  %vm3171_vm10 = vcmp.eq.s32.totalorder %v7434_v23, %v6105_v40  ;;  %v8987_v17 = vld [vmem:[#allocation92_spill] sm:$0xff] }
 0x34c   :  { %5512 = vmatpush3.bf16.msra.mxu1 %v7015_v19  ;;  %vm2880_vm11 = vcmp.eq.s32.totalorder %v7071_v61, %v6105_v40  ;;  %v8988_v61 = vld [vmem:[#allocation97_spill] sm:$0xff] }
 0x34d   :  { %5513 = vmatprep.subr.bf16.mxu1 %v8974_v0  ;;  %vm2729_vm15 = vcmp.eq.s32.totalorder %v8988_v61, %v6105_v40 }
 0x34e   :  { %5490 = vmatmul.mubr.msk.bf16.gmra.mxu1 %vm459_vm4, %v2602_v31  ;;  %5468 = vmatpush3.bf16.msra.mxu0 %v8973_v34  ;;  %v4862_v34 = vsel %vm2875_vm12, 1.0, %v8704_v1  ;;  %v4864_v31 = vsel %vm2877_vm14, 1.0, %v8704_v1  ;;  %vm2726_vm12 = vcmp.eq.s32.totalorder %v8985_v60, %v6105_v40  ;;  %vm2728_vm14 = vcmp.eq.s32.totalorder %v8987_v17, %v6105_v40 }
 0x34f   :  { %4248 = vrot.lane.b32.xlu1 %v6497_v43, %s5890_s16  ;;  %5517 = vmatprep.mubr.msk.bf16.mxu1 %vm459_vm4, %v2897_v27  ;;  %v7767_v19 = vpop.permute.xlu1 %3315  ;;  %v8980_v43 = vld [vmem:[#allocation78_spill] sm:$0xff]  ;;  %v4850_v23 = vsel %vm2726_vm12, 1.0, %v8704_v1  ;;  %vm3178_vm12 = vcmp.eq.s32.totalorder %v7443_v7, %v6105_v40 }
 0x350   :  { %5514 = vmatpush3.bf16.msra.mxu1 %v8974_v0  ;;  %5493 = vmatprep.subr.bf16.mxu0 %v8977_v42  ;;  %vm2432_vm2 = vcmp.eq.s32.totalorder %v8980_v43, %v6105_v40  ;;  %v8981_v0 = vmov 25  }
 0x351   :  { %5515 = vmatprep.subr.bf16.mxu1 %v8979_v62  ;;  %5470 = vmatmul.mubr.msk.bf16.vlgmr.msra.gmra.mxu0 %vm459_vm4, %v2451_v2  ;;  %v4830_v27 = vsel %vm2432_vm2, 1.0, %v8704_v1  ;;  %v2898_v2 = vpack.c.bf16 %v4863_v49, %v4862_v34  ;;  %v8986_v49 = vld [vmem:[#allocation95_spill] sm:$0xff]  ;;  %vm3174_vm2 = vcmp.eq.s32.totalorder %v7335_v57, %v6105_v40 }
 0x352   :  { %5801 = vset.pattern.permute.xlu1 %v8981_v0  ;;  %5473 = vmatprep.mubr.msk.bf16.mxu0 %vm459_vm4, %v2452_v18  ;;  %v4849_v18 = vsel %vm2725_vm6, 1.0, %v8704_v1  ;;  %v2453_v14 = vpack.c.bf16 %v4831_v52, %v4830_v27  ;;  %vm2727_vm13 = vcmp.eq.s32.totalorder %v8986_v49, %v6105_v40  ;;  %v7853_v52 = vpop.permute.xlu0 %3467  ;;  %v5827_v27 = vld [vmem:[%s8591_s1 + $0x10] sm:$0xff]  ;;  %vm3176_vm6 = vcmp.eq.s32.totalorder %v7409_v39, %v6105_v40  ;;  %v8990_v57 = vld [vmem:[#allocation143_spill] sm:$0xff] }
 0x353   :  { %5494 = vmatpush3.bf16.msra.mxu0 %v8977_v42  ;;  %4042 = vperm.xlu1 %5801, %v5826_v58   ;;  %v7796_v59 = vpop.permute.xlu1 %3652  ;;  %v4848_v42 = vsel %vm2724_vm7, 1.0, %v8704_v1  ;;  %v4867_v58 = vsel %vm2880_vm11, 1.0, %v8704_v1  ;;  %vm3175_vm7 = vcmp.eq.s32.totalorder %v7634_v29, %v6105_v40  ;;  %v8992_v49 = vld [vmem:[#allocation99_spill] sm:$0xff]  ;;  %v4887_v39 = vsel %vm3174_vm2, 1.0, %v8704_v1 }
 0x354   :  { %5516 = vmatpush3.bf16.msra.mxu1 %v8979_v62  ;;  %5495 = vmatprep.subr.bf16.mxu0 %v7196_v46  ;;  %v2899_v62 = vpack.c.bf16 %v4865_v13, %v4864_v31  ;;  %v2748_v34 = vpack.c.bf16 %v4849_v18, %v4848_v42  ;;  %v4884_v31 = vsel %vm3171_vm10, 1.0, %v8704_v1  ;;  %v4851_v13 = vsel %vm2727_vm13, 1.0, %v8704_v1 }
 0x355   :  { %5541 = vmatprep.subr.bf16.mxu1 %v7361_v33  ;;  %v4852_v42 = vsel %vm2728_vm14, 1.0, %v8704_v1  ;;  %v4886_v29 = vsel %vm3173_vm3, 1.0, %v8704_v1  ;;  %vm3022_vm10 = vcmp.eq.s32.totalorder %v7110_v37, %v6105_v40  ;;  %vm3177_vm13 = vcmp.eq.s32.totalorder %v7689_v41, %v6105_v40  ;;  %v8994_v41 = vld [vmem:[#allocation123_spill] sm:$0xff] }
 0x356   :  { %v7896_v60 = vpop.permute.xlu0 %3595  ;;  %v3196_v37 = vpack.c.bf16 %v4887_v39, %v4886_v29  ;;  %vm3470_vm14 = vcmp.eq.s32.totalorder %v7695_v5, %v6105_v40  ;;  %vm3025_vm2 = vcmp.eq.s32.totalorder %v7146_v10, %v6105_v40  ;;  %v4890_v5 = vsel %vm3177_vm13, 1.0, %v8704_v1 }
 0x357   :  { %5518 = vmatmul.mubr.msk.bf16.vlgmr.msra.gmra.mxu1 %vm459_vm4, %v2898_v2  ;;  %5496 = vmatpush3.bf16.msra.mxu0 %v7196_v46  ;;  %v8984_v46 = vld [vmem:[#allocation119_spill] sm:$0xff]  ;;  %vm3027_vm3 = vcmp.eq.s32.totalorder %v7179_v53, %v6105_v40  ;;  %v4875_v53 = vsel %vm3025_vm2, 1.0, %v8704_v1  ;;  %vm3320_vm13 = vcmp.eq.s32.totalorder %v7478_v3, %v6105_v40  ;;  %vm3476_vm2 = vcmp.eq.s32.totalorder %v7853_v52, %v6105_v40 }
 0x358   :  { %4246 = vrot.lane.b32.xlu1 %v6503_v55, %s5890_s16  ;;  %5521 = vmatprep.mubr.msk.bf16.mxu1 %vm459_vm4, %v2899_v62  ;;  %v7825_v43 = vpop.permute.xlu1 %3446  ;;  %v4866_v55 = vsel %vm2879_vm8, 1.0, %v8704_v1  ;;  %v4853_v62 = vsel %vm2729_vm15, 1.0, %v8704_v1  ;;  %vm2730_vm8 = vcmp.eq.s32.totalorder %v8991_v30, %v6105_v40 }
 0x359   :  { %5542 = vmatpush3.bf16.msra.mxu1 %v7361_v33  ;;  %5497 = vmatprep.subr.bf16.mxu0 %v8984_v46  ;;  %v4885_v33 = vsel %vm3172_vm9, 1.0, %v8704_v1  ;;  %v2900_v18 = vpack.c.bf16 %v4867_v58, %v4866_v55  ;;  %vm2731_vm9 = vcmp.eq.s32.totalorder %v8992_v49, %v6105_v40  ;;  %v4888_v55 = vsel %vm3175_vm7, 1.0, %v8704_v1 }
 0x35a   :  { %5543 = vmatprep.subr.bf16.mxu1 %v7265_v15  ;;  %5474 = vmatmul.mubr.msk.bf16.gmra.mxu0 %vm459_vm4, %v2453_v14  ;;  %v3195_v14 = vpack.c.bf16 %v4885_v33, %v4884_v31  ;;  %v4854_v61 = vsel %vm2730_vm8, 1.0, %v8704_v1  ;;  %v4855_v33 = vsel %vm2731_vm9, 1.0, %v8704_v1  ;;  %v8993_v31 = vld [vmem:[#allocation100_spill] sm:$0xff]  ;;  %v4872_v58 = vsel %vm3022_vm10, 1.0, %v8704_v1 }
 0x35b   :  { %5498 = vmatpush3.bf16.msra.mxu0 %v8984_v46  ;;  %5501 = vmatprep.mubr.msk.bf16.mxu0 %vm459_vm4, %v2748_v34  ;;  %v2749_v34 = vpack.c.bf16 %v4851_v13, %v4850_v23  ;;  %v2750_v46 = vpack.c.bf16 %v4853_v62, %v4852_v42  ;;  %vm3023_vm11 = vcmp.eq.s32.totalorder %v8993_v31, %v6105_v40  ;;  %v4877_v42 = vsel %vm3027_vm3, 1.0, %v8704_v1 }
 0x35c   :  { %4048 = vperm.xlu1 %5801, %v5827_v27   ;;  %5499 = vmatprep.subr.bf16.mxu0 %v8989_v20  ;;  %v7859_v2 = vpop.permute.xlu1 %3650  ;;  %v2751_v23 = vpack.c.bf16 %v4855_v33, %v4854_v61  ;;  %v4873_v13 = vsel %vm3023_vm11, 1.0, %v8704_v1  ;;  %vm3469_vm15 = vcmp.eq.s32.totalorder %v7825_v43, %v6105_v40  ;;  %v8995_v43 = vld [vmem:[#allocation102_spill] sm:$0xff]  ;;  %vm3472_vm8 = vcmp.eq.s32.totalorder %v7738_v45, %v6105_v40  ;;  %v8053_v33 = vpop.f32.mrf.mxu1 }
 0x35d   :  { %5544 = vmatpush3.bf16.msra.mxu1 %v7265_v15  ;;  %v4908_v10 = vsel %vm3469_vm15, 1.0, %v8704_v1  ;;  %vm3024_vm7 = vcmp.eq.s32.totalorder %v8995_v43, %v6105_v40  ;;  %vm3474_vm10 = vcmp.eq.s32.totalorder %v7812_v51, %v6105_v40  ;;  %vm3029_vm11 = vcmp.eq.s32.totalorder %v7226_v47, %v6105_v40 }
 0x35e   :  { %5545 = vmatprep.subr.bf16.mxu1 %v7519_v22  ;;  %v4913_v47 = vsel %vm3474_vm10, 1.0, %v8704_v1  ;;  %v4879_v3 = vsel %vm3029_vm11, 1.0, %v8704_v1  ;;  %vm3323_vm3 = vcmp.eq.s32.totalorder %v7525_v56, %v6105_v40  ;;  %v8996_v56 = vld [vmem:[#allocation14_spill] sm:$0xff]  ;;  %vm3326_vm11 = vcmp.eq.s32.totalorder %v7767_v19, %v6105_v40 }
 0x35f   :  { %5522 = vmatmul.mubr.msk.bf16.gmra.mxu1 %vm459_vm4, %v2900_v18  ;;  %5500 = vmatpush3.bf16.msra.mxu0 %v8989_v20  ;;  %v3046_v18 = vpack.c.bf16 %v4873_v13, %v4872_v58  ;;  %v4902_v19 = vsel %vm3326_vm11, 1.0, %v8704_v1 }
 0x360   :  { %4095 = vrot.lane.b32.xlu1 %v6483_v4, %s5885_s28  ;;  %5549 = vmatprep.mubr.msk.bf16.mxu1 %vm459_vm4, %v3195_v14  ;;  %v7888_v15 = vpop.permute.xlu1 %3452 }
 0x361   :  { %5546 = vmatpush3.bf16.msra.mxu1 %v7519_v22  ;;  %5525 = vmatprep.subr.bf16.mxu0 %v8990_v57  ;;  %v4889_v22 = vsel %vm3176_vm6, 1.0, %v8704_v1  ;;  %vm3026_vm6 = vcmp.eq.s32.totalorder %v7338_v63, %v6105_v40  ;;  %vm3471_vm9 = vcmp.eq.s32.totalorder %v7888_v15, %v6105_v40 }
 0x362   :  { %5547 = vmatprep.subr.bf16.mxu1 %v7371_v12  ;;  %5502 = vmatmul.mubr.msk.bf16.vlgmr.msra.gmra.mxu0 %vm459_vm4, %v2749_v34  ;;  %v3197_v20 = vpack.c.bf16 %v4889_v22, %v4888_v55  ;;  %v4876_v62 = vsel %vm3026_vm6, 1.0, %v8704_v1  ;;  %v4874_v34 = vsel %vm3024_vm7, 1.0, %v8704_v1  ;;  %vm3322_vm6 = vcmp.eq.s32.totalorder %v7565_v35, %v6105_v40 }
 0x363   :  { %5803 = vset.pattern.permute.xlu1 %v8858_v9  ;;  %5505 = vmatprep.mubr.msk.bf16.mxu0 %vm459_vm4, %v2750_v46  ;;  %v3047_v46 = vpack.c.bf16 %v4875_v53, %v4874_v34  ;;  %vm3325_vm7 = vcmp.eq.s32.totalorder %v7561_v38, %v6105_v40  ;;  %v4899_v35 = vsel %vm3323_vm3, 1.0, %v8704_v1  ;;  %v4898_v29 = vsel %vm3322_vm6, 1.0, %v8704_v1 }
 0x364   :  { %5526 = vmatpush3.bf16.msra.mxu0 %v8990_v57  ;;  %4194 = vperm.xlu1 %5803, %v7501_v36   ;;  %v3500_v17 = vpop.permute.xlu1 %3499  ;;  %v7924_v36 = vpop.permute.xlu0 %3604  ;;  %v4901_v38 = vsel %vm3325_vm7, 1.0, %v8704_v1  ;;  %v3345_v55 = vpack.c.bf16 %v4899_v35, %v4898_v29 }
 0x365   :  { %5548 = vmatpush3.bf16.msra.mxu1 %v7371_v12  ;;  %5527 = vmatprep.subr.bf16.mxu0 %v7230_v26 }
 0x366   :  { %5573 = vmatprep.subr.bf16.mxu1 %v7744_v21 }
 0x368   :  { %5550 = vmatmul.mubr.msk.bf16.vlgmr.msra.gmra.mxu1 %vm459_vm4, %v3196_v37  ;;  %5528 = vmatpush3.bf16.msra.mxu0 %v7230_v26  ;;  %v7930_v12 = vpop.permute.xlu1 %3598  ;;  %v4891_v26 = vsel %vm3178_vm12, 1.0, %v8704_v1  ;;  %vm3028_vm12 = vcmp.eq.s32.totalorder %v7383_v44, %v6105_v40  ;;  %v5828_v37 = vld [vmem:[%s8591_s1 + $0x38] sm:$0xff] }
 0x369   :  { %4197 = vperm.xlu1 %5803, %v5827_v27   ;;  %5553 = vmatprep.mubr.msk.bf16.mxu1 %vm459_vm4, %v3197_v20  ;;  %v7965_v27 = vpop.permute.xlu0 %3610  ;;  %v3198_v63 = vpack.c.bf16 %v4891_v26, %v4890_v5  ;;  %v4878_v51 = vsel %vm3028_vm12, 1.0, %v8704_v1  ;;  %vm3618_vm12 = vcmp.eq.s32.totalorder %v7896_v60, %v6105_v40 }
 0x36a   :  { %5574 = vmatpush3.bf16.msra.mxu1 %v7744_v21  ;;  %5529 = vmatprep.subr.bf16.mxu0 %v8994_v41  ;;  %v4909_v21 = vsel %vm3470_vm14, 1.0, %v8704_v1  ;;  %vm3321_vm14 = vcmp.eq.s32.totalorder %v7537_v24, %v6105_v40  ;;  %v4896_v24 = vsel %vm3320_vm13, 1.0, %v8704_v1  ;;  %v3049_v30 = vpack.c.bf16 %v4879_v3, %v4878_v51 }
 0x36b   :  { %5575 = vmatprep.subr.bf16.mxu1 %v7653_v8  ;;  %5506 = vmatmul.mubr.msk.bf16.gmra.mxu0 %vm459_vm4, %v2751_v23  ;;  %v3493_v14 = vpack.c.bf16 %v4909_v21, %v4908_v10  ;;  %vm3619_vm13 = vcmp.eq.s32.totalorder %v7930_v12, %v6105_v40  ;;  %v4920_v58 = vsel %vm3618_vm12, 1.0, %v8704_v1 }
 0x36c   :  { %5530 = vmatpush3.bf16.msra.mxu0 %v8994_v41  ;;  %5533 = vmatprep.mubr.msk.bf16.mxu0 %vm459_vm4, %v3046_v18  ;;  %v7957_v7 = vpop.permute.xlu1 %3601  ;;  %v4921_v20 = vsel %vm3619_vm13, 1.0, %v8704_v1 }
 0x36d   :  { %4244 = vrot.lane.b32.xlu1 %v6483_v4, %s5890_s16  ;;  %5531 = vmatprep.subr.bf16.mxu0 %v7284_v16  ;;  %v7994_v45 = vpop.permute.xlu0 %3616  ;;  %v3642_v23 = vpack.c.bf16 %v4921_v20, %v4920_v58 }
 0x36e   :  { %5576 = vmatpush3.bf16.msra.mxu1 %v7653_v8  ;;  %5805 = vset.pattern.permute.xlu1 %v8981_v0  ;;  %v3048_v8 = vpack.c.bf16 %v4877_v42, %v4876_v62  ;;  %v4910_v0 = vsel %vm3471_vm9, 1.0, %v8704_v1  ;;  %vm3625_vm7 = vcmp.eq.s32.totalorder %v7994_v45, %v6105_v40 }
 0x36f   :  { %5577 = vmatprep.subr.bf16.mxu1 %v3500_v17 }
 0x370   :  { %5554 = vmatmul.mubr.msk.bf16.gmra.mxu1 %vm459_vm4, %v3198_v63  ;;  %5532 = vmatpush3.bf16.msra.mxu0 %v7284_v16  ;;  %v7974_v4 = vpop.permute.xlu1 %3648  ;;  %v4911_v16 = vsel %vm3472_vm8, 1.0, %v8704_v1  ;;  %vm3324_vm8 = vcmp.eq.s32.totalorder %v7714_v6, %v6105_v40 }
 0x371   :  { %4054 = vperm.xlu1 %5805, %v7584_v50   ;;  %5581 = vmatprep.mubr.msk.bf16.mxu1 %vm459_vm4, %v3493_v14  ;;  %v3494_v15 = vpack.c.bf16 %v4911_v16, %v4910_v0  ;;  %v4927_v14 = vsel %vm3625_vm7, 1.0, %v8704_v1 }
 0x372   :  { %5578 = vmatpush3.bf16.msra.mxu1 %v3500_v17  ;;  %5557 = vmatprep.subr.bf16.mxu0 %v7413_v54 }
 0x373   :  { %5579 = vmatprep.subr.bf16.mxu1 %v7771_v48  ;;  %5534 = vmatmul.mubr.msk.bf16.vlgmr.msra.gmra.mxu0 %vm459_vm4, %v3047_v46 }
 0x374   :  { %5537 = vmatprep.mubr.msk.bf16.mxu0 %vm459_vm4, %v3048_v8  ;;  %5558 = vmatpush3.bf16.msra.mxu0 %v7413_v54  ;;  %v4897_v54 = vsel %vm3321_vm14, 1.0, %v8704_v1  ;;  %vm3621_vm14 = vcmp.eq.s32.totalorder %v7924_v36, %v6105_v40 }
 0x375   :  { %4242 = vrot.lane.b32.xlu1 %v6530_v32, %s5890_s16  ;;  %5559 = vmatprep.subr.bf16.mxu0 %v7457_v11  ;;  %v3459_v44 = vpop.permute.xlu1 %3458  ;;  %v3344_v39 = vpack.c.bf16 %v4897_v54, %v4896_v24  ;;  %v4923_v36 = vsel %vm3621_vm14, 1.0, %v8704_v1 }
 0x376   :  { %5580 = vmatpush3.bf16.msra.mxu1 %v7771_v48  ;;  %vm3473_vm15 = vcmp.eq.s32.totalorder %v3459_v44, %v6105_v40  ;;  %v8019_v48 = vpop.permute.xlu0 %3799 }
 0x377   :  { %v4912_v57 = vsel %vm3473_vm15, 1.0, %v8704_v1  ;;  %vm3620_vm15 = vcmp.eq.s32.totalorder %v7957_v7, %v6105_v40 }
 0x378   :  { %5560 = vmatpush3.bf16.msra.mxu0 %v7457_v11  ;;  %v3495_v32 = vpack.c.bf16 %v4913_v47, %v4912_v57  ;;  %v4915_v11 = vsel %vm3476_vm2, 1.0, %v8704_v1  ;;  %vm3623_vm2 = vcmp.eq.s32.totalorder %v7965_v27, %v6105_v40  ;;  %v4922_v41 = vsel %vm3620_vm15, 1.0, %v8704_v1 }
 0x379   :  { %5582 = vmatmul.mubr.msk.bf16.vlgmr.msra.gmra.mxu1 %vm459_vm4, %v3494_v15  ;;  %4060 = vperm.xlu1 %5805, %v7646_v25   ;;  %v8015_v49 = vpop.permute.xlu1 %3646  ;;  %v4925_v5 = vsel %vm3623_vm2, 1.0, %v8704_v1  ;;  %v3643_v7 = vpack.c.bf16 %v4923_v36, %v4922_v41 }
 0x37a   :  { %5561 = vmatprep.subr.bf16.mxu0 %v7593_v28  ;;  %5585 = vmatprep.mubr.msk.bf16.mxu1 %vm459_vm4, %v3495_v32  ;;  %v3748_v22 = vpop.permute.xlu0 %3747 }
 0x37b   :  { %5538 = vmatmul.mubr.msk.bf16.gmra.mxu0 %vm459_vm4, %v3049_v30  ;;  %vm3768_vm6 = vcmp.eq.s32.totalorder %v3748_v22, %v6105_v40 }
 0x37c   :  { %5562 = vmatpush3.bf16.msra.mxu0 %v7593_v28  ;;  %5565 = vmatprep.mubr.msk.bf16.mxu0 %vm459_vm4, %v3344_v39  ;;  %v4900_v28 = vsel %vm3324_vm8, 1.0, %v8704_v1  ;;  %v4933_v27 = vsel %vm3768_vm6, 1.0, %v8704_v1 }
 0x37d   :  { %5806 = vset.pattern.permute.xlu1 %v8858_v9  ;;  %5563 = vmatprep.subr.bf16.mxu0 %v8996_v56  ;;  %v3465_v52 = vpop.permute.xlu1 %3464  ;;  %v3346_v17 = vpack.c.bf16 %v4901_v38, %v4900_v28 }
 0x37e   :  { %4203 = vperm.xlu1 %5806, %v7584_v50   ;;  %vm3475_vm9 = vcmp.eq.s32.totalorder %v3465_v52, %v6105_v40  ;;  %v8997_v50 = vld [vmem:[#allocation15_spill] sm:$0xff]  ;;  %v8063_v31 = vpop.permute.xlu0 %3753 }
 0x37f   :  { %v4914_v6 = vsel %vm3475_vm9, 1.0, %v8704_v1  ;;  %vm3327_vm10 = vcmp.eq.s32.totalorder %v8997_v50, %v6105_v40 }
 0x380   :  { %5564 = vmatpush3.bf16.msra.mxu0 %v8996_v56  ;;  %v3496_v9 = vpack.c.bf16 %v4915_v11, %v4914_v6 }
 0x381   :  { %5589 = vmatprep.subr.bf16.mxu0 %v7796_v59 }
 0x382   :  { %4209 = vperm.xlu1 %5806, %v7646_v25   ;;  %v3608_v61 = vpop.permute.xlu1 %3607  ;;  %5586 = vmatmul.mubr.msk.bf16.gmra.mxu1 %vm459_vm4, %v3496_v9  ;;  %v4903_v25 = vsel %vm3327_vm10, 1.0, %v8704_v1  ;;  %vm3770_vm10 = vcmp.eq.s32.totalorder %v8063_v31, %v6105_v40 }
 0x383   :  { %5566 = vmatmul.mubr.msk.bf16.vlgmr.msra.gmra.mxu0 %vm459_vm4, %v3345_v55  ;;  %v3347_v12 = vpack.c.bf16 %v4903_v25, %v4902_v19  ;;  %vm3622_vm3 = vcmp.eq.s32.totalorder %v3608_v61, %v6105_v40  ;;  %v4935_v32 = vsel %vm3770_vm10, 1.0, %v8704_v1 }
 0x384   :  { %5569 = vmatprep.mubr.msk.bf16.mxu0 %vm459_vm4, %v3346_v17  ;;  %5590 = vmatpush3.bf16.msra.mxu0 %v7796_v59  ;;  %v8071_v59 = vpop.f32.mrf.mxu1  ;;  %v4924_v21 = vsel %vm3622_vm3, 1.0, %v8704_v1 }
 0x385   :  { %5591 = vmatprep.subr.bf16.mxu0 %v7859_v2  ;;  %v3644_v53 = vpack.c.bf16 %v4925_v5, %v4924_v21 }
 0x386   :  { %4212 = vperm.xlu1 %5806, %v5828_v37   ;;  %v3802_v60 = vpop.permute.xlu1 %3801  ;;  %v8081_v18 = vpop.f32.mrf.mxu1 }
 0x387   :  { %5605 = vmatprep.subr.bf16.mxu1 %v3802_v60 }
 0x388   :  { %5592 = vmatpush3.bf16.msra.mxu0 %v7859_v2  ;;  %5606 = vmatpush3.bf16.msra.mxu1 %v3802_v60  ;;  %v3796_v2 = vpop.permute.xlu0 %3795  ;;  %v8094_v10 = vpop.f32.mrf.mxu1 }
 0x389   :  { %5593 = vmatprep.subr.bf16.mxu0 %v7974_v4  ;;  %5607 = vmatprep.subr.bf16.mxu1 %v8019_v48 }
 0x38a   :  { %v3614_v13 = vpop.permute.xlu1 %3613  ;;  %v8105_v42 = vpop.f32.mrf.mxu1 }
 0x38b   :  { %5570 = vmatmul.mubr.msk.bf16.gmra.mxu0 %vm459_vm4, %v3347_v12  ;;  %vm3624_vm8 = vcmp.eq.s32.totalorder %v3614_v13, %v6105_v40 }
 0x38c   :  { %5594 = vmatpush3.bf16.msra.mxu0 %v7974_v4  ;;  %5597 = vmatprep.mubr.msk.bf16.mxu0 %vm459_vm4, %v3642_v23  ;;  %v8098_v43 = vpop.permute.xlu0 %3759  ;;  %v4926_v34 = vsel %vm3624_vm8, 1.0, %v8704_v1  ;;  %v8112_v8 = vpop.f32.mrf.mxu1 }
 0x38d   :  { %5595 = vmatprep.subr.bf16.mxu0 %v8015_v49  ;;  %5608 = vmatpush3.bf16.msra.mxu1 %v8019_v48  ;;  %v3645_v45 = vpack.c.bf16 %v4927_v14, %v4926_v34  ;;  %vm3772_vm14 = vcmp.eq.s32.totalorder %v8098_v43, %v6105_v40 }
 0x38e   :  { %v3951_v26 = vpop.permute.xlu1 %3950  ;;  %v8118_v47 = vpop.f32.mrf.mxu1  ;;  %v4937_v23 = vsel %vm3772_vm14, 1.0, %v8704_v1 }
 0x390   :  { %5596 = vmatpush3.bf16.msra.mxu0 %v8015_v49  ;;  %v8114_v16 = vpop.permute.xlu0 %3765  ;;  %v602_v54 = vpop.f32.mrf.mxu1 }
 0x391   :  { %5621 = vmatprep.subr.bf16.mxu0 %v3951_v26  ;;  %vm3774_vm6 = vcmp.eq.s32.totalorder %v8114_v16, %v6105_v40 }
 0x393   :  { %5598 = vmatmul.mubr.msk.bf16.vlgmr.msra.gmra.mxu0 %vm459_vm4, %v3643_v7  ;;  %v3745_v63 = vpop.permute.xlu1 %3744 }
 0x394   :  { %5601 = vmatprep.mubr.msk.bf16.mxu0 %vm459_vm4, %v3644_v53  ;;  %5622 = vmatpush3.bf16.msra.mxu0 %v3951_v26  ;;  %vm3767_vm9 = vcmp.eq.s32.totalorder %v3745_v63, %v6105_v40  ;;  %v3894_v3 = vpop.permute.xlu0 %3893 }
 0x395   :  { %v4932_v62 = vsel %vm3767_vm9, 1.0, %v8704_v1  ;;  %vm3916_vm12 = vcmp.eq.s32.totalorder %v3894_v3, %v6105_v40 }
 0x396   :  { %v3791_v4 = vpack.c.bf16 %v4933_v27, %v4932_v62  ;;  %v4944_v48 = vsel %vm3916_vm12, 1.0, %v8704_v1 }
 0x397   :  { %v3949_v46 = vpop.permute.xlu1 %3948 }
 0x398   :  { %5613 = vmatprep.mubr.msk.bf16.mxu1 %vm459_vm4, %v3791_v4  ;;  %5623 = vmatprep.subr.bf16.mxu0 %v3949_v46  ;;  %v3903_v56 = vpop.permute.xlu0 %3902 }
 0x399   :  { %5624 = vmatpush3.bf16.msra.mxu0 %v3949_v46  ;;  %vm3919_vm15 = vcmp.eq.s32.totalorder %v3903_v56, %v6105_v40 }
 0x39a   :  { %v4947_v63 = vsel %vm3919_vm15, 1.0, %v8704_v1 }
 0x39b   :  { %5602 = vmatmul.mubr.msk.bf16.gmra.mxu0 %vm459_vm4, %v3645_v45  ;;  %v3751_v0 = vpop.permute.xlu1 %3750 }
 0x39c   :  { %vm3769_vm11 = vcmp.eq.s32.totalorder %v3751_v0, %v6105_v40  ;;  %v8131_v17 = vpop.permute.xlu0 %3908 }
 0x39d   :  { %v5247_v44 = vpop.f32.mrf.mxu0  ;;  %v4934_v30 = vsel %vm3769_vm11, 1.0, %v8704_v1  ;;  %vm3921_vm8 = vcmp.eq.s32.totalorder %v8131_v17, %v6105_v40 }
 0x39e   :  { %v3792_v52 = vpack.c.bf16 %v4935_v32, %v4934_v30  ;;  %v592_v31 = vadd.f32 %v8053_v33, %v5247_v44 }
 0x39f   :  { %v3798_v51 = vpop.permute.xlu1 %3797  ;;  %v506_v24 = vpop.f32.mrf.mxu0 }
 0x3a0   :  { %5609 = vmatprep.subr.bf16.mxu1 %v3798_v51  ;;  %v584_v58 = vadd.f32 %v8071_v59, %v506_v24  ;;  %v8142_v41 = vpop.permute.xlu0 %3914 }
 0x3a1   :  { %5610 = vmatpush3.bf16.msra.mxu1 %v3798_v51  ;;  %v5248_v15 = vpop.f32.mrf.mxu0  ;;  %vm3923_vm10 = vcmp.eq.s32.totalorder %v8142_v41, %v6105_v40 }
 0x3a2   :  { %5611 = vmatprep.subr.bf16.mxu1 %v3796_v2  ;;  %v5295_v57 = vpop.f32.mrf.mxu1  ;;  %v595_v13 = vadd.f32 %v8081_v18, %v5248_v15 }
 0x3a3   :  { %v509_v49 = vpop.f32.mrf.mxu0 }
 0x3a4   :  { %v3897_v39 = vpop.permute.xlu1 %3896  ;;  %v873_v11 = vpop.f32.mrf.mxu1  ;;  %v587_v7 = vadd.f32 %v8094_v10, %v509_v49 }
 0x3a5   :  { %vm3917_vm13 = vcmp.eq.s32.totalorder %v3897_v39, %v6105_v40  ;;  %5612 = vmatpush3.bf16.msra.mxu1 %v3796_v2  ;;  %v8156_v44 = vpop.permute.xlu0 %4097  ;;  %v4939_v39 = vsel %vm3774_vm6, 1.0, %v8704_v1 }
 0x3a6   :  { %v4945_v35 = vsel %vm3917_vm13, 1.0, %v8704_v1  ;;  %v5251_v29 = vpop.f32.mrf.mxu0  ;;  %v5296_v38 = vpop.f32.mrf.mxu1 }
 0x3a7   :  { %v3940_v28 = vpack.c.bf16 %v4945_v35, %v4944_v48  ;;  %v608_v4 = vadd.f32 %v8105_v42, %v5251_v29 }
 0x3a8   :  { %v3900_v6 = vpop.permute.xlu1 %3899  ;;  %5614 = vmatmul.mubr.msk.bf16.vlgmr.msra.gmra.mxu1 %vm459_vm4, %v3792_v52  ;;  %v522_v22 = vpop.f32.mrf.mxu0 }
 0x3a9   :  { %5629 = vmatprep.mubr.msk.bf16.mxu0 %vm459_vm4, %v3940_v28  ;;  %v876_v9 = vpop.f32.mrf.mxu1  ;;  %vm3918_vm2 = vcmp.eq.s32.totalorder %v3900_v6, %v6105_v40  ;;  %v600_v51 = vadd.f32 %v8112_v8, %v522_v22  ;;  %v4949_v22 = vsel %vm3921_vm8, 1.0, %v8704_v1 }
 0x3aa   :  { %v5252_v55 = vpop.f32.mrf.mxu0  ;;  %v4946_v62 = vsel %vm3918_vm2, 1.0, %v8704_v1 }
 0x3ab   :  { %v5299_v61 = vpop.f32.mrf.mxu1  ;;  %v3941_v3 = vpack.c.bf16 %v4947_v63, %v4946_v62  ;;  %v611_v32 = vadd.f32 %v8118_v47, %v5252_v55 }
 0x3ac   :  { %v3947_v50 = vpop.permute.xlu1 %3946  ;;  %v525_v25 = vpop.f32.mrf.mxu0 }
 0x3ad   :  { %5625 = vmatprep.subr.bf16.mxu0 %v3947_v50  ;;  %v8136_v19 = vadd.f32 %v602_v54, %v525_v25  ;;  %v889_v37 = vpop.f32.mrf.mxu1 }
 0x3ae   :  { %5626 = vmatpush3.bf16.msra.mxu0 %v3947_v50  ;;  %v5279_v60 = vpop.f32.mrf.mxu0 }
 0x3af   :  { %v757_v20 = vadd.f32 %v5279_v60, %v592_v31  ;;  %v5300_v12 = vpop.f32.mrf.mxu1 }
 0x3b0   :  { %v3757_v2 = vpop.permute.xlu1 %3756  ;;  %v724_v36 = vpop.f32.mrf.mxu0 }
 0x3b1   :  { %vm3771_vm3 = vcmp.eq.s32.totalorder %v3757_v2, %v6105_v40  ;;  %v755_v33 = vadd.f32 %v724_v36, %v584_v58  ;;  %v892_v26 = vpop.f32.mrf.mxu1  ;;  %v906_v5 = vadd.f32 %v5295_v57, %v757_v20 }
 0x3b2   :  { %v4936_v59 = vsel %vm3771_vm3, 1.0, %v8704_v1  ;;  %v5280_v21 = vpop.f32.mrf.mxu0 }
 0x3b3   :  { %v3793_v43 = vpack.c.bf16 %v4937_v23, %v4936_v59  ;;  %v758_v53 = vadd.f32 %v5280_v21, %v595_v13  ;;  %v5327_v27 = vpop.f32.mrf.mxu1  ;;  %v904_v18 = vadd.f32 %v873_v11, %v755_v33  ;;  %v4951_v21 = vsel %vm3923_vm10, 1.0, %v8704_v1 }
 0x3b4   :  { %v3945_v14 = vpop.permute.xlu1 %3944  ;;  %v727_v34 = vpop.f32.mrf.mxu0 }
 0x3b5   :  { %5617 = vmatprep.mubr.msk.bf16.mxu1 %vm459_vm4, %v3793_v43  ;;  %5627 = vmatprep.subr.bf16.mxu0 %v3945_v14  ;;  %v756_v46 = vadd.f32 %v727_v34, %v587_v7  ;;  %v1171_v45 = vpop.f32.mrf.mxu1  ;;  %v907_v10 = vadd.f32 %v5296_v38, %v758_v53  ;;  %v8169_v38 = vpop.permute.xlu0 %4191 }
 0x3b6   :  { %5628 = vmatpush3.bf16.msra.mxu0 %v3945_v14  ;;  %v5283_v0 = vpop.f32.mrf.mxu0  ;;  %vm4214_vm14 = vcmp.eq.s32.totalorder %v8169_v38, %v6105_v40 }
 0x3b7   :  { %v761_v24 = vadd.f32 %v5283_v0, %v608_v4  ;;  %v5328_v54 = vpop.f32.mrf.mxu1  ;;  %v905_v15 = vadd.f32 %v876_v9, %v756_v46 }
 0x3b8   :  { %v3763_v42 = vpop.permute.xlu1 %3762  ;;  %v740_v57 = vpop.f32.mrf.mxu0 }
 0x3b9   :  { %vm3773_vm7 = vcmp.eq.s32.totalorder %v3763_v42, %v6105_v40  ;;  %5630 = vmatmul.mubr.msk.bf16.vlgmr.msra.gmra.mxu0 %vm459_vm4, %v3941_v3  ;;  %v759_v30 = vadd.f32 %v740_v57, %v600_v51  ;;  %v1174_v49 = vpop.f32.mrf.mxu1  ;;  %v910_v48 = vadd.f32 %v5299_v61, %v761_v24 }
 0x3ba   :  { %v4938_v8 = vsel %vm3773_vm7, 1.0, %v8704_v1  ;;  %v5284_v11 = vpop.f32.mrf.mxu0 }
 0x3bb   :  { %v3794_v56 = vpack.c.bf16 %v4939_v39, %v4938_v8  ;;  %v762_v47 = vadd.f32 %v5284_v11, %v611_v32  ;;  %v5331_v52 = vpop.f32.mrf.mxu1  ;;  %v908_v35 = vadd.f32 %v889_v37, %v759_v30 }
 0x3bc   :  { %v743_v29 = vpop.f32.mrf.mxu0 }
 0x3bd   :  { %5618 = vmatmul.mubr.msk.bf16.gmra.mxu1 %vm459_vm4, %v3794_v56  ;;  %v760_v28 = vadd.f32 %v743_v29, %v8136_v19  ;;  %v1187_v6 = vpop.f32.mrf.mxu1  ;;  %v911_v16 = vadd.f32 %v5300_v12, %v762_v47  ;;  %v8178_v12 = vpop.permute.xlu0 %4200 }
 0x3be   :  { %v3906_v9 = vpop.permute.xlu1 %3905  ;;  %v5311_v55 = vpop.f32.mrf.mxu0 }
 0x3bf   :  { %vm3920_vm9 = vcmp.eq.s32.totalorder %v3906_v9, %v6105_v40  ;;  %v1055_v17 = vadd.f32 %v5311_v55, %v906_v5  ;;  %v5332_v61 = vpop.f32.mrf.mxu1  ;;  %v909_v50 = vadd.f32 %v892_v26, %v760_v28 }
 0x3c0   :  { %v4948_v25 = vsel %vm3920_vm9, 1.0, %v8704_v1  ;;  %v1022_v31 = vpop.f32.mrf.mxu0  ;;  %vm4217_vm9 = vcmp.eq.s32.totalorder %v8178_v12, %v6105_v40 }
 0x3c1   :  { %v3942_v37 = vpack.c.bf16 %v4949_v22, %v4948_v25  ;;  %v1053_v60 = vadd.f32 %v1022_v31, %v904_v18  ;;  %v1190_v58 = vpop.f32.mrf.mxu1  ;;  %v1204_v20 = vadd.f32 %v5327_v27, %v1055_v17  ;;  %v4046_v62 = vpop.permute.xlu0 %4045 }
 0x3c2   :  { %v4100_v23 = vpop.permute.xlu1 %4099  ;;  %v5312_v19 = vpop.f32.mrf.mxu0  ;;  %vm4066_vm12 = vcmp.eq.s32.totalorder %v4046_v62, %v6105_v40 }
 0x3c3   :  { %5633 = vmatprep.mubr.msk.bf16.mxu0 %vm459_vm4, %v3942_v37  ;;  %5637 = vmatprep.subr.bf16.mxu1 %v4100_v23  ;;  %v1056_v13 = vadd.f32 %v5312_v19, %v907_v10  ;;  %v5359_v2 = vpop.f32.mrf.mxu1  ;;  %v1202_v36 = vadd.f32 %v1171_v45, %v1053_v60  ;;  %v4957_v42 = vsel %vm4066_vm12, 1.0, %v8704_v1 }
 0x3c4   :  { %5638 = vmatpush3.bf16.msra.mxu1 %v4100_v23  ;;  %v1025_v33 = vpop.f32.mrf.mxu0 }
 0x3c5   :  { %5639 = vmatprep.subr.bf16.mxu1 %v8156_v44  ;;  %v1054_v26 = vadd.f32 %v1025_v33, %v905_v15  ;;  %v1469_v5 = vpop.f32.mrf.mxu1  ;;  %v1205_v59 = vadd.f32 %v5328_v54, %v1056_v13  ;;  %v4052_v9 = vpop.permute.xlu0 %4051 }
 0x3c6   :  { %v3912_v7 = vpop.permute.xlu1 %3911  ;;  %v5315_v43 = vpop.f32.mrf.mxu0  ;;  %vm4068_vm15 = vcmp.eq.s32.totalorder %v4052_v9, %v6105_v40 }
 0x3c7   :  { %vm3922_vm11 = vcmp.eq.s32.totalorder %v3912_v7, %v6105_v40  ;;  %v1059_v41 = vadd.f32 %v5315_v43, %v910_v48  ;;  %v5360_v53 = vpop.f32.mrf.mxu1  ;;  %v1203_v27 = vadd.f32 %v1174_v49, %v1054_v26 }
 0x3c8   :  { %v4950_v18 = vsel %vm3922_vm11, 1.0, %v8704_v1  ;;  %5640 = vmatpush3.bf16.msra.mxu1 %v8156_v44  ;;  %v1038_v63 = vpop.f32.mrf.mxu0 }
 0x3c9   :  { %v3943_v14 = vpack.c.bf16 %v4951_v21, %v4950_v18  ;;  %v1057_v34 = vadd.f32 %v1038_v63, %v908_v35  ;;  %v1472_v4 = vpop.f32.mrf.mxu1  ;;  %v1208_v46 = vadd.f32 %v5331_v52, %v1059_v41  ;;  %v4968_v41 = vsel %vm4214_vm14, 1.0, %v8704_v1 }
 0x3ca   :  { %v4249_v45 = vpop.permute.xlu1 %4248  ;;  %v5316_v10 = vpop.f32.mrf.mxu0 }
 0x3cb   :  { %5634 = vmatmul.mubr.msk.bf16.gmra.mxu0 %vm459_vm4, %v3943_v14  ;;  %5653 = vmatprep.subr.bf16.mxu0 %v4249_v45  ;;  %v1060_v0 = vadd.f32 %v5316_v10, %v911_v16  ;;  %v5363_v3 = vpop.f32.mrf.mxu1  ;;  %v1206_v51 = vadd.f32 %v1187_v6, %v1057_v34 }
 0x3cc   :  { %5654 = vmatpush3.bf16.msra.mxu0 %v4249_v45  ;;  %v1041_v24 = vpop.f32.mrf.mxu0 }
 0x3cd   :  { %v1058_v54 = vadd.f32 %v1041_v24, %v909_v50  ;;  %v1485_v44 = vpop.f32.mrf.mxu1  ;;  %v1209_v15 = vadd.f32 %v5332_v61, %v1060_v0 }
 0x3ce   :  { %v4043_v57 = vpop.permute.xlu1 %4042 }
 0x3cf   :  { %vm4065_vm13 = vcmp.eq.s32.totalorder %v4043_v57, %v6105_v40  ;;  %v5343_v32 = vpop.f32.mrf.mxu0  ;;  %v5364_v30 = vpop.f32.mrf.mxu1  ;;  %v1207_v49 = vadd.f32 %v1190_v58, %v1058_v54 }
 0x3d0   :  { %v4956_v48 = vsel %vm4065_vm13, 1.0, %v8704_v1  ;;  %v1353_v39 = vadd.f32 %v5343_v32, %v1204_v20 }
 0x3d1   :  { %v4089_v8 = vpack.c.bf16 %v4957_v42, %v4956_v48  ;;  %v1320_v11 = vpop.f32.mrf.mxu0  ;;  %v1488_v56 = vpop.f32.mrf.mxu1 }
 0x3d2   :  { %v4247_v47 = vpop.permute.xlu1 %4246  ;;  %v1351_v52 = vadd.f32 %v1320_v11, %v1202_v36  ;;  %v1502_v35 = vadd.f32 %v5359_v2, %v1353_v39 }
 0x3d3   :  { %5645 = vmatprep.mubr.msk.bf16.mxu1 %vm459_vm4, %v4089_v8  ;;  %5655 = vmatprep.subr.bf16.mxu0 %v4247_v47  ;;  %v5344_v29 = vpop.f32.mrf.mxu0 }
 0x3d4   :  { %5656 = vmatpush3.bf16.msra.mxu0 %v4247_v47  ;;  %v1354_v28 = vadd.f32 %v5344_v29, %v1205_v59  ;;  %v5391_v6 = vpop.f32.mrf.mxu1  ;;  %v1500_v16 = vadd.f32 %v1469_v5, %v1351_v52  ;;  %v4094_v5 = vpop.permute.xlu0 %4093 }
 0x3d5   :  { %v1323_v22 = vpop.f32.mrf.mxu0 }
 0x3d6   :  { %v1352_v55 = vadd.f32 %v1323_v22, %v1203_v27  ;;  %v1767_v17 = vpop.f32.mrf.mxu1  ;;  %v1503_v61 = vadd.f32 %v5360_v53, %v1354_v28  ;;  %v4959_v53 = vsel %vm4068_vm15, 1.0, %v8704_v1 }
 0x3d7   :  { %v4049_v50 = vpop.permute.xlu1 %4048  ;;  %v5347_v25 = vpop.f32.mrf.mxu0 }
 0x3d8   :  { %v1357_v31 = vadd.f32 %v5347_v25, %v1208_v46  ;;  %v5392_v37 = vpop.f32.mrf.mxu1  ;;  %v1501_v60 = vadd.f32 %v1472_v4, %v1352_v55  ;;  %vm4067_vm2 = vcmp.eq.s32.totalorder %v4049_v50, %v6105_v40  ;;  %v4058_v57 = vpop.permute.xlu0 %4057 }
 0x3d9   :  { %v1336_v58 = vpop.f32.mrf.mxu0  ;;  %v4958_v27 = vsel %vm4067_vm2, 1.0, %v8704_v1  ;;  %vm4070_vm6 = vcmp.eq.s32.totalorder %v4058_v57, %v6105_v40 }
 0x3da   :  { %v1355_v20 = vadd.f32 %v1336_v58, %v1206_v51  ;;  %v1770_v23 = vpop.f32.mrf.mxu1  ;;  %v1506_v19 = vadd.f32 %v5363_v3, %v1357_v31  ;;  %v4090_v46 = vpack.c.bf16 %v4959_v53, %v4958_v27  ;;  %v4961_v28 = vsel %vm4070_vm6, 1.0, %v8704_v1 }
 0x3db   :  { %v4096_v13 = vpop.permute.xlu1 %4095  ;;  %v5348_v2 = vpop.f32.mrf.mxu0 }
 0x3dc   :  { %5641 = vmatprep.subr.bf16.mxu1 %v4096_v13  ;;  %v1358_v36 = vadd.f32 %v5348_v2, %v1209_v15  ;;  %v5395_v33 = vpop.f32.mrf.mxu1  ;;  %v1504_v26 = vadd.f32 %v1485_v44, %v1355_v20  ;;  %v4971_v2 = vsel %vm4217_vm9, 1.0, %v8704_v1 }
 0x3dd   :  { %5642 = vmatpush3.bf16.msra.mxu1 %v4096_v13  ;;  %v1339_v59 = vpop.f32.mrf.mxu0 }
 0x3de   :  { %5643 = vmatprep.subr.bf16.mxu1 %v4094_v5  ;;  %v1356_v21 = vadd.f32 %v1339_v59, %v1207_v49  ;;  %v1783_v7 = vpop.f32.mrf.mxu1  ;;  %v1507_v43 = vadd.f32 %v5364_v30, %v1358_v36 }
 0x3df   :  { %v4195_v18 = vpop.permute.xlu1 %4194 }
 0x3e0   :  { %vm4215_vm3 = vcmp.eq.s32.totalorder %v4195_v18, %v6105_v40  ;;  %v5375_v63 = vpop.f32.mrf.mxu0  ;;  %v5396_v62 = vpop.f32.mrf.mxu1  ;;  %v1505_v14 = vadd.f32 %v1488_v56, %v1356_v21 }
 0x3e1   :  { %v4969_v34 = vsel %vm4215_vm3, 1.0, %v8704_v1  ;;  %5644 = vmatpush3.bf16.msra.mxu1 %v4094_v5  ;;  %v1651_v4 = vadd.f32 %v5375_v63, %v1502_v35 }
 0x3e2   :  { %v4238_v45 = vpack.c.bf16 %v4969_v34, %v4968_v41  ;;  %v1618_v10 = vpop.f32.mrf.mxu0  ;;  %v1786_v0 = vpop.f32.mrf.mxu1 }
 0x3e3   :  { %v1649_v38 = vadd.f32 %v1618_v10, %v1500_v16  ;;  %v1800_v3 = vadd.f32 %v5391_v6, %v1651_v4 }
 0x3e4   :  { %v4198_v51 = vpop.permute.xlu1 %4197  ;;  %5646 = vmatmul.mubr.msk.bf16.vlgmr.msra.gmra.mxu1 %vm459_vm4, %v4090_v46  ;;  %5661 = vmatprep.mubr.msk.bf16.mxu0 %vm459_vm4, %v4238_v45  ;;  %v5376_v24 = vpop.f32.mrf.mxu0 }
 0x3e5   :  { %v1652_v54 = vadd.f32 %v5376_v24, %v1503_v61  ;;  %v5423_v44 = vpop.f32.mrf.mxu1  ;;  %v1798_v15 = vadd.f32 %v1767_v17, %v1649_v38  ;;  %vm4216_vm7 = vcmp.eq.s32.totalorder %v4198_v51, %v6105_v40  ;;  %v4064_v17 = vpop.permute.xlu0 %4063 }
 0x3e6   :  { %v1621_v42 = vpop.f32.mrf.mxu0  ;;  %v4970_v58 = vsel %vm4216_vm7, 1.0, %v8704_v1  ;;  %vm4072_vm10 = vcmp.eq.s32.totalorder %v4064_v17, %v6105_v40 }
 0x3e7   :  { %v1650_v32 = vadd.f32 %v1621_v42, %v1501_v60  ;;  %v2065_v30 = vpop.f32.mrf.mxu1  ;;  %v1801_v49 = vadd.f32 %v5392_v37, %v1652_v54 }
 0x3e8   :  { %v4245_v48 = vpop.permute.xlu1 %4244  ;;  %v5379_v39 = vpop.f32.mrf.mxu0 }
 0x3e9   :  { %5657 = vmatprep.subr.bf16.mxu0 %v4245_v48  ;;  %v1655_v8 = vadd.f32 %v5379_v39, %v1506_v19  ;;  %v5424_v11 = vpop.f32.mrf.mxu1  ;;  %v1799_v56 = vadd.f32 %v1770_v23, %v1650_v32  ;;  %v4207_v12 = vpop.permute.xlu0 %4206 }
 0x3ea   :  { %5658 = vmatpush3.bf16.msra.mxu0 %v4245_v48  ;;  %v1634_v47 = vpop.f32.mrf.mxu0  ;;  %vm4219_vm12 = vcmp.eq.s32.totalorder %v4207_v12, %v6105_v40 }
 0x3eb   :  { %v1653_v52 = vadd.f32 %v1634_v47, %v1504_v26  ;;  %v2068_v35 = vpop.f32.mrf.mxu1  ;;  %v1804_v29 = vadd.f32 %v5395_v33, %v1655_v8  ;;  %v4239_v33 = vpack.c.bf16 %v4971_v2, %v4970_v58  ;;  %v4973_v45 = vsel %vm4219_vm12, 1.0, %v8704_v1 }
 0x3ec   :  { %v4055_v6 = vpop.permute.xlu1 %4054  ;;  %v5380_v16 = vpop.f32.mrf.mxu0 }
 0x3ed   :  { %vm4069_vm8 = vcmp.eq.s32.totalorder %v4055_v6, %v6105_v40  ;;  %v1656_v22 = vadd.f32 %v5380_v16, %v1507_v43  ;;  %v5427_v9 = vpop.f32.mrf.mxu1  ;;  %v1802_v55 = vadd.f32 %v1783_v7, %v1653_v52  ;;  %v4963_v43 = vsel %vm4072_vm10, 1.0, %v8704_v1 }
 0x3ee   :  { %v4960_v61 = vsel %vm4069_vm8, 1.0, %v8704_v1  ;;  %v1637_v50 = vpop.f32.mrf.mxu0 }
 0x3ef   :  { %v4091_v25 = vpack.c.bf16 %v4961_v28, %v4960_v61  ;;  %v1654_v31 = vadd.f32 %v1637_v50, %v1505_v14  ;;  %v2081_v37 = vpop.f32.mrf.mxu1  ;;  %v1805_v60 = vadd.f32 %v5396_v62, %v1656_v22 }
 0x3f0   :  { %v4243_v20 = vpop.permute.xlu1 %4242 }
 0x3f1   :  { %5649 = vmatprep.mubr.msk.bf16.mxu1 %vm459_vm4, %v4091_v25  ;;  %5659 = vmatprep.subr.bf16.mxu0 %v4243_v20  ;;  %v5407_v23 = vpop.f32.mrf.mxu0  ;;  %v5428_v19 = vpop.f32.mrf.mxu1  ;;  %v1803_v13 = vadd.f32 %v1786_v0, %v1654_v31 }
 0x3f2   :  { %5660 = vmatpush3.bf16.msra.mxu0 %v4243_v20  ;;  %v1949_v36 = vadd.f32 %v5407_v23, %v1800_v3 }
 0x3f3   :  { %v1916_v26 = vpop.f32.mrf.mxu0  ;;  %v2084_v5 = vpop.f32.mrf.mxu1 }
 0x3f4   :  { %v4061_v59 = vpop.permute.xlu1 %4060  ;;  %v1947_v21 = vadd.f32 %v1916_v26, %v1798_v15  ;;  %v2098_v7 = vadd.f32 %v5423_v44, %v1949_v36 }
 0x3f5   :  { %vm4071_vm11 = vcmp.eq.s32.totalorder %v4061_v59, %v6105_v40  ;;  %5662 = vmatmul.mubr.msk.bf16.vlgmr.msra.gmra.mxu0 %vm459_vm4, %v4239_v33  ;;  %v5408_v41 = vpop.f32.mrf.mxu0 }
 0x3f6   :  { %v4962_v53 = vsel %vm4071_vm11, 1.0, %v8704_v1  ;;  %v1950_v27 = vadd.f32 %v5408_v41, %v1801_v49  ;;  %v5455_v18 = vpop.f32.mrf.mxu1  ;;  %v2096_v63 = vadd.f32 %v2065_v30, %v1947_v21 }
 0x3f7   :  { %v4092_v62 = vpack.c.bf16 %v4963_v43, %v4962_v53  ;;  %v1919_v14 = vpop.f32.mrf.mxu0 }
 0x3f8   :  { %v1948_v34 = vadd.f32 %v1919_v14, %v1799_v56  ;;  %v2363_v4 = vpop.f32.mrf.mxu1  ;;  %v2099_v46 = vadd.f32 %v5424_v11, %v1950_v27 }
 0x3f9   :  { %v4204_v10 = vpop.permute.xlu1 %4203  ;;  %5650 = vmatmul.mubr.msk.bf16.gmra.mxu1 %vm459_vm4, %v4092_v62  ;;  %v5411_v0 = vpop.f32.mrf.mxu0 }
 0x3fa   :  { %vm4218_vm13 = vcmp.eq.s32.totalorder %v4204_v10, %v6105_v40  ;;  %v1953_v38 = vadd.f32 %v5411_v0, %v1804_v29  ;;  %v5456_v3 = vpop.f32.mrf.mxu1  ;;  %v2097_v51 = vadd.f32 %v2068_v35, %v1948_v34 }
 0x3fb   :  { %v4972_v24 = vsel %vm4218_vm13, 1.0, %v8704_v1  ;;  %v1932_v54 = vpop.f32.mrf.mxu0 }
 0x3fc   :  { %v4240_v44 = vpack.c.bf16 %v4973_v45, %v4972_v24  ;;  %v1951_v15 = vadd.f32 %v1932_v54, %v1802_v55  ;;  %v2366_v42 = vpop.f32.mrf.mxu1  ;;  %v2102_v57 = vadd.f32 %v5427_v9, %v1953_v38 }
 0x3fd   :  { %v4210_v32 = vpop.permute.xlu1 %4209  ;;  %v5412_v30 = vpop.f32.mrf.mxu0 }
 0x3fe   :  { %5665 = vmatprep.mubr.msk.bf16.mxu0 %vm459_vm4, %v4240_v44  ;;  %v1954_v49 = vadd.f32 %v5412_v30, %v1805_v60  ;;  %v5459_v48 = vpop.f32.mrf.mxu1  ;;  %v2100_v39 = vadd.f32 %v2081_v37, %v1951_v15  ;;  %vm4220_vm14 = vcmp.eq.s32.totalorder %v4210_v32, %v6105_v40 }
 0x3ff   :  { %v1935_v8 = vpop.f32.mrf.mxu0  ;;  %v4974_v16 = vsel %vm4220_vm14, 1.0, %v8704_v1 }
 0x400   :  { %v1952_v11 = vadd.f32 %v1935_v8, %v1803_v13  ;;  %v2379_v56 = vpop.f32.mrf.mxu1  ;;  %v2103_v47 = vadd.f32 %v5428_v19, %v1954_v49 }
 0x401   :  { %v4213_v52 = vpop.permute.xlu1 %4212  ;;  %v5439_v35 = vpop.f32.mrf.mxu0 }
 0x402   :  { %vm4221_vm15 = vcmp.eq.s32.totalorder %v4213_v52, %v6105_v40  ;;  %v2247_v29 = vadd.f32 %v5439_v35, %v2098_v7  ;;  %v5460_v28 = vpop.f32.mrf.mxu1  ;;  %v2101_v6 = vadd.f32 %v2084_v5, %v1952_v11 }
 0x403   :  { %v4975_v22 = vsel %vm4221_vm15, 1.0, %v8704_v1  ;;  %v2214_v9 = vpop.f32.mrf.mxu0 }
 0x404   :  { %v4241_v55 = vpack.c.bf16 %v4975_v22, %v4974_v16  ;;  %v2245_v17 = vadd.f32 %v2214_v9, %v2096_v63  ;;  %v2382_v61 = vpop.f32.mrf.mxu1  ;;  %v2396_v50 = vadd.f32 %v5455_v18, %v2247_v29 }
 0x405   :  { %v5440_v25 = vpop.f32.mrf.mxu0 }
 0x406   :  { %5666 = vmatmul.mubr.msk.bf16.gmra.mxu0 %vm459_vm4, %v4241_v55  ;;  %v2248_v31 = vadd.f32 %v5440_v25, %v2099_v46  ;;  %v2394_v37 = vadd.f32 %v2363_v4, %v2245_v17  ;;  %v5487_v58 = vpop.f32.mrf.mxu1 }
 0x407   :  { %v2217_v60 = vpop.f32.mrf.mxu0 }
 0x408   :  { %v2246_v40 = vadd.f32 %v2217_v60, %v2097_v51  ;;  %v2397_v20 = vadd.f32 %v5456_v3, %v2248_v31  ;;  %v2661_v36 = vpop.f32.mrf.mxu1 }
 0x409   :  { %v5443_v23 = vpop.f32.mrf.mxu0 }
 0x40a   :  { %v2251_v19 = vadd.f32 %v5443_v23, %v2102_v57  ;;  %v2395_v13 = vadd.f32 %v2366_v42, %v2246_v40  ;;  %v5488_v21 = vpop.f32.mrf.mxu1 }
 0x40b   :  { %v2230_v2 = vpop.f32.mrf.mxu0 }
 0x40c   :  { %v2249_v1 = vadd.f32 %v2230_v2, %v2100_v39  ;;  %v2400_v12 = vadd.f32 %v5459_v48, %v2251_v19  ;;  %v8232_v63 = vpop.f32.mrf.mxu1 }
 0x40d   :  { %v5444_v33 = vpop.f32.mrf.mxu0 }
 0x40e   :  { %v2252_v26 = vadd.f32 %v5444_v33, %v2103_v47  ;;  %v2398_v5 = vadd.f32 %v2379_v56, %v2249_v1  ;;  %v5491_v10 = vpop.f32.mrf.mxu1 }
 0x40f   :  { %v2233_v59 = vpop.f32.mrf.mxu0 }
 0x410   :  { %v2250_v7 = vadd.f32 %v2233_v59, %v2101_v6  ;;  %v2401_v43 = vadd.f32 %v5460_v28, %v2252_v26  ;;  %v8236_v24 = vpop.f32.mrf.mxu1 }
 0x411   :  { %v5471_v41 = vpop.f32.mrf.mxu0 }
 0x412   :  { %v2545_v53 = vadd.f32 %v5471_v41, %v2396_v50  ;;  %v2399_v27 = vadd.f32 %v2382_v61, %v2250_v7  ;;  %v5492_v32 = vpop.f32.mrf.mxu1 }
 0x413   :  { %v2512_v18 = vpop.f32.mrf.mxu0 }
 0x414   :  { %v2543_v62 = vadd.f32 %v2512_v18, %v2394_v37  ;;  %v2694_v14 = vadd.f32 %v5487_v58, %v2545_v53  ;;  %v8254_v16 = vpop.f32.mrf.mxu1 }
 0x415   :  { %v5472_v34 = vpop.f32.mrf.mxu0 }
 0x416   :  { %v2546_v4 = vadd.f32 %v5472_v34, %v2397_v20  ;;  %v2692_v46 = vadd.f32 %v2661_v36, %v2543_v62 }
 0x417   :  { %v2515_v45 = vpop.f32.mrf.mxu0  ;;  %v8258_v55 = vpop.f32.mrf.mxu1 }
 0x418   :  { %v8234_v0 = vadd.f32 %v2515_v45, %v2395_v13  ;;  %v2695_v38 = vadd.f32 %v5488_v21, %v2546_v4 }
 0x419   :  { %v8260_v17 = vpop.f32.mrf.mxu1 }
 0x41a   :  { %v5475_v3 = vpop.f32.mrf.mxu0 }
 0x41b   :  { %v2549_v51 = vadd.f32 %v5475_v3, %v2400_v12  ;;  %v8264_v50 = vpop.f32.mrf.mxu1 }
 0x41c   :  { %v2528_v54 = vpop.f32.mrf.mxu0 }
 0x41d   :  { %v8238_v44 = vadd.f32 %v2528_v54, %v2398_v5  ;;  %v2698_v15 = vadd.f32 %v5491_v10, %v2549_v51  ;;  %v8268_v31 = vpop.f32.mrf.mxu1  ;;  %v4444_v54 = vld [vmem:[%s8595_s8] sm:$0x3] }
 0x41e   :  { %v5476_v42 = vpop.f32.mrf.mxu0  ;;  %5680 = vmatprep.subr.msk.bf16.mxu1 %vm256_vm1, %v4444_v54 }
 0x41f   :  { %v2550_v57 = vadd.f32 %v5476_v42, %v2401_v43  ;;  %v8270_v60 = vpop.f32.mrf.mxu1 }
 0x420   :  { %v2531_v30 = vpop.f32.mrf.mxu0 }
 0x421   :  { %v8240_v49 = vadd.f32 %v2531_v30, %v2399_v27  ;;  %v2699_v48 = vadd.f32 %v5492_v32, %v2550_v57  ;;  %v8274_v40 = vpop.f32.mrf.mxu1 }
 0x422   :  { %v5503_v39 = vpop.f32.mrf.mxu0 }
 0x423   :  { %v8242_v8 = vadd.f32 %v5503_v39, %v2694_v14  ;;  %v8278_v23 = vpop.f32.mrf.mxu1 }
 0x424   :  { %v2810_v11 = vpop.f32.mrf.mxu0 }
 0x425   :  { %v8244_v56 = vadd.f32 %v2810_v11, %v2692_v46  ;;  %v8282_v13 = vpop.f32.mrf.mxu1 }
 0x426   :  { %v5504_v47 = vpop.f32.mrf.mxu0 }
 0x427   :  { %v8246_v52 = vadd.f32 %v5504_v47, %v2695_v38 }
 0x428   :  { %v8248_v35 = vpop.f32.mrf.mxu0  ;;  %v8286_v36 = vpop.f32.mrf.mxu1 }
 0x42a   :  { %v3257_v12 = vpop.f32.mrf.mxu1 }
 0x42b   :  { %v5507_v29 = vpop.f32.mrf.mxu0 }
 0x42c   :  { %v8250_v28 = vadd.f32 %v5507_v29, %v2698_v15  ;;  %v8292_v26 = vpop.f32.mrf.mxu1  ;;  %v4458_v15 = vsel %vm256_vm1, %v4444_v54, 0 }
 0x42d   :  { %v8252_v6 = vpop.f32.mrf.mxu0  ;;  %5670 = vmatpush3.bf16.msra.mxu1 %v4458_v15 }
 0x42e   :  { %v8294_v59 = vpop.f32.mrf.mxu1 }
 0x42f   :  { %v5508_v22 = vpop.f32.mrf.mxu0 }
 0x430   :  { %v8256_v9 = vadd.f32 %v5508_v22, %v2699_v48  ;;  %v8296_v7 = vpop.f32.mrf.mxu1 }
 0x431   :  { %v8262_v61 = vpop.f32.mrf.mxu0 }
 0x432   :  { %v8298_v41 = vpop.f32.mrf.mxu1 }
 0x433   :  { %v8266_v25 = vpop.f32.mrf.mxu0 }
 0x434   :  { %v8300_v27 = vpop.f32.mrf.mxu1 }
 0x435   :  { %v3108_v37 = vpop.f32.mrf.mxu0  ;;  %8998 = vst [vmem:[#allocation22_spill] sm:$0xff] %v8300_v27 }
 0x436   :  { %v8304_v62 = vpop.f32.mrf.mxu1 }
 0x437   :  { %v8272_v58 = vpop.f32.mrf.mxu0  ;;  %9000 = vst [vmem:[#allocation2_spill] sm:$0xff] %v8304_v62 }
 0x439   :  { %v8276_v20 = vpop.f32.mrf.mxu0  ;;  %v5583_v34 = vpop.f32.mrf.mxu1 }
 0x43b   :  { %v8280_v19 = vpop.f32.mrf.mxu0  ;;  %v3555_v46 = vpop.f32.mrf.mxu1 }
 0x43d   :  { %v8284_v2 = vpop.f32.mrf.mxu0  ;;  %v5584_v10 = vpop.f32.mrf.mxu1 }
 0x43f   :  { %v8288_v1 = vpop.f32.mrf.mxu0  ;;  %v3558_v3 = vpop.f32.mrf.mxu1 }
 0x441   :  { %v8290_v33 = vpop.f32.mrf.mxu0 }
 0x442   :  { %v8317_v42 = vpop.f32.mrf.mxu1 }
 0x443   :  { %v5567_v5 = vpop.f32.mrf.mxu0  ;;  %9004 = vst [vmem:[#allocation112_spill] sm:$0xff] %v8317_v42 }
 0x444   :  { %v8319_v32 = vpop.f32.mrf.mxu1 }
 0x445   :  { %v3406_v21 = vpop.f32.mrf.mxu0  ;;  %9005 = vst [vmem:[#allocation107_spill] sm:$0xff] %v8319_v32 }
 0x446   :  { %v8321_v48 = vpop.f32.mrf.mxu1 }
 0x447   :  { %v5568_v43 = vpop.f32.mrf.mxu0  ;;  %9006 = vst [vmem:[#allocation17_spill] sm:$0xff] %v8321_v48  ;;  %v2693_v48 = vadd.f32 %v8232_v63, %v8234_v0  ;;  %v2993_v63 = vadd.f32 %v8264_v50, %v8246_v52 }
 0x448   :  { %v8325_v11 = vpop.f32.mrf.mxu1 }
 0x449   :  { %v3409_v53 = vpop.f32.mrf.mxu0  ;;  %9008 = vst [vmem:[#allocation19_spill] sm:$0xff] %v8325_v11  ;;  %v2842_v11 = vadd.f32 %v8248_v35, %v2693_v48  ;;  %v3142_v35 = vadd.f32 %v8272_v58, %v2993_v63 }
 0x44b   :  { %v8302_v18 = vpop.f32.mrf.mxu0  ;;  %v2991_v0 = vadd.f32 %v8268_v31, %v2842_v11  ;;  %v3291_v52 = vadd.f32 %v8292_v26, %v3142_v35  ;;  %v2696_v31 = vadd.f32 %v8236_v24, %v8238_v44 }
 0x44c   :  { %8999 = vst [vmem:[#allocation104_spill] sm:$0xff] %v8302_v18 }
 0x44d   :  { %v8306_v14 = vpop.f32.mrf.mxu0  ;;  %v3440_v58 = vadd.f32 %v5568_v43, %v3291_v52 }
 0x44e   :  { %9001 = vst [vmem:[#allocation3_spill] sm:$0xff] %v8306_v14 }
 0x44f   :  { %v8308_v4 = vpop.f32.mrf.mxu0 }
 0x450   :  { %9002 = vst [vmem:[#allocation5_spill] sm:$0xff] %v8308_v4 }
 0x451   :  { %v8310_v45 = vpop.f32.mrf.mxu0 }
 0x452   :  { %9003 = vst [vmem:[#allocation8_spill] sm:$0xff] %v8310_v45 }
 0x453   :  { %v5599_v38 = vpop.f32.mrf.mxu0  ;;  %v9017_v52 = vld [vmem:[#allocation104_spill] sm:$0xff] }
 0x455   :  { %v3704_v51 = vpop.f32.mrf.mxu0 }
 0x457   :  { %v5600_v57 = vpop.f32.mrf.mxu0 }
 0x459   :  { %v3707_v30 = vpop.f32.mrf.mxu0 }
 0x45b   :  { %v8323_v39 = vpop.f32.mrf.mxu0 }
 0x45c   :  { %9007 = vst [vmem:[#allocation24_spill] sm:$0xff] %v8323_v39 }
 0x45d   :  { %v8327_v47 = vpop.f32.mrf.mxu0 }
 0x45e   :  { %9009 = vst [vmem:[#allocation26_spill] sm:$0xff] %v8327_v47 }
 0x45f   :  { %v8329_v22 = vpop.f32.mrf.mxu0 }
 0x460   :  { %9010 = vst [vmem:[#allocation131_spill] sm:$0xff] %v8329_v22  ;;  %v2990_v22 = vadd.f32 %v8260_v17, %v8244_v56  ;;  %v3140_v56 = vadd.f32 %v8276_v20, %v2991_v0 }
 0x461   :  { %v8331_v54 = vpop.f32.mrf.mxu0 }
 0x462   :  { %9011 = vst [vmem:[#allocation126_spill] sm:$0xff] %v8331_v54  ;;  %v2992_v54 = vadd.f32 %v8258_v55, %v8242_v8  ;;  %v3139_v47 = vadd.f32 %v3108_v37, %v2990_v22  ;;  %v3289_v50 = vadd.f32 %v8294_v59, %v3140_v56  ;;  %v3589_v59 = vadd.f32 %v5584_v10, %v3440_v58 }
 0x464   :  { %v3288_v17 = vadd.f32 %v3257_v12, %v3139_v47  ;;  %v3438_v11 = vadd.f32 %v3409_v53, %v3289_v50  ;;  %v2845_v12 = vadd.f32 %v8252_v6, %v2696_v31  ;;  %v3738_v6 = vadd.f32 %v5600_v57, %v3589_v59  ;;  %v9018_v31 = vld [vmem:[#allocation5_spill] sm:$0xff] }
 0x466   :  { %v3437_v55 = vadd.f32 %v3406_v21, %v3288_v17  ;;  %v3587_v63 = vadd.f32 %v3558_v3, %v3438_v11  ;;  %v2994_v24 = vadd.f32 %v8274_v40, %v2845_v12  ;;  %v9015_v17 = vld [vmem:[#allocation22_spill] sm:$0xff] }
 0x468   :  { %v5615_v29 = vpop.f32.mrf.mxu1  ;;  %v3586_v20 = vadd.f32 %v3555_v46, %v3437_v55  ;;  %v3736_v53 = vadd.f32 %v3707_v30, %v3587_v63 }
 0x46a   :  { %v3853_v45 = vpop.f32.mrf.mxu1 }
 0x46c   :  { %v5616_v42 = vpop.f32.mrf.mxu1 }
 0x46e   :  { %v3856_v4 = vpop.f32.mrf.mxu1 }
 0x46f   :  { %v3885_v40 = vadd.f32 %v3856_v4, %v3736_v53  ;;  %v9022_v53 = vld [vmem:[#allocation26_spill] sm:$0xff] }
 0x479   :  { %v5631_v15 = vpop.f32.mrf.mxu0 }
 0x47b   :  { %v4002_v18 = vpop.f32.mrf.mxu0 }
 0x47d   :  { %v8333_v32 = vpop.f32.mrf.mxu1  ;;  %v5632_v39 = vpop.f32.mrf.mxu0 }
 0x47e   :  { %9012 = vst [vmem:[#allocation6_spill] sm:$0xff] %v8333_v32  ;;  %v3141_v32 = vadd.f32 %v8266_v25, %v2992_v54 }
 0x47f   :  { %v8337_v62 = vpop.f32.mrf.mxu1  ;;  %v4005_v27 = vpop.f32.mrf.mxu0 }
 0x480   :  { %9013 = vst [vmem:[#allocation10_spill] sm:$0xff] %v8337_v62  ;;  %v3290_v8 = vadd.f32 %v8286_v36, %v3141_v32  ;;  %v2697_v36 = vadd.f32 %v8254_v16, %v8240_v49  ;;  %v2996_v16 = vadd.f32 %v8270_v60, %v8250_v28 }
 0x481   :  { %v8344_v14 = vpop.f32.mrf.mxu1 }
 0x482   :  { %v3439_v22 = vadd.f32 %v5567_v5, %v3290_v8  ;;  %v3735_v5 = vadd.f32 %v3704_v51, %v3586_v20  ;;  %v2846_v26 = vadd.f32 %v8262_v61, %v2697_v36  ;;  %v2997_v61 = vadd.f32 %v8278_v23, %v8256_v9  ;;  %v9016_v8 = vld [vmem:[#allocation2_spill] sm:$0xff] }
 0x483   :  { %v8354_v48 = vpop.f32.mrf.mxu1  ;;  %v3145_v57 = vadd.f32 %v8280_v19, %v2996_v16 }
 0x484   :  { %v3588_v47 = vadd.f32 %v5583_v34, %v3439_v22  ;;  %v3884_v0 = vadd.f32 %v3853_v45, %v3735_v5  ;;  %v3143_v34 = vadd.f32 %v8284_v2, %v2994_v24  ;;  %v2995_v10 = vadd.f32 %v8282_v13, %v2846_v26 }
 0x485   :  { %v3146_v30 = vadd.f32 %v8288_v1, %v2997_v61  ;;  %v4034_v2 = vadd.f32 %v4005_v27, %v3885_v40  ;;  %v3294_v19 = vadd.f32 %v8296_v7, %v3145_v57  ;;  %v9019_v7 = vld [vmem:[#allocation8_spill] sm:$0xff] }
 0x486   :  { %v3737_v54 = vadd.f32 %v5599_v38, %v3588_v47  ;;  %v4033_v49 = vadd.f32 %v4002_v18, %v3884_v0  ;;  %v3887_v38 = vadd.f32 %v5616_v42, %v3738_v6  ;;  %v3144_v18 = vadd.f32 %v8290_v33, %v2995_v10  ;;  %v9020_v47 = vld [vmem:[#allocation107_spill] sm:$0xff] }
 0x487   :  { %v3292_v9 = vadd.f32 %v8298_v41, %v3143_v34  ;;  %v3295_v33 = vadd.f32 %v9015_v17, %v3146_v30  ;;  %v3443_v50 = vadd.f32 %v9017_v52, %v3294_v19  ;;  %v9023_v34 = vld [vmem:[#allocation17_spill] sm:$0xff]  ;;  %v9024_v10 = vld [vmem:[#allocation19_spill] sm:$0xff]  ;;  %v9026_v57 = vld [vmem:[#allocation10_spill] sm:$0xff] }
 0x488   :  { %v3886_v46 = vadd.f32 %v5615_v29, %v3737_v54  ;;  %v4036_v60 = vadd.f32 %v5632_v39, %v3887_v38  ;;  %v3293_v55 = vadd.f32 %v9016_v8, %v3144_v18 }
 0x489   :  { %v3444_v58 = vadd.f32 %v9018_v31, %v3295_v33 }
 0x48a   :  { %v4035_v3 = vadd.f32 %v5631_v15, %v3886_v46  ;;  %v9014_v15 = vld [vmem:[#allocation3_spill] sm:$0xff]  ;;  %v3442_v11 = vadd.f32 %v9019_v7, %v3293_v55 }
 0x48b   :  { %v8350_v62 = vpop.f32.mrf.mxu0  ;;  %v3441_v1 = vadd.f32 %v9014_v15, %v3292_v9  ;;  %v3593_v61 = vadd.f32 %v9023_v34, %v3444_v58  ;;  %v9028_v9 = vld [vmem:[#allocation126_spill] sm:$0xff] }
 0x48d   :  { %v8357_v37 = vpop.f32.mrf.mxu0  ;;  %v3590_v5 = vadd.f32 %v9020_v47, %v3441_v1 }
 0x48f   :  { %v8366_v21 = vpop.f32.mrf.mxu0  ;;  %v3739_v46 = vadd.f32 %v9022_v53, %v3590_v5 }
 0x491   :  { %v8370_v44 = vpop.f32.mrf.mxu0  ;;  %v3888_v30 = vadd.f32 %v9026_v57, %v3739_v46 }
 0x493   :  { %v4037_v19 = vadd.f32 %v8357_v37, %v3888_v30 }
 0x4a4   :  { %v5647_v25 = vpop.f32.mrf.mxu1 }
 0x4a5   :  { %v4184_v35 = vadd.f32 %v5647_v25, %v4035_v3  ;;  %v9025_v3 = vld [vmem:[#allocation24_spill] sm:$0xff] }
 0x4a6   :  { %v4151_v32 = vpop.f32.mrf.mxu1 }
 0x4a7   :  { %v4182_v51 = vadd.f32 %v4151_v32, %v4033_v49 }
 0x4a8   :  { %v5648_v43 = vpop.f32.mrf.mxu1 }
 0x4a9   :  { %v4185_v13 = vadd.f32 %v5648_v43, %v4036_v60  ;;  %v9021_v43 = vld [vmem:[#allocation112_spill] sm:$0xff] }
 0x4aa   :  { %v4154_v29 = vpop.f32.mrf.mxu1  ;;  %v3592_v6 = vadd.f32 %v9021_v43, %v3443_v50 }
 0x4ab   :  { %v4183_v4 = vadd.f32 %v4154_v29, %v4034_v2 }
 0x4b5   :  { %v5663_v45 = vpop.f32.mrf.mxu0 }
 0x4b6   :  { %v8384_v42 = vadd.f32 %v5663_v45, %v4184_v35  ;;  %v3591_v45 = vadd.f32 %v9024_v10, %v3442_v11 }
 0x4b7   :  { %v4300_v28 = vpop.f32.mrf.mxu0 }
 0x4b8   :  { %v8381_v56 = vadd.f32 %v4300_v28, %v4182_v51  ;;  %v4364_v20 = vmul.f32 %v8384_v42, %v8384_v42  ;;  %v4344_v54 = vsel %vm139_vm5, %v8384_v42, 0.0  ;;  %v3741_v51 = vadd.f32 %v9025_v3, %v3592_v6  ;;  %v9027_v28 = vld [vmem:[#allocation131_spill] sm:$0xff] }
 0x4b9   :  { %v5664_v23 = vpop.f32.mrf.mxu0  ;;  %v5651_v25 = vpop.f32.mrf.mxu1  ;;  %v3742_v60 = vadd.f32 %v9027_v28, %v3593_v61 }
 0x4ba   :  { %v4362_v27 = vmul.f32 %v8381_v56, %v8381_v56  ;;  %v8392_v22 = vadd.f32 %v5664_v23, %v4185_v13  ;;  %v4341_v12 = vsel %vm139_vm5, %v8381_v56, 0.0  ;;  %v4373_v38 = vsel %vm139_vm5, %v4364_v20, 0.0  ;;  %v9029_v13 = vld [vmem:[#allocation6_spill] sm:$0xff] }
 0x4bb   :  { %v4303_v39 = vpop.f32.mrf.mxu0  ;;  %v4167_v0 = vpop.f32.mrf.mxu1  ;;  %v3740_v23 = vadd.f32 %v9028_v9, %v3591_v45  ;;  %v3891_v1 = vadd.f32 %v8344_v14, %v3742_v60 }
 0x4bc   :  { %v8394_v41 = vadd.f32 %v4303_v39, %v4183_v4  ;;  %v4370_v59 = vsel %vm139_vm5, %v4362_v27, 0.0  ;;  %v4365_v63 = vmul.f32 %v8392_v22, %v8392_v22  ;;  %v4346_v40 = vsel %vm139_vm5, %v8392_v22, 0.0 }
 0x4bd   :  { %v5652_v35 = vpop.f32.mrf.mxu1  ;;  %v3890_v4 = vadd.f32 %v9029_v13, %v3741_v51  ;;  %v3889_v33 = vadd.f32 %v8354_v48, %v3740_v23  ;;  %v4186_v55 = vadd.f32 %v4167_v0, %v4037_v19  ;;  %v4040_v39 = vadd.f32 %v8366_v21, %v3891_v1 }
 0x4be   :  { %v4342_v36 = vsel %vm139_vm5, %v8394_v41, 0.0  ;;  %v4363_v32 = vmul.f32 %v8394_v41, %v8394_v41  ;;  %v4375_v2 = vsel %vm139_vm5, %v4365_v63, 0.0 }
 0x4bf   :  { %v4343_v26 = vadd.f32 %v4342_v36, %v4341_v12  ;;  %v4039_v8 = vadd.f32 %v8350_v62, %v3890_v4  ;;  %v4170_v27 = vpop.f32.mrf.mxu1  ;;  %v4038_v50 = vadd.f32 %v8370_v44, %v3889_v33  ;;  %v4189_v7 = vadd.f32 %v5652_v35, %v4040_v39  ;;  %v9030_v39 = vld [vmem:[#allocation4_spill] sm:$0xff] }
 0x4c0   :  { %v4371_v24 = vsel %vm139_vm5, %v4363_v32, 0.0 }
 0x4c1   :  { %v4345_v49 = vadd.f32 %v4344_v54, %v4343_v26  ;;  %v4372_v16 = vadd.f32 %v4371_v24, %v4370_v59  ;;  %v4188_v31 = vadd.f32 %v5651_v25, %v4039_v8  ;;  %v4187_v11 = vadd.f32 %v4170_v27, %v4038_v50  ;;  %v4339_v8 = vld [vmem:[%s8596_s6] sm:$0x1] }
 0x4c3   :  { %v4374_v18 = vadd.f32 %v4373_v38, %v4372_v16  ;;  %v4347_v29 = vadd.f32 %v4346_v40, %v4345_v49 }
 0x4c5   :  { %v4376_v15 = vadd.f32 %v4375_v2, %v4374_v18 }
 0x4c6   :  { %v5667_v17 = vpop.f32.mrf.mxu0 }
 0x4c7   :  { %v8435_v20 = vadd.f32 %v5667_v17, %v4188_v31 }
 0x4c8   :  { %v4316_v52 = vpop.f32.mrf.mxu0 }
 0x4c9   :  { %v8433_v58 = vadd.f32 %v4316_v52, %v4186_v55  ;;  %v4368_v32 = vmul.f32 %v8435_v20, %v8435_v20  ;;  %v4352_v54 = vsel %vm139_vm5, %v8435_v20, 0.0 }
 0x4ca   :  { %v5668_v37 = vpop.f32.mrf.mxu0 }
 0x4cb   :  { %v4348_v14 = vsel %vm139_vm5, %v8433_v58, 0.0  ;;  %v4366_v62 = vmul.f32 %v8433_v58, %v8433_v58  ;;  %v4338_v36 = vadd.f32 %v5668_v37, %v4189_v7  ;;  %v4381_v43 = vsel %vm139_vm5, %v4368_v32, 0.0 }
 0x4cc   :  { %v4349_v48 = vadd.f32 %v4348_v14, %v4347_v29  ;;  %v4319_v21 = vpop.f32.mrf.mxu0 }
 0x4cd   :  { %v4377_v12 = vsel %vm139_vm5, %v4366_v62, 0.0  ;;  %v4336_v44 = vadd.f32 %v4319_v21, %v4187_v11  ;;  %v4369_v59 = vmul.f32 %v4338_v36, %v4338_v36  ;;  %v4354_v6 = vsel %vm139_vm5, %v4338_v36, 0.0 }
 0x4ce   :  { %v4378_v25 = vadd.f32 %v4377_v12, %v4376_v15 }
 0x4cf   :  { %v4350_v47 = vsel %vm139_vm5, %v4336_v44, 0.0  ;;  %v4367_v5 = vmul.f32 %v4336_v44, %v4336_v44  ;;  %v4383_v49 = vsel %vm139_vm5, %v4369_v59, 0.0 }
 0x4d0   :  { %v4351_v26 = vadd.f32 %v4350_v47, %v4349_v48 }
 0x4d1   :  { %v4379_v63 = vsel %vm139_vm5, %v4367_v5, 0.0 }
 0x4d2   :  { %v4353_v0 = vadd.f32 %v4352_v54, %v4351_v26  ;;  %v4380_v24 = vadd.f32 %v4379_v63, %v4378_v25 }
 0x4d4   :  { %v4355_v53 = vadd.f32 %v4354_v6, %v4353_v0  ;;  %v4382_v46 = vadd.f32 %v4381_v43, %v4380_v24 }
 0x4d6   :  { %v4356_v16 = vrot.slane %v4355_v53, 4  ;;  %v4384_v34 = vadd.f32 %v4383_v49, %v4382_v46 }
 0x4d8   :  { %v4357_v61 = vadd.f32 %v4356_v16, %v4355_v53  ;;  %v4385_v10 = vrot.slane %v4384_v34, 4 }
 0x4da   :  { %v4358_v45 = vrot.slane %v4357_v61, 2  ;;  %v4386_v38 = vadd.f32 %v4385_v10, %v4384_v34 }
 0x4dc   :  { %v4359_v40 = vadd.f32 %v4358_v45, %v4357_v61  ;;  %v4387_v3 = vrot.slane %v4386_v38, 2 }
 0x4de   :  { %v4360_v51 = vrot.slane %v4359_v40, 1  ;;  %v4388_v57 = vadd.f32 %v4387_v3, %v4386_v38 }
 0x4e0   :  { %v4361_v30 = vadd.f32 %v4360_v51, %v4359_v40  ;;  %v4389_v18 = vrot.slane %v4388_v57, 1 }
 0x4e2   :  { %v4390_v29 = vadd.f32 %v4389_v18, %v4388_v57  ;;  %v4391_v28 = vmul.f32 0.015625, %v4361_v30 }
 0x4e4   :  { %v4392_v60 = vmul.f32 0.015625, %v4390_v29  ;;  %v4393_v2 = vmul.f32 %v4391_v28, %v4391_v28  ;;  %v4402_v35 = vsub.f32 %v4336_v44, %v4391_v28  ;;  %v4397_v9 = vsub.f32 %v8381_v56, %v4391_v28 }
 0x4e5   :  { %v4398_v23 = vsub.f32 %v8394_v41, %v4391_v28  ;;  %v4399_v13 = vsub.f32 %v8384_v42, %v4391_v28  ;;  %v4400_v4 = vsub.f32 %v8392_v22, %v4391_v28  ;;  %v4401_v19 = vsub.f32 %v8433_v58, %v4391_v28  ;;  %v4980_v42 = vld [vmem:[%s8597_s7] ss:$0 sm:$0xff] }
 0x4e6   :  { %v4394_v15 = vsub.f32 %v4392_v60, %v4393_v2  ;;  %v4403_v1 = vsub.f32 %v8435_v20, %v4391_v28  ;;  %v4404_v17 = vsub.f32 %v4338_v36, %v4391_v28 }
 0x4e8   :  { %v4395_v33 = vadd.f32 1e-05, %v4394_v15 }
 0x4ea   :  { %5811 = vrsqrt.f32 %v4395_v33 }
 0x4f7   :  { %v5812_v55 = vpop.eup %5811 }
 0x4f8   :  { %v4405_v56 = vmul.f32 %v5812_v55, %v4339_v8 }
 0x4fa   :  { %v4409_v41 = vrot.slane %v4405_v56, %v9030_v39 }
 0x4fc   :  { %v4415_v22 = vmul.f32 %v4409_v41, %v4402_v35  ;;  %v4410_v27 = vmul.f32 %v4409_v41, %v4397_v9  ;;  %v4411_v52 = vmul.f32 %v4409_v41, %v4398_v23  ;;  %v4412_v50 = vmul.f32 %v4409_v41, %v4399_v13 }
 0x4fd   :  { %v4413_v31 = vmul.f32 %v4409_v41, %v4400_v4  ;;  %v4414_v58 = vmul.f32 %v4409_v41, %v4401_v19  ;;  %v4416_v7 = vmul.f32 %v4409_v41, %v4403_v1  ;;  %v4417_v37 = vmul.f32 %v4409_v41, %v4404_v17 }
 0x4fe   :  { %v4429_v11 = vadd.f32 %v4980_v42, %v4415_v22  ;;  %v4424_v20 = vadd.f32 %v4980_v42, %v4410_v27  ;;  %v4425_v14 = vadd.f32 %v4980_v42, %v4411_v52  ;;  %v4426_v62 = vadd.f32 %v4980_v42, %v4412_v50 }
 0x4ff   :  { %v4427_v48 = vadd.f32 %v4980_v42, %v4413_v31  ;;  %v4428_v21 = vadd.f32 %v4980_v42, %v4414_v58  ;;  %v4430_v12 = vadd.f32 %v4980_v42, %v4416_v7  ;;  %v4431_v36 = vadd.f32 %v4980_v42, %v4417_v37 }
 0x500   :  { %v4432_v44 = vmax.f32 %v4424_v20, 0.0  ;;  %v4433_v25 = vmax.f32 %v4425_v14, 0.0  ;;  %v4434_v32 = vmax.f32 %v4426_v62, 0.0  ;;  %v4437_v47 = vmax.f32 %v4429_v11, 0.0 }
 0x501   :  { %v4435_v5 = vmax.f32 %v4427_v48, 0.0  ;;  %v4436_v26 = vmax.f32 %v4428_v21, 0.0  ;;  %v4438_v54 = vmax.f32 %v4430_v12, 0.0  ;;  %v4439_v59 = vmax.f32 %v4431_v36, 0.0 }
 0x502   :  { %v4440_v63 = vpack.c.bf16 %v4433_v25, %v4432_v44 }
 0x503   :  { %v4441_v0 = vpack.c.bf16 %v4435_v5, %v4434_v32  ;;  %v4442_v24 = vpack.c.bf16 %v4437_v47, %v4436_v26  ;;  %v4443_v43 = vpack.c.bf16 %v4439_v59, %v4438_v54 }
 0x504   :  { %5671 = vmatprep.mubr.msk.bf16.mxu1 %vm139_vm5, %v4440_v63 }
 0x505   :  { %5672 = vmatmul.mubr.msk.bf16.vlgmr.msra.gmra.mxu1 %vm139_vm5, %v4441_v0 }
 0x506   :  { %5675 = vmatprep.mubr.msk.bf16.mxu1 %vm139_vm5, %v4442_v24 }
 0x50d   :  { %5676 = vmatmul.mubr.msk.bf16.gmra.mxu1 %vm139_vm5, %v4443_v43 }
 0x5c5   :  { %v8468_v6 = vpop.f32.mrf.mxu1 }
 0x5c6   :  { %v4550_v34 = vmul.f32 %v8468_v6, %v8468_v6  ;;  %v4530_v3 = vsel %vm59_vm0, %v8468_v6, 0.0 }
 0x5c7   :  { %v8470_v53 = vpop.f32.mrf.mxu1 }
 0x5c8   :  { %v4548_v49 = vmul.f32 %v8470_v53, %v8470_v53  ;;  %v4527_v61 = vsel %vm59_vm0, %v8470_v53, 0.0  ;;  %v4559_v60 = vsel %vm59_vm0, %v4550_v34, 0.0 }
 0x5c9   :  { %v8472_v46 = vpop.f32.mrf.mxu1 }
 0x5ca   :  { %v4556_v51 = vsel %vm59_vm0, %v4548_v49, 0.0  ;;  %v4551_v57 = vmul.f32 %v8472_v46, %v8472_v46  ;;  %v4532_v2 = vsel %vm59_vm0, %v8472_v46, 0.0  ;;  %v4525_v49 = vld [vmem:[%s8598_s9] sm:$0x1] }
 0x5cb   :  { %v8476_v16 = vpop.f32.mrf.mxu1 }
 0x5cc   :  { %v4528_v10 = vsel %vm59_vm0, %v8476_v16, 0.0  ;;  %v4549_v45 = vmul.f32 %v8476_v16, %v8476_v16  ;;  %v4561_v4 = vsel %vm59_vm0, %v4551_v57, 0.0  ;;  %v4985_v57 = vld [vmem:[%s8599_s10] ss:$0 sm:$0xff] }
 0x5cd   :  { %v4529_v38 = vadd.f32 %v4528_v10, %v4527_v61  ;;  %v8486_v40 = vpop.f32.mrf.mxu1 }
 0x5ce   :  { %v4557_v30 = vsel %vm59_vm0, %v4549_v45, 0.0  ;;  %v4554_v33 = vmul.f32 %v8486_v40, %v8486_v40  ;;  %v4538_v22 = vsel %vm59_vm0, %v8486_v40, 0.0 }
 0x5cf   :  { %v4531_v18 = vadd.f32 %v4530_v3, %v4529_v38  ;;  %v4558_v29 = vadd.f32 %v4557_v30, %v4556_v51  ;;  %v8494_v28 = vpop.f32.mrf.mxu1 }
 0x5d0   :  { %v4552_v35 = vmul.f32 %v8494_v28, %v8494_v28  ;;  %v4534_v19 = vsel %vm59_vm0, %v8494_v28, 0.0  ;;  %v4567_v58 = vsel %vm59_vm0, %v4554_v33, 0.0 }
 0x5d1   :  { %v4560_v9 = vadd.f32 %v4559_v60, %v4558_v29  ;;  %v4533_v23 = vadd.f32 %v4532_v2, %v4531_v18  ;;  %v8501_v13 = vpop.f32.mrf.mxu1 }
 0x5d2   :  { %v4563_v8 = vsel %vm59_vm0, %v4552_v35, 0.0  ;;  %v4555_v27 = vmul.f32 %v8501_v13, %v8501_v13  ;;  %v4540_v7 = vsel %vm59_vm0, %v8501_v13, 0.0 }
 0x5d3   :  { %v4535_v15 = vadd.f32 %v4534_v19, %v4533_v23  ;;  %v4562_v1 = vadd.f32 %v4561_v4, %v4560_v9  ;;  %v4513_v17 = vpop.f32.mrf.mxu1 }
 0x5d4   :  { %v4536_v55 = vsel %vm59_vm0, %v4513_v17, 0.0  ;;  %v4553_v56 = vmul.f32 %v4513_v17, %v4513_v17  ;;  %v4569_v20 = vsel %vm59_vm0, %v4555_v27, 0.0  ;;  %v5833_v27 = vld [vmem:[%s8590_s0 + $0x20] sm:$0xff] }
 0x5d5   :  { %v4564_v41 = vadd.f32 %v4563_v8, %v4562_v1  ;;  %v4537_v42 = vadd.f32 %v4536_v55, %v4535_v15  ;;  %v5830_v8 = vld [vmem:[%s8590_s0 + $0x8] sm:$0xff] }
 0x5d6   :  { %v4565_v52 = vsel %vm59_vm0, %v4553_v56, 0.0  ;;  %v5831_v56 = vld [vmem:[%s8590_s0 + $0x10] sm:$0xff] }
 0x5d7   :  { %v4539_v50 = vadd.f32 %v4538_v22, %v4537_v42  ;;  %v4566_v31 = vadd.f32 %v4565_v52, %v4564_v41  ;;  %v5832_v42 = vld [vmem:[%s8590_s0 + $0x18] sm:$0xff] }
 0x5d9   :  { %v4541_v37 = vadd.f32 %v4540_v7, %v4539_v50  ;;  %v4568_v11 = vadd.f32 %v4567_v58, %v4566_v31  ;;  %v5834_v50 = vld [vmem:[%s8590_s0 + $0x28] sm:$0xff]  ;;  %v5835_v58 = vld [vmem:[%s8590_s0 + $0x30] sm:$0xff] }
 0x5db   :  { %v4542_v14 = vrot.slane %v4541_v37, 4  ;;  %v4570_v62 = vadd.f32 %v4569_v20, %v4568_v11 }
 0x5dd   :  { %v4543_v48 = vadd.f32 %v4542_v14, %v4541_v37  ;;  %v4571_v21 = vrot.slane %v4570_v62, 4  ;;  %v5836_v37 = vld [vmem:[%s8590_s0 + $0x38] sm:$0xff] }
 0x5df   :  { %v4544_v12 = vrot.slane %v4543_v48, 2  ;;  %v4572_v36 = vadd.f32 %v4571_v21, %v4570_v62 }
 0x5e1   :  { %v4545_v44 = vadd.f32 %v4544_v12, %v4543_v48  ;;  %v4573_v25 = vrot.slane %v4572_v36, 2 }
 0x5e3   :  { %v4546_v32 = vrot.slane %v4545_v44, 1  ;;  %v4574_v47 = vadd.f32 %v4573_v25, %v4572_v36 }
 0x5e5   :  { %v4547_v5 = vadd.f32 %v4546_v32, %v4545_v44  ;;  %v4575_v26 = vrot.slane %v4574_v47, 1 }
 0x5e7   :  { %v4576_v54 = vadd.f32 %v4575_v26, %v4574_v47  ;;  %v4577_v59 = vmul.f32 0.015625, %v4547_v5 }
 0x5e9   :  { %v4578_v63 = vmul.f32 0.015625, %v4576_v54  ;;  %v4579_v0 = vmul.f32 %v4577_v59, %v4577_v59  ;;  %v4583_v10 = vsub.f32 %v8470_v53, %v4577_v59  ;;  %v4584_v45 = vsub.f32 %v8476_v16, %v4577_v59 }
 0x5ea   :  { %v4585_v38 = vsub.f32 %v8468_v6, %v4577_v59  ;;  %v4586_v3 = vsub.f32 %v8472_v46, %v4577_v59  ;;  %v4587_v30 = vsub.f32 %v8494_v28, %v4577_v59  ;;  %v4588_v18 = vsub.f32 %v4513_v17, %v4577_v59 }
 0x5eb   :  { %v4580_v24 = vsub.f32 %v4578_v63, %v4579_v0  ;;  %v4589_v29 = vsub.f32 %v8486_v40, %v4577_v59  ;;  %v4590_v60 = vsub.f32 %v8501_v13, %v4577_v59  ;;  %v5829_v40 = vld [vmem:[%s8590_s0] sm:$0xff] }
 0x5ed   :  { %v4581_v43 = vadd.f32 1e-05, %v4580_v24 }
 0x5ef   :  { %5813 = vrsqrt.f32 %v4581_v43 }
 0x5fc   :  { %v5814_v34 = vpop.eup %5813 }
 0x5fd   :  { %v4591_v61 = vmul.f32 %v5814_v34, %v4525_v49 }
 0x5ff   :  { %v4595_v51 = vrot.slane %v4591_v61, %v9030_v39 }
 0x601   :  { %v4596_v53 = vmul.f32 %v4595_v51, %v4583_v10  ;;  %v4597_v2 = vmul.f32 %v4595_v51, %v4584_v45  ;;  %v4598_v16 = vmul.f32 %v4595_v51, %v4585_v38  ;;  %v4599_v35 = vmul.f32 %v4595_v51, %v4586_v3 }
 0x602   :  { %v4600_v6 = vmul.f32 %v4595_v51, %v4587_v30  ;;  %v4601_v9 = vmul.f32 %v4595_v51, %v4588_v18  ;;  %v4602_v46 = vmul.f32 %v4595_v51, %v4589_v29  ;;  %v4603_v23 = vmul.f32 %v4595_v51, %v4590_v60 }
 0x603   :  { %v4610_v39 = vadd.f32 %v4985_v57, %v4596_v53  ;;  %v4611_v4 = vadd.f32 %v4985_v57, %v4597_v2  ;;  %v4612_v19 = vadd.f32 %v4985_v57, %v4598_v16  ;;  %v4613_v15 = vadd.f32 %v4985_v57, %v4599_v35 }
 0x604   :  { %v4614_v1 = vadd.f32 %v4985_v57, %v4600_v6  ;;  %v4615_v33 = vadd.f32 %v4985_v57, %v4601_v9  ;;  %v4616_v28 = vadd.f32 %v4985_v57, %v4602_v46  ;;  %v4617_v17 = vadd.f32 %v4985_v57, %v4603_v23 }
 0x605   :  { %v4618_v13 = vadd.f32 %v5829_v40, %v4610_v39  ;;  %v4619_v55 = vadd.f32 %v5830_v8, %v4611_v4  ;;  %v4620_v41 = vadd.f32 %v5831_v56, %v4612_v19  ;;  %v4621_v22 = vadd.f32 %v5832_v42, %v4613_v15 }
 0x606   :  { %v4622_v52 = vadd.f32 %v5833_v27, %v4614_v1  ;;  %v4623_v31 = vadd.f32 %v5834_v50, %v4615_v33  ;;  %v4624_v7 = vadd.f32 %v5835_v58, %v4616_v28  ;;  %v4625_v11 = vadd.f32 %v5836_v37, %v4617_v17 }
 0x607   :  { %v4626_v20 = vmax.f32 %v4618_v13, 0.0  ;;  %v4627_v14 = vmax.f32 %v4619_v55, 0.0  ;;  %v4628_v62 = vmax.f32 %v4620_v41, 0.0  ;;  %v4629_v48 = vmax.f32 %v4621_v22, 0.0 }
 0x608   :  { %v4630_v21 = vmax.f32 %v4622_v52, 0.0  ;;  %v4631_v12 = vmax.f32 %v4623_v31, 0.0  ;;  %v4632_v36 = vmax.f32 %v4624_v7, 0.0  ;;  %v4633_v44 = vmax.f32 %v4625_v11, 0.0 }
 0x609   :  { %4634 = vst.msk [vmem:[%s8600_s11] sm:$0xff] %vm59_vm0, %v4626_v20  ;;  %4635 = vst.msk [vmem:[%s8600_s11 + $0x8] sm:$0xff] %vm59_vm0, %v4627_v14 }
 0x60a   :  { %4636 = vst.msk [vmem:[%s8600_s11 + $0x10] sm:$0xff] %vm59_vm0, %v4628_v62  ;;  %4637 = vst.msk [vmem:[%s8600_s11 + $0x18] sm:$0xff] %vm59_vm0, %v4629_v48 }
 0x60b   :  { %4638 = vst.msk [vmem:[%s8600_s11 + $0x20] sm:$0xff] %vm59_vm0, %v4630_v21  ;;  %4639 = vst.msk [vmem:[%s8600_s11 + $0x28] sm:$0xff] %vm59_vm0, %v4631_v12 }
 0x60c   :  { %4640 = vst.msk [vmem:[%s8600_s11 + $0x30] sm:$0xff] %vm59_vm0, %v4632_v36  ;;  %4641 = vst.msk [vmem:[%s8600_s11 + $0x38] sm:$0xff] %vm59_vm0, %v4633_v44 }

</bundles_post_ra>
